<compile_context>
chip_gen: v5e
topology: v5e:2x2
jax: 0.10.0
libtpu: 0.0.40
codegen_flags: <defaults>
</compile_context>

<pallas_src>
import functools

import jax
import jax.numpy as jnp
from jax.experimental import pallas as pl
from jax.experimental.pallas import tpu as pltpu


# ----------------------------------------------------------------------------
# Parameter construction (deterministic, synthetic, PyTorch-faithful shapes).
# Weights stored as (in_features, out_features); 1-D params as (1, N).
# ----------------------------------------------------------------------------
def init_params(key, d_state, d_model, d_ff, d_action):
    params = {}
    k = [key]

    def nxt():
        k[0], sub = jax.random.split(k[0])
        return sub

    def dense(shape, scale=0.05):
        return (jax.random.normal(nxt(), shape, jnp.float32) * scale).astype(jnp.float32)

    def ones(n):
        return jnp.ones((1, n), jnp.float32)

    def zeros(n):
        return jnp.zeros((1, n), jnp.float32)

    # state_embedding: LayerNorm(d_state) -> Linear(d_state, d_model) -> GELU
    params["emb_ln_w"] = ones(d_state)
    params["emb_ln_b"] = zeros(d_state)
    params["emb_w"] = dense((d_state, d_model))
    params["emb_b"] = zeros(d_model)

    # encoder layer (norm_first=True, dim_feedforward=d_ff, activation=relu)
    params["enc_ln1_w"] = ones(d_model)
    params["enc_ln1_b"] = zeros(d_model)
    for nm in ("enc_wq", "enc_wk", "enc_wv", "enc_wo"):
        params[nm] = dense((d_model, d_model))
    for nm in ("enc_bq", "enc_bk", "enc_bv", "enc_bo"):
        params[nm] = zeros(d_model)
    params["enc_ln2_w"] = ones(d_model)
    params["enc_ln2_b"] = zeros(d_model)
    params["enc_ff1_w"] = dense((d_model, d_ff))
    params["enc_ff1_b"] = zeros(d_ff)
    params["enc_ff2_w"] = dense((d_ff, d_model))
    params["enc_ff2_b"] = zeros(d_model)

    # decoder layer (norm_first=True): causal self-attn, cross-attn, FF
    params["dec_ln1_w"] = ones(d_model)
    params["dec_ln1_b"] = zeros(d_model)
    for nm in ("dec_sa_wq", "dec_sa_wk", "dec_sa_wv", "dec_sa_wo"):
        params[nm] = dense((d_model, d_model))
    for nm in ("dec_sa_bq", "dec_sa_bk", "dec_sa_bv", "dec_sa_bo"):
        params[nm] = zeros(d_model)
    params["dec_ln2_w"] = ones(d_model)
    params["dec_ln2_b"] = zeros(d_model)
    for nm in ("dec_ca_wq", "dec_ca_wk", "dec_ca_wv", "dec_ca_wo"):
        params[nm] = dense((d_model, d_model))
    for nm in ("dec_ca_bq", "dec_ca_bk", "dec_ca_bv", "dec_ca_bo"):
        params[nm] = zeros(d_model)
    params["dec_ln3_w"] = ones(d_model)
    params["dec_ln3_b"] = zeros(d_model)
    params["dec_ff1_w"] = dense((d_model, d_ff))
    params["dec_ff1_b"] = zeros(d_ff)
    params["dec_ff2_w"] = dense((d_ff, d_model))
    params["dec_ff2_b"] = zeros(d_model)

    # actor_head: Linear(d_model,128) GELU Linear(128,128) GELU LayerNorm(128) Linear(128,d_action)
    params["act_w1"] = dense((d_model, 128))
    params["act_b1"] = zeros(128)
    params["act_w2"] = dense((128, 128))
    params["act_b2"] = zeros(128)
    params["act_ln_w"] = ones(128)
    params["act_ln_b"] = zeros(128)
    params["act_w3"] = dense((128, d_action))
    params["act_b3"] = zeros(d_action)

    # value_head: Linear(d_model,128) GELU Linear(128,128) GELU LayerNorm(128) Linear(128,1)
    params["val_w1"] = dense((d_model, 128))
    params["val_b1"] = zeros(128)
    params["val_w2"] = dense((128, 128))
    params["val_b2"] = zeros(128)
    params["val_ln_w"] = ones(128)
    params["val_ln_b"] = zeros(128)
    params["val_w3"] = dense((128, 1))
    params["val_b3"] = zeros(1)

    # value_pool: Linear(d_model,1) then Softmax over sequence dim
    params["vp_w"] = dense((d_model, 1))
    params["vp_b"] = zeros(1)

    # NOTE: log_action_std exists in the module but is not used by forward().
    return params


# ----------------------------------------------------------------------------
# One-time parameter preparation for the kernel (outside the hot path):
#   - fold 1/sqrt(head_dim) into W_q / b_q
#   - zero-pad final actor / value projections to 128 lanes (lane-dense stores)
#   - cast weight matrices to bf16 (biases / LN affines stay f32)
#   - store the value-pool projection transposed as (1, d_model)
# ----------------------------------------------------------------------------
def prepare_params(params, *, n_heads):
    d_model = params["emb_w"].shape[1]
    head_dim = d_model // n_heads
    scale = 1.0 / float(head_dim) ** 0.5

    p = dict(params)
    for pref in ("enc", "dec_sa", "dec_ca"):
        p[pref + "_wq"] = p[pref + "_wq"] * scale
        p[pref + "_bq"] = p[pref + "_bq"] * scale

    def pad_lanes(a, to):
        return jnp.pad(a, ((0, 0), (0, to - a.shape[1])))

    a_pad = ((p["act_w3"].shape[1] + 127) // 128) * 128
    p["act_w3"] = pad_lanes(p["act_w3"], a_pad)
    p["act_b3"] = pad_lanes(p["act_b3"], a_pad)
    p["val_w3"] = pad_lanes(p["val_w3"], 128)
    p["val_b3"] = pad_lanes(p["val_b3"], 128)

    out = {}
    for name, v in p.items():
        if v.ndim == 2 and v.shape[0] > 1:          # weight matrix -> bf16
            out[name] = v.astype(jnp.bfloat16)
        else:                                        # bias / LayerNorm affine -> f32
            out[name] = v.astype(jnp.float32)
    out["vp_w"] = out["vp_w"].T                      # (1, d_model), bf16
    return out


# ----------------------------------------------------------------------------
# Kernel
# ----------------------------------------------------------------------------
def make_kernel(param_names, n_heads, d_model):
    n_params = len(param_names)
    head_dim = d_model // n_heads
    f32 = jnp.float32
    bf16 = jnp.bfloat16

    def kernel(x_ref, attn_mask_ref, causal_mask_ref, pool_mask_ref, *refs):
        p = {name: refs[i] for i, name in enumerate(param_names)}
        action_ref = refs[n_params]
        value_ref = refs[n_params + 1]

        def ln(x, prefix, eps=1e-5):
            w = p[prefix + "_w"][...]
            b = p[prefix + "_b"][...]
            mu = jnp.mean(x, axis=-1, keepdims=True)
            var = jnp.mean(jnp.square(x - mu), axis=-1, keepdims=True)
            return (x - mu) * jax.lax.rsqrt(var + eps) * w + b

        def gelu(x):
            # tanh-approx GELU (tanh runs on the EUP); ~1e-3 max dev vs exact erf GELU.
            c = 0.7978845608028654  # sqrt(2/pi)
            return 0.5 * x * (1.0 + jnp.tanh(c * (x + 0.044715 * x * x * x)))

        def linear(x, w_name, b_name):
            w = p[w_name][...]                       # bf16 weight
            return jnp.dot(x.astype(w.dtype), w,
                           preferred_element_type=f32) + p[b_name][...]

        def softmax_rows(logits):
            logits = logits - jnp.max(logits, axis=-1, keepdims=True)
            e = jnp.exp(logits)
            return e * pl.reciprocal(jnp.sum(e, axis=-1, keepdims=True), approx=True)

        def mha(xq, xkv, prefix, add_mask):
            # 1/sqrt(head_dim) already folded into *_wq / *_bq in prepare_params().
            q = linear(xq, prefix + "_wq", prefix + "_bq")
            k = linear(xkv, prefix + "_wk", prefix + "_bk")
            v = linear(xkv, prefix + "_wv", prefix + "_bv")
            wo = p[prefix + "_wo"][...]
            acc = None
            for h in range(n_heads):
                lo = h * head_dim
                qh = q[:, lo:lo + head_dim].astype(bf16)
                kh = k[:, lo:lo + head_dim].astype(bf16)
                vh = v[:, lo:lo + head_dim].astype(bf16)
                sc = jax.lax.dot_general(qh, kh, (((1,), (1,)), ((), ())),
                                         preferred_element_type=f32)
                probs = softmax_rows(sc + add_mask)
                hv = jnp.dot(probs.astype(bf16), vh, preferred_element_type=f32)
                # Accumulate through the per-head rows of W_o (no lane-axis concat).
                proj = jnp.dot(hv.astype(bf16), wo[lo:lo + head_dim, :],
                               preferred_element_type=f32)
                acc = proj if acc is None else acc + proj
            return acc + p[prefix + "_bo"][...]

        x = x_ref[...]                               # (B*S, d_state), f32
        attn_mask = attn_mask_ref[...]               # (B*S, B*S) block-diagonal
        causal_mask = causal_mask_ref[...]           # (B*S, B*S) block-diag + causal

        # ---- state embedding: LayerNorm -> Linear -> GELU
        h = gelu(linear(ln(x, "emb_ln"), "emb_w", "emb_b"))

        # ---- transformer encoder layer (norm_first)
        a_in = ln(h, "enc_ln1")
        h = h + mha(a_in, a_in, "enc", attn_mask)
        f_in = ln(h, "enc_ln2")
        h = h + linear(jnp.maximum(linear(f_in, "enc_ff1_w", "enc_ff1_b"), 0.0),
                       "enc_ff2_w", "enc_ff2_b")
        enc_out = h                                  # (B*S, d_model)

        # ---- transformer decoder layer (norm_first), tgt = memory = enc_out
        d = enc_out
        sa_in = ln(d, "dec_ln1")
        d = d + mha(sa_in, sa_in, "dec_sa", causal_mask)       # causal self-attn
        ca_in = ln(d, "dec_ln2")
        d = d + mha(ca_in, enc_out, "dec_ca", attn_mask)       # cross-attn over memory
        ff_in = ln(d, "dec_ln3")
        d = d + linear(jnp.maximum(linear(ff_in, "dec_ff1_w", "dec_ff1_b"), 0.0),
                       "dec_ff2_w", "dec_ff2_b")
        dec_out = d                                  # (B*S, d_model)

        # ---- actor head (final projection lane-padded to 128 -> dense store)
        a = gelu(linear(dec_out, "act_w1", "act_b1"))
        a = gelu(linear(a, "act_w2", "act_b2"))
        a = ln(a, "act_ln")
        action_ref[...] = linear(a, "act_w3", "act_b3")        # (B*S, 128)

        # ---- value pooling: lane-parallel softmax over each batch's sequence
        enc_bf = enc_out.astype(bf16)
        vp_wT = p["vp_w"][...]                       # (1, d_model), bf16
        logits = jax.lax.dot_general(vp_wT, enc_bf, (((1,), (1,)), ((), ())),
                                     preferred_element_type=f32) + p["vp_b"][...]
        probs = softmax_rows(logits + pool_mask_ref[...])      # (B, B*S)
        pooled = jnp.dot(probs.astype(bf16), enc_bf,
                         preferred_element_type=f32)           # (B, d_model)

        # ---- value head (final projection lane-padded to 128 -> dense store)
        v = gelu(linear(pooled, "val_w1", "val_b1"))
        v = gelu(linear(v, "val_w2", "val_b2"))
        v = ln(v, "val_ln")
        value_ref[...] = linear(v, "val_w3", "val_b3")         # (B, 128)

    return kernel


# ----------------------------------------------------------------------------
# Wrapper: single pallas_call, no batch grid (batch folded into rows).
# ----------------------------------------------------------------------------
@functools.partial(jax.jit, static_argnames=("d_action", "n_heads"))
def actor_critic_forward(state, params, *, d_action, n_heads=2):
    B, S, d_state = state.shape
    N = B * S
    d_model = params["emb_w"].shape[1]
    a_pad = params["act_b3"].shape[1]
    v_pad = params["val_b3"].shape[1]

    names = sorted(params.keys())
    values = [params[n] for n in names]

    x2d = state.reshape(N, d_state)

    # Block-diagonal additive masks (compile-time constants; -1e30 finite sentinel).
    idx = jnp.arange(N, dtype=jnp.int32)
    bid = idx // S
    same = bid[:, None] == bid[None, :]
    causal = idx[None, :] <= idx[:, None]
    NEG = jnp.float32(-1e30)
    attn_mask = jnp.where(same, 0.0, NEG).astype(jnp.float32)              # (N, N)
    causal_mask = jnp.where(same & causal, 0.0, NEG).astype(jnp.float32)   # (N, N)
    pool_mask = jnp.where(jnp.arange(B, dtype=jnp.int32)[:, None] == bid[None, :],
                          0.0, NEG).astype(jnp.float32)                    # (B, N)

    kernel = make_kernel(tuple(names), n_heads, d_model)

    vmem = pl.BlockSpec(memory_space=pltpu.MemorySpace.VMEM)
    n_inputs = 4 + len(values)

    action_padded, value_padded = pl.pallas_call(
        kernel,
        out_shape=(jax.ShapeDtypeStruct((N, a_pad), jnp.float32),
                   jax.ShapeDtypeStruct((B, v_pad), jnp.float32)),
        in_specs=[vmem] * n_inputs,
        out_specs=(vmem, vmem),
    )(x2d, attn_mask, causal_mask, pool_mask, *values)

    action_mean = action_padded[:, :d_action].reshape(B, S, d_action)
    value = value_padded[:, :1]
    return action_mean, value


# ----------------------------------------------------------------------------
# Main
# ----------------------------------------------------------------------------
if __name__ == "__main__":
    # Small shapes consistent with the module:
    #   batch B=2, sequence (= n_agents) S=8, d_state=16, d_model=64, n_heads=2,
    #   dim_feedforward=1024, d_action=4.
    B, S = 2, 8
    d_state, d_model, d_ff, d_action, n_heads = 16, 64, 1024, 4, 2

    key = jax.random.PRNGKey(0)
    k_params, k_state = jax.random.split(key)
    raw_params = init_params(k_params, d_state, d_model, d_ff, d_action)
    params = prepare_params(raw_params, n_heads=n_heads)
    state = jax.random.normal(k_state, (B, S, d_state), jnp.float32)

    action_mean, value = actor_critic_forward(state, params, d_action=d_action,
                                              n_heads=n_heads)
    action_mean = jax.block_until_ready(action_mean)
    value = jax.block_until_ready(value)

    assert action_mean.shape == (B, S, d_action)
    assert value.shape == (B, 1)
    assert bool(jnp.all(jnp.isfinite(action_mean))) and bool(jnp.all(jnp.isfinite(value)))

    # TODO(synk): act()/evaluate() Normal-distribution sampling / log-prob / entropy
    # (and the unused log_action_std parameter) are host-side glue around forward()
    # and are not part of this kernel.
    print("KERNEL_OK")
</pallas_src>

<mosaic_0001>
module attributes {stable_mosaic.version = 11 : i64} {
  func.func @kernel(%arg0: memref<16x16xf32, #tpu.memory_space<vmem>>, %arg1: memref<16x16xf32, #tpu.memory_space<vmem>>, %arg2: memref<16x16xf32, #tpu.memory_space<vmem>>, %arg3: memref<2x16xf32, #tpu.memory_space<vmem>>, %arg4: memref<1x128xf32, #tpu.memory_space<vmem>>, %arg5: memref<1x128xf32, #tpu.memory_space<vmem>>, %arg6: memref<1x128xf32, #tpu.memory_space<vmem>>, %arg7: memref<1x128xf32, #tpu.memory_space<vmem>>, %arg8: memref<1x128xf32, #tpu.memory_space<vmem>>, %arg9: memref<64x128xbf16, #tpu.memory_space<vmem>>, %arg10: memref<128x128xbf16, #tpu.memory_space<vmem>>, %arg11: memref<128x128xbf16, #tpu.memory_space<vmem>>, %arg12: memref<1x64xf32, #tpu.memory_space<vmem>>, %arg13: memref<1x64xf32, #tpu.memory_space<vmem>>, %arg14: memref<1x64xf32, #tpu.memory_space<vmem>>, %arg15: memref<1x64xf32, #tpu.memory_space<vmem>>, %arg16: memref<64x64xbf16, #tpu.memory_space<vmem>>, %arg17: memref<64x64xbf16, #tpu.memory_space<vmem>>, %arg18: memref<64x64xbf16, #tpu.memory_space<vmem>>, %arg19: memref<64x64xbf16, #tpu.memory_space<vmem>>, %arg20: memref<1x1024xf32, #tpu.memory_space<vmem>>, %arg21: memref<64x1024xbf16, #tpu.memory_space<vmem>>, %arg22: memref<1x64xf32, #tpu.memory_space<vmem>>, %arg23: memref<1024x64xbf16, #tpu.memory_space<vmem>>, %arg24: memref<1x64xf32, #tpu.memory_space<vmem>>, %arg25: memref<1x64xf32, #tpu.memory_space<vmem>>, %arg26: memref<1x64xf32, #tpu.memory_space<vmem>>, %arg27: memref<1x64xf32, #tpu.memory_space<vmem>>, %arg28: memref<1x64xf32, #tpu.memory_space<vmem>>, %arg29: memref<1x64xf32, #tpu.memory_space<vmem>>, %arg30: memref<1x64xf32, #tpu.memory_space<vmem>>, %arg31: memref<1x64xf32, #tpu.memory_space<vmem>>, %arg32: memref<1x64xf32, #tpu.memory_space<vmem>>, %arg33: memref<1x64xf32, #tpu.memory_space<vmem>>, %arg34: memref<64x64xbf16, #tpu.memory_space<vmem>>, %arg35: memref<64x64xbf16, #tpu.memory_space<vmem>>, %arg36: memref<64x64xbf16, #tpu.memory_space<vmem>>, %arg37: memref<64x64xbf16, #tpu.memory_space<vmem>>, %arg38: memref<1x64xf32, #tpu.memory_space<vmem>>, %arg39: memref<1x16xf32, #tpu.memory_space<vmem>>, %arg40: memref<1x16xf32, #tpu.memory_space<vmem>>, %arg41: memref<16x64xbf16, #tpu.memory_space<vmem>>, %arg42: memref<1x64xf32, #tpu.memory_space<vmem>>, %arg43: memref<1x64xf32, #tpu.memory_space<vmem>>, %arg44: memref<1x64xf32, #tpu.memory_space<vmem>>, %arg45: memref<1x64xf32, #tpu.memory_space<vmem>>, %arg46: memref<1x1024xf32, #tpu.memory_space<vmem>>, %arg47: memref<64x1024xbf16, #tpu.memory_space<vmem>>, %arg48: memref<1x64xf32, #tpu.memory_space<vmem>>, %arg49: memref<1024x64xbf16, #tpu.memory_space<vmem>>, %arg50: memref<1x64xf32, #tpu.memory_space<vmem>>, %arg51: memref<1x64xf32, #tpu.memory_space<vmem>>, %arg52: memref<1x64xf32, #tpu.memory_space<vmem>>, %arg53: memref<1x64xf32, #tpu.memory_space<vmem>>, %arg54: memref<64x64xbf16, #tpu.memory_space<vmem>>, %arg55: memref<64x64xbf16, #tpu.memory_space<vmem>>, %arg56: memref<64x64xbf16, #tpu.memory_space<vmem>>, %arg57: memref<64x64xbf16, #tpu.memory_space<vmem>>, %arg58: memref<1x128xf32, #tpu.memory_space<vmem>>, %arg59: memref<1x128xf32, #tpu.memory_space<vmem>>, %arg60: memref<1x128xf32, #tpu.memory_space<vmem>>, %arg61: memref<1x128xf32, #tpu.memory_space<vmem>>, %arg62: memref<1x128xf32, #tpu.memory_space<vmem>>, %arg63: memref<64x128xbf16, #tpu.memory_space<vmem>>, %arg64: memref<128x128xbf16, #tpu.memory_space<vmem>>, %arg65: memref<128x128xbf16, #tpu.memory_space<vmem>>, %arg66: memref<1x1xf32, #tpu.memory_space<vmem>>, %arg67: memref<1x64xbf16, #tpu.memory_space<vmem>>, %arg68: memref<16x128xf32, #tpu.memory_space<vmem>>, %arg69: memref<2x128xf32, #tpu.memory_space<vmem>>) attributes {dimension_semantics = [], scalar_prefetch = 0 : i64, scratch_operands = 0 : i64, tpu.core_type = #tpu.core_type<tc>} {
    %c0 = arith.constant 0 : index
    %c0_0 = arith.constant 0 : index
    %0 = vector.load %arg0[%c0, %c0_0] : memref<16x16xf32, #tpu.memory_space<vmem>>, vector<16x16xf32>
    %c0_1 = arith.constant 0 : index
    %c0_2 = arith.constant 0 : index
    %1 = vector.load %arg1[%c0_1, %c0_2] : memref<16x16xf32, #tpu.memory_space<vmem>>, vector<16x16xf32>
    %c0_3 = arith.constant 0 : index
    %c0_4 = arith.constant 0 : index
    %2 = vector.load %arg2[%c0_3, %c0_4] : memref<16x16xf32, #tpu.memory_space<vmem>>, vector<16x16xf32>
    %c0_5 = arith.constant 0 : index
    %c0_6 = arith.constant 0 : index
    %3 = vector.load %arg40[%c0_5, %c0_6] : memref<1x16xf32, #tpu.memory_space<vmem>>, vector<1x16xf32>
    %c0_7 = arith.constant 0 : index
    %c0_8 = arith.constant 0 : index
    %4 = vector.load %arg39[%c0_7, %c0_8] : memref<1x16xf32, #tpu.memory_space<vmem>>, vector<1x16xf32>
    %cst = arith.constant dense<0.000000e+00> : vector<16xf32>
    %5 = vector.multi_reduction <add>, %0, %cst [1] : vector<16x16xf32> to vector<16xf32>
    %6 = vector.shape_cast %5 : vector<16xf32> to vector<16x1xf32>
    %cst_9 = arith.constant 1.600000e+01 : f32
    %7 = vector.broadcast %cst_9 : f32 to vector<16x1xf32>
    %8 = arith.divf %6, %7 : vector<16x1xf32>
    %9 = vector.broadcast %8 : vector<16x1xf32> to vector<16x16xf32>
    %10 = arith.subf %0, %9 : vector<16x16xf32>
    %11 = arith.mulf %10, %10 : vector<16x16xf32>
    %cst_10 = arith.constant dense<0.000000e+00> : vector<16xf32>
    %12 = vector.multi_reduction <add>, %11, %cst_10 [1] : vector<16x16xf32> to vector<16xf32>
    %13 = vector.shape_cast %12 : vector<16xf32> to vector<16x1xf32>
    %cst_11 = arith.constant 1.600000e+01 : f32
    %14 = vector.broadcast %cst_11 : f32 to vector<16x1xf32>
    %15 = arith.divf %13, %14 : vector<16x1xf32>
    %16 = vector.broadcast %8 : vector<16x1xf32> to vector<16x16xf32>
    %17 = arith.subf %0, %16 : vector<16x16xf32>
    %cst_12 = arith.constant 9.99999974E-6 : f32
    %18 = vector.broadcast %cst_12 : f32 to vector<16x1xf32>
    %19 = arith.addf %15, %18 : vector<16x1xf32>
    %20 = math.rsqrt %19 : vector<16x1xf32>
    %21 = vector.broadcast %20 : vector<16x1xf32> to vector<16x16xf32>
    %22 = arith.mulf %17, %21 : vector<16x16xf32>
    %23 = vector.broadcast %3 : vector<1x16xf32> to vector<16x16xf32>
    %24 = arith.mulf %22, %23 : vector<16x16xf32>
    %25 = vector.broadcast %4 : vector<1x16xf32> to vector<16x16xf32>
    %26 = arith.addf %24, %25 : vector<16x16xf32>
    %c0_13 = arith.constant 0 : index
    %c0_14 = arith.constant 0 : index
    %27 = vector.load %arg41[%c0_13, %c0_14] : memref<16x64xbf16, #tpu.memory_space<vmem>>, vector<16x64xbf16>
    %28 = arith.truncf %26 : vector<16x16xf32> to vector<16x16xbf16>
    %cst_15 = arith.constant dense<0.000000e+00> : vector<16x64xf32>
    %29 = tpu.matmul %28, %27, %cst_15 {dimension_numbers = #tpu.dot_dimension_numbers<[1], [0], [0], [1], [0, 0, 1, 1], [], []>} : vector<16x16xbf16>, vector<16x64xbf16>, vector<16x64xf32> -> vector<16x64xf32>
    %c0_16 = arith.constant 0 : index
    %c0_17 = arith.constant 0 : index
    %30 = vector.load %arg38[%c0_16, %c0_17] : memref<1x64xf32, #tpu.memory_space<vmem>>, vector<1x64xf32>
    %31 = vector.broadcast %30 : vector<1x64xf32> to vector<16x64xf32>
    %32 = arith.addf %29, %31 : vector<16x64xf32>
    %cst_18 = arith.constant 5.000000e-01 : f32
    %33 = vector.broadcast %cst_18 : f32 to vector<16x64xf32>
    %34 = arith.mulf %33, %32 : vector<16x64xf32>
    %cst_19 = arith.constant 4.471500e-02 : f32
    %35 = vector.broadcast %cst_19 : f32 to vector<16x64xf32>
    %36 = arith.mulf %35, %32 : vector<16x64xf32>
    %37 = arith.mulf %36, %32 : vector<16x64xf32>
    %38 = arith.mulf %37, %32 : vector<16x64xf32>
    %39 = arith.addf %32, %38 : vector<16x64xf32>
    %cst_20 = arith.constant 0.797884583 : f32
    %40 = vector.broadcast %cst_20 : f32 to vector<16x64xf32>
    %41 = arith.mulf %40, %39 : vector<16x64xf32>
    %42 = math.tanh %41 : vector<16x64xf32>
    %cst_21 = arith.constant 1.000000e+00 : f32
    %43 = vector.broadcast %cst_21 : f32 to vector<16x64xf32>
    %44 = arith.addf %43, %42 : vector<16x64xf32>
    %45 = arith.mulf %34, %44 : vector<16x64xf32>
    %c0_22 = arith.constant 0 : index
    %c0_23 = arith.constant 0 : index
    %46 = vector.load %arg51[%c0_22, %c0_23] : memref<1x64xf32, #tpu.memory_space<vmem>>, vector<1x64xf32>
    %c0_24 = arith.constant 0 : index
    %c0_25 = arith.constant 0 : index
    %47 = vector.load %arg50[%c0_24, %c0_25] : memref<1x64xf32, #tpu.memory_space<vmem>>, vector<1x64xf32>
    %cst_26 = arith.constant dense<0.000000e+00> : vector<16xf32>
    %48 = vector.multi_reduction <add>, %45, %cst_26 [1] : vector<16x64xf32> to vector<16xf32>
    %49 = vector.shape_cast %48 : vector<16xf32> to vector<16x1xf32>
    %cst_27 = arith.constant 6.400000e+01 : f32
    %50 = vector.broadcast %cst_27 : f32 to vector<16x1xf32>
    %51 = arith.divf %49, %50 : vector<16x1xf32>
    %52 = vector.broadcast %51 : vector<16x1xf32> to vector<16x64xf32>
    %53 = arith.subf %45, %52 : vector<16x64xf32>
    %54 = arith.mulf %53, %53 : vector<16x64xf32>
    %cst_28 = arith.constant dense<0.000000e+00> : vector<16xf32>
    %55 = vector.multi_reduction <add>, %54, %cst_28 [1] : vector<16x64xf32> to vector<16xf32>
    %56 = vector.shape_cast %55 : vector<16xf32> to vector<16x1xf32>
    %cst_29 = arith.constant 6.400000e+01 : f32
    %57 = vector.broadcast %cst_29 : f32 to vector<16x1xf32>
    %58 = arith.divf %56, %57 : vector<16x1xf32>
    %59 = vector.broadcast %51 : vector<16x1xf32> to vector<16x64xf32>
    %60 = arith.subf %45, %59 : vector<16x64xf32>
    %cst_30 = arith.constant 9.99999974E-6 : f32
    %61 = vector.broadcast %cst_30 : f32 to vector<16x1xf32>
    %62 = arith.addf %58, %61 : vector<16x1xf32>
    %63 = math.rsqrt %62 : vector<16x1xf32>
    %64 = vector.broadcast %63 : vector<16x1xf32> to vector<16x64xf32>
    %65 = arith.mulf %60, %64 : vector<16x64xf32>
    %66 = vector.broadcast %46 : vector<1x64xf32> to vector<16x64xf32>
    %67 = arith.mulf %65, %66 : vector<16x64xf32>
    %68 = vector.broadcast %47 : vector<1x64xf32> to vector<16x64xf32>
    %69 = arith.addf %67, %68 : vector<16x64xf32>
    %c0_31 = arith.constant 0 : index
    %c0_32 = arith.constant 0 : index
    %70 = vector.load %arg56[%c0_31, %c0_32] : memref<64x64xbf16, #tpu.memory_space<vmem>>, vector<64x64xbf16>
    %71 = arith.truncf %69 : vector<16x64xf32> to vector<16x64xbf16>
    %cst_33 = arith.constant dense<0.000000e+00> : vector<16x64xf32>
    %72 = tpu.matmul %71, %70, %cst_33 {dimension_numbers = #tpu.dot_dimension_numbers<[1], [0], [0], [1], [0, 0, 1, 1], [], []>} : vector<16x64xbf16>, vector<64x64xbf16>, vector<16x64xf32> -> vector<16x64xf32>
    %c0_34 = arith.constant 0 : index
    %c0_35 = arith.constant 0 : index
    %73 = vector.load %arg44[%c0_34, %c0_35] : memref<1x64xf32, #tpu.memory_space<vmem>>, vector<1x64xf32>
    %74 = vector.broadcast %73 : vector<1x64xf32> to vector<16x64xf32>
    %75 = arith.addf %72, %74 : vector<16x64xf32>
    %c0_36 = arith.constant 0 : index
    %c0_37 = arith.constant 0 : index
    %76 = vector.load %arg54[%c0_36, %c0_37] : memref<64x64xbf16, #tpu.memory_space<vmem>>, vector<64x64xbf16>
    %77 = arith.truncf %69 : vector<16x64xf32> to vector<16x64xbf16>
    %cst_38 = arith.constant dense<0.000000e+00> : vector<16x64xf32>
    %78 = tpu.matmul %77, %76, %cst_38 {dimension_numbers = #tpu.dot_dimension_numbers<[1], [0], [0], [1], [0, 0, 1, 1], [], []>} : vector<16x64xbf16>, vector<64x64xbf16>, vector<16x64xf32> -> vector<16x64xf32>
    %c0_39 = arith.constant 0 : index
    %c0_40 = arith.constant 0 : index
    %79 = vector.load %arg42[%c0_39, %c0_40] : memref<1x64xf32, #tpu.memory_space<vmem>>, vector<1x64xf32>
    %80 = vector.broadcast %79 : vector<1x64xf32> to vector<16x64xf32>
    %81 = arith.addf %78, %80 : vector<16x64xf32>
    %c0_41 = arith.constant 0 : index
    %c0_42 = arith.constant 0 : index
    %82 = vector.load %arg57[%c0_41, %c0_42] : memref<64x64xbf16, #tpu.memory_space<vmem>>, vector<64x64xbf16>
    %83 = arith.truncf %69 : vector<16x64xf32> to vector<16x64xbf16>
    %cst_43 = arith.constant dense<0.000000e+00> : vector<16x64xf32>
    %84 = tpu.matmul %83, %82, %cst_43 {dimension_numbers = #tpu.dot_dimension_numbers<[1], [0], [0], [1], [0, 0, 1, 1], [], []>} : vector<16x64xbf16>, vector<64x64xbf16>, vector<16x64xf32> -> vector<16x64xf32>
    %c0_44 = arith.constant 0 : index
    %c0_45 = arith.constant 0 : index
    %85 = vector.load %arg45[%c0_44, %c0_45] : memref<1x64xf32, #tpu.memory_space<vmem>>, vector<1x64xf32>
    %86 = vector.broadcast %85 : vector<1x64xf32> to vector<16x64xf32>
    %87 = arith.addf %84, %86 : vector<16x64xf32>
    %c0_46 = arith.constant 0 : index
    %c0_47 = arith.constant 0 : index
    %88 = vector.load %arg55[%c0_46, %c0_47] : memref<64x64xbf16, #tpu.memory_space<vmem>>, vector<64x64xbf16>
    %89 = vector.extract_strided_slice %75 {offsets = [0, 0], sizes = [16, 32], strides = [1, 1]} : vector<16x64xf32> to vector<16x32xf32>
    %90 = arith.truncf %89 : vector<16x32xf32> to vector<16x32xbf16>
    %91 = vector.extract_strided_slice %81 {offsets = [0, 0], sizes = [16, 32], strides = [1, 1]} : vector<16x64xf32> to vector<16x32xf32>
    %92 = arith.truncf %91 : vector<16x32xf32> to vector<16x32xbf16>
    %93 = vector.extract_strided_slice %87 {offsets = [0, 0], sizes = [16, 32], strides = [1, 1]} : vector<16x64xf32> to vector<16x32xf32>
    %94 = arith.truncf %93 : vector<16x32xf32> to vector<16x32xbf16>
    %cst_48 = arith.constant dense<0.000000e+00> : vector<16x16xf32>
    %95 = tpu.matmul %90, %92, %cst_48 {dimension_numbers = #tpu.dot_dimension_numbers<[1], [1], [0], [0], [0, 0, 1, 0], [], []>} : vector<16x32xbf16>, vector<16x32xbf16>, vector<16x16xf32> -> vector<16x16xf32>
    %96 = arith.addf %95, %1 : vector<16x16xf32>
    %cst_49 = arith.constant dense<0xFF800000> : vector<16xf32>
    %97 = vector.multi_reduction <maximumf>, %96, %cst_49 [1] : vector<16x16xf32> to vector<16xf32>
    %98 = vector.shape_cast %97 : vector<16xf32> to vector<16x1xf32>
    %99 = vector.broadcast %98 : vector<16x1xf32> to vector<16x16xf32>
    %100 = arith.subf %96, %99 : vector<16x16xf32>
    %101 = math.exp %100 : vector<16x16xf32>
    %cst_50 = arith.constant dense<0.000000e+00> : vector<16xf32>
    %102 = vector.multi_reduction <add>, %101, %cst_50 [1] : vector<16x16xf32> to vector<16xf32>
    %103 = vector.shape_cast %102 : vector<16xf32> to vector<16x1xf32>
    %104 = tpu.reciprocal %103 {approx = true} : vector<16x1xf32> -> vector<16x1xf32>
    %105 = vector.broadcast %104 : vector<16x1xf32> to vector<16x16xf32>
    %106 = arith.mulf %101, %105 : vector<16x16xf32>
    %107 = arith.truncf %106 : vector<16x16xf32> to vector<16x16xbf16>
    %cst_51 = arith.constant dense<0.000000e+00> : vector<16x32xf32>
    %108 = tpu.matmul %107, %94, %cst_51 {dimension_numbers = #tpu.dot_dimension_numbers<[1], [0], [0], [1], [0, 0, 1, 1], [], []>} : vector<16x16xbf16>, vector<16x32xbf16>, vector<16x32xf32> -> vector<16x32xf32>
    %109 = arith.truncf %108 : vector<16x32xf32> to vector<16x32xbf16>
    %110 = vector.extract_strided_slice %88 {offsets = [0, 0], sizes = [32, 64], strides = [1, 1]} : vector<64x64xbf16> to vector<32x64xbf16>
    %cst_52 = arith.constant dense<0.000000e+00> : vector<16x64xf32>
    %111 = tpu.matmul %109, %110, %cst_52 {dimension_numbers = #tpu.dot_dimension_numbers<[1], [0], [0], [1], [0, 0, 1, 1], [], []>} : vector<16x32xbf16>, vector<32x64xbf16>, vector<16x64xf32> -> vector<16x64xf32>
    %112 = vector.extract_strided_slice %75 {offsets = [0, 32], sizes = [16, 32], strides = [1, 1]} : vector<16x64xf32> to vector<16x32xf32>
    %113 = arith.truncf %112 : vector<16x32xf32> to vector<16x32xbf16>
    %114 = vector.extract_strided_slice %81 {offsets = [0, 32], sizes = [16, 32], strides = [1, 1]} : vector<16x64xf32> to vector<16x32xf32>
    %115 = arith.truncf %114 : vector<16x32xf32> to vector<16x32xbf16>
    %116 = vector.extract_strided_slice %87 {offsets = [0, 32], sizes = [16, 32], strides = [1, 1]} : vector<16x64xf32> to vector<16x32xf32>
    %117 = arith.truncf %116 : vector<16x32xf32> to vector<16x32xbf16>
    %cst_53 = arith.constant dense<0.000000e+00> : vector<16x16xf32>
    %118 = tpu.matmul %113, %115, %cst_53 {dimension_numbers = #tpu.dot_dimension_numbers<[1], [1], [0], [0], [0, 0, 1, 0], [], []>} : vector<16x32xbf16>, vector<16x32xbf16>, vector<16x16xf32> -> vector<16x16xf32>
    %119 = arith.addf %118, %1 : vector<16x16xf32>
    %cst_54 = arith.constant dense<0xFF800000> : vector<16xf32>
    %120 = vector.multi_reduction <maximumf>, %119, %cst_54 [1] : vector<16x16xf32> to vector<16xf32>
    %121 = vector.shape_cast %120 : vector<16xf32> to vector<16x1xf32>
    %122 = vector.broadcast %121 : vector<16x1xf32> to vector<16x16xf32>
    %123 = arith.subf %119, %122 : vector<16x16xf32>
    %124 = math.exp %123 : vector<16x16xf32>
    %cst_55 = arith.constant dense<0.000000e+00> : vector<16xf32>
    %125 = vector.multi_reduction <add>, %124, %cst_55 [1] : vector<16x16xf32> to vector<16xf32>
    %126 = vector.shape_cast %125 : vector<16xf32> to vector<16x1xf32>
    %127 = tpu.reciprocal %126 {approx = true} : vector<16x1xf32> -> vector<16x1xf32>
    %128 = vector.broadcast %127 : vector<16x1xf32> to vector<16x16xf32>
    %129 = arith.mulf %124, %128 : vector<16x16xf32>
    %130 = arith.truncf %129 : vector<16x16xf32> to vector<16x16xbf16>
    %cst_56 = arith.constant dense<0.000000e+00> : vector<16x32xf32>
    %131 = tpu.matmul %130, %117, %cst_56 {dimension_numbers = #tpu.dot_dimension_numbers<[1], [0], [0], [1], [0, 0, 1, 1], [], []>} : vector<16x16xbf16>, vector<16x32xbf16>, vector<16x32xf32> -> vector<16x32xf32>
    %132 = arith.truncf %131 : vector<16x32xf32> to vector<16x32xbf16>
    %133 = vector.extract_strided_slice %88 {offsets = [32, 0], sizes = [32, 64], strides = [1, 1]} : vector<64x64xbf16> to vector<32x64xbf16>
    %cst_57 = arith.constant dense<0.000000e+00> : vector<16x64xf32>
    %134 = tpu.matmul %132, %133, %cst_57 {dimension_numbers = #tpu.dot_dimension_numbers<[1], [0], [0], [1], [0, 0, 1, 1], [], []>} : vector<16x32xbf16>, vector<32x64xbf16>, vector<16x64xf32> -> vector<16x64xf32>
    %135 = arith.addf %111, %134 : vector<16x64xf32>
    %c0_58 = arith.constant 0 : index
    %c0_59 = arith.constant 0 : index
    %136 = vector.load %arg43[%c0_58, %c0_59] : memref<1x64xf32, #tpu.memory_space<vmem>>, vector<1x64xf32>
    %137 = vector.broadcast %136 : vector<1x64xf32> to vector<16x64xf32>
    %138 = arith.addf %135, %137 : vector<16x64xf32>
    %139 = arith.addf %45, %138 : vector<16x64xf32>
    %c0_60 = arith.constant 0 : index
    %c0_61 = arith.constant 0 : index
    %140 = vector.load %arg53[%c0_60, %c0_61] : memref<1x64xf32, #tpu.memory_space<vmem>>, vector<1x64xf32>
    %c0_62 = arith.constant 0 : index
    %c0_63 = arith.constant 0 : index
    %141 = vector.load %arg52[%c0_62, %c0_63] : memref<1x64xf32, #tpu.memory_space<vmem>>, vector<1x64xf32>
    %cst_64 = arith.constant dense<0.000000e+00> : vector<16xf32>
    %142 = vector.multi_reduction <add>, %139, %cst_64 [1] : vector<16x64xf32> to vector<16xf32>
    %143 = vector.shape_cast %142 : vector<16xf32> to vector<16x1xf32>
    %cst_65 = arith.constant 6.400000e+01 : f32
    %144 = vector.broadcast %cst_65 : f32 to vector<16x1xf32>
    %145 = arith.divf %143, %144 : vector<16x1xf32>
    %146 = vector.broadcast %145 : vector<16x1xf32> to vector<16x64xf32>
    %147 = arith.subf %139, %146 : vector<16x64xf32>
    %148 = arith.mulf %147, %147 : vector<16x64xf32>
    %cst_66 = arith.constant dense<0.000000e+00> : vector<16xf32>
    %149 = vector.multi_reduction <add>, %148, %cst_66 [1] : vector<16x64xf32> to vector<16xf32>
    %150 = vector.shape_cast %149 : vector<16xf32> to vector<16x1xf32>
    %cst_67 = arith.constant 6.400000e+01 : f32
    %151 = vector.broadcast %cst_67 : f32 to vector<16x1xf32>
    %152 = arith.divf %150, %151 : vector<16x1xf32>
    %153 = vector.broadcast %145 : vector<16x1xf32> to vector<16x64xf32>
    %154 = arith.subf %139, %153 : vector<16x64xf32>
    %cst_68 = arith.constant 9.99999974E-6 : f32
    %155 = vector.broadcast %cst_68 : f32 to vector<16x1xf32>
    %156 = arith.addf %152, %155 : vector<16x1xf32>
    %157 = math.rsqrt %156 : vector<16x1xf32>
    %158 = vector.broadcast %157 : vector<16x1xf32> to vector<16x64xf32>
    %159 = arith.mulf %154, %158 : vector<16x64xf32>
    %160 = vector.broadcast %140 : vector<1x64xf32> to vector<16x64xf32>
    %161 = arith.mulf %159, %160 : vector<16x64xf32>
    %162 = vector.broadcast %141 : vector<1x64xf32> to vector<16x64xf32>
    %163 = arith.addf %161, %162 : vector<16x64xf32>
    %c0_69 = arith.constant 0 : index
    %c0_70 = arith.constant 0 : index
    %164 = vector.load %arg47[%c0_69, %c0_70] : memref<64x1024xbf16, #tpu.memory_space<vmem>>, vector<64x1024xbf16>
    %165 = arith.truncf %163 : vector<16x64xf32> to vector<16x64xbf16>
    %cst_71 = arith.constant dense<0.000000e+00> : vector<16x1024xf32>
    %166 = tpu.matmul %165, %164, %cst_71 {dimension_numbers = #tpu.dot_dimension_numbers<[1], [0], [0], [1], [0, 0, 1, 1], [], []>} : vector<16x64xbf16>, vector<64x1024xbf16>, vector<16x1024xf32> -> vector<16x1024xf32>
    %c0_72 = arith.constant 0 : index
    %c0_73 = arith.constant 0 : index
    %167 = vector.load %arg46[%c0_72, %c0_73] : memref<1x1024xf32, #tpu.memory_space<vmem>>, vector<1x1024xf32>
    %168 = vector.broadcast %167 : vector<1x1024xf32> to vector<16x1024xf32>
    %169 = arith.addf %166, %168 : vector<16x1024xf32>
    %cst_74 = arith.constant 0.000000e+00 : f32
    %170 = vector.broadcast %cst_74 : f32 to vector<16x1024xf32>
    %171 = arith.maximumf %169, %170 : vector<16x1024xf32>
    %c0_75 = arith.constant 0 : index
    %c0_76 = arith.constant 0 : index
    %172 = vector.load %arg49[%c0_75, %c0_76] : memref<1024x64xbf16, #tpu.memory_space<vmem>>, vector<1024x64xbf16>
    %173 = arith.truncf %171 : vector<16x1024xf32> to vector<16x1024xbf16>
    %cst_77 = arith.constant dense<0.000000e+00> : vector<16x64xf32>
    %174 = tpu.matmul %173, %172, %cst_77 {dimension_numbers = #tpu.dot_dimension_numbers<[1], [0], [0], [1], [0, 0, 1, 1], [], []>} : vector<16x1024xbf16>, vector<1024x64xbf16>, vector<16x64xf32> -> vector<16x64xf32>
    %c0_78 = arith.constant 0 : index
    %c0_79 = arith.constant 0 : index
    %175 = vector.load %arg48[%c0_78, %c0_79] : memref<1x64xf32, #tpu.memory_space<vmem>>, vector<1x64xf32>
    %176 = vector.broadcast %175 : vector<1x64xf32> to vector<16x64xf32>
    %177 = arith.addf %174, %176 : vector<16x64xf32>
    %178 = arith.addf %139, %177 : vector<16x64xf32>
    %c0_80 = arith.constant 0 : index
    %c0_81 = arith.constant 0 : index
    %179 = vector.load %arg25[%c0_80, %c0_81] : memref<1x64xf32, #tpu.memory_space<vmem>>, vector<1x64xf32>
    %c0_82 = arith.constant 0 : index
    %c0_83 = arith.constant 0 : index
    %180 = vector.load %arg24[%c0_82, %c0_83] : memref<1x64xf32, #tpu.memory_space<vmem>>, vector<1x64xf32>
    %cst_84 = arith.constant dense<0.000000e+00> : vector<16xf32>
    %181 = vector.multi_reduction <add>, %178, %cst_84 [1] : vector<16x64xf32> to vector<16xf32>
    %182 = vector.shape_cast %181 : vector<16xf32> to vector<16x1xf32>
    %cst_85 = arith.constant 6.400000e+01 : f32
    %183 = vector.broadcast %cst_85 : f32 to vector<16x1xf32>
    %184 = arith.divf %182, %183 : vector<16x1xf32>
    %185 = vector.broadcast %184 : vector<16x1xf32> to vector<16x64xf32>
    %186 = arith.subf %178, %185 : vector<16x64xf32>
    %187 = arith.mulf %186, %186 : vector<16x64xf32>
    %cst_86 = arith.constant dense<0.000000e+00> : vector<16xf32>
    %188 = vector.multi_reduction <add>, %187, %cst_86 [1] : vector<16x64xf32> to vector<16xf32>
    %189 = vector.shape_cast %188 : vector<16xf32> to vector<16x1xf32>
    %cst_87 = arith.constant 6.400000e+01 : f32
    %190 = vector.broadcast %cst_87 : f32 to vector<16x1xf32>
    %191 = arith.divf %189, %190 : vector<16x1xf32>
    %192 = vector.broadcast %184 : vector<16x1xf32> to vector<16x64xf32>
    %193 = arith.subf %178, %192 : vector<16x64xf32>
    %cst_88 = arith.constant 9.99999974E-6 : f32
    %194 = vector.broadcast %cst_88 : f32 to vector<16x1xf32>
    %195 = arith.addf %191, %194 : vector<16x1xf32>
    %196 = math.rsqrt %195 : vector<16x1xf32>
    %197 = vector.broadcast %196 : vector<16x1xf32> to vector<16x64xf32>
    %198 = arith.mulf %193, %197 : vector<16x64xf32>
    %199 = vector.broadcast %179 : vector<1x64xf32> to vector<16x64xf32>
    %200 = arith.mulf %198, %199 : vector<16x64xf32>
    %201 = vector.broadcast %180 : vector<1x64xf32> to vector<16x64xf32>
    %202 = arith.addf %200, %201 : vector<16x64xf32>
    %c0_89 = arith.constant 0 : index
    %c0_90 = arith.constant 0 : index
    %203 = vector.load %arg36[%c0_89, %c0_90] : memref<64x64xbf16, #tpu.memory_space<vmem>>, vector<64x64xbf16>
    %204 = arith.truncf %202 : vector<16x64xf32> to vector<16x64xbf16>
    %cst_91 = arith.constant dense<0.000000e+00> : vector<16x64xf32>
    %205 = tpu.matmul %204, %203, %cst_91 {dimension_numbers = #tpu.dot_dimension_numbers<[1], [0], [0], [1], [0, 0, 1, 1], [], []>} : vector<16x64xbf16>, vector<64x64xbf16>, vector<16x64xf32> -> vector<16x64xf32>
    %c0_92 = arith.constant 0 : index
    %c0_93 = arith.constant 0 : index
    %206 = vector.load %arg32[%c0_92, %c0_93] : memref<1x64xf32, #tpu.memory_space<vmem>>, vector<1x64xf32>
    %207 = vector.broadcast %206 : vector<1x64xf32> to vector<16x64xf32>
    %208 = arith.addf %205, %207 : vector<16x64xf32>
    %c0_94 = arith.constant 0 : index
    %c0_95 = arith.constant 0 : index
    %209 = vector.load %arg34[%c0_94, %c0_95] : memref<64x64xbf16, #tpu.memory_space<vmem>>, vector<64x64xbf16>
    %210 = arith.truncf %202 : vector<16x64xf32> to vector<16x64xbf16>
    %cst_96 = arith.constant dense<0.000000e+00> : vector<16x64xf32>
    %211 = tpu.matmul %210, %209, %cst_96 {dimension_numbers = #tpu.dot_dimension_numbers<[1], [0], [0], [1], [0, 0, 1, 1], [], []>} : vector<16x64xbf16>, vector<64x64xbf16>, vector<16x64xf32> -> vector<16x64xf32>
    %c0_97 = arith.constant 0 : index
    %c0_98 = arith.constant 0 : index
    %212 = vector.load %arg30[%c0_97, %c0_98] : memref<1x64xf32, #tpu.memory_space<vmem>>, vector<1x64xf32>
    %213 = vector.broadcast %212 : vector<1x64xf32> to vector<16x64xf32>
    %214 = arith.addf %211, %213 : vector<16x64xf32>
    %c0_99 = arith.constant 0 : index
    %c0_100 = arith.constant 0 : index
    %215 = vector.load %arg37[%c0_99, %c0_100] : memref<64x64xbf16, #tpu.memory_space<vmem>>, vector<64x64xbf16>
    %216 = arith.truncf %202 : vector<16x64xf32> to vector<16x64xbf16>
    %cst_101 = arith.constant dense<0.000000e+00> : vector<16x64xf32>
    %217 = tpu.matmul %216, %215, %cst_101 {dimension_numbers = #tpu.dot_dimension_numbers<[1], [0], [0], [1], [0, 0, 1, 1], [], []>} : vector<16x64xbf16>, vector<64x64xbf16>, vector<16x64xf32> -> vector<16x64xf32>
    %c0_102 = arith.constant 0 : index
    %c0_103 = arith.constant 0 : index
    %218 = vector.load %arg33[%c0_102, %c0_103] : memref<1x64xf32, #tpu.memory_space<vmem>>, vector<1x64xf32>
    %219 = vector.broadcast %218 : vector<1x64xf32> to vector<16x64xf32>
    %220 = arith.addf %217, %219 : vector<16x64xf32>
    %c0_104 = arith.constant 0 : index
    %c0_105 = arith.constant 0 : index
    %221 = vector.load %arg35[%c0_104, %c0_105] : memref<64x64xbf16, #tpu.memory_space<vmem>>, vector<64x64xbf16>
    %222 = vector.extract_strided_slice %208 {offsets = [0, 0], sizes = [16, 32], strides = [1, 1]} : vector<16x64xf32> to vector<16x32xf32>
    %223 = arith.truncf %222 : vector<16x32xf32> to vector<16x32xbf16>
    %224 = vector.extract_strided_slice %214 {offsets = [0, 0], sizes = [16, 32], strides = [1, 1]} : vector<16x64xf32> to vector<16x32xf32>
    %225 = arith.truncf %224 : vector<16x32xf32> to vector<16x32xbf16>
    %226 = vector.extract_strided_slice %220 {offsets = [0, 0], sizes = [16, 32], strides = [1, 1]} : vector<16x64xf32> to vector<16x32xf32>
    %227 = arith.truncf %226 : vector<16x32xf32> to vector<16x32xbf16>
    %cst_106 = arith.constant dense<0.000000e+00> : vector<16x16xf32>
    %228 = tpu.matmul %223, %225, %cst_106 {dimension_numbers = #tpu.dot_dimension_numbers<[1], [1], [0], [0], [0, 0, 1, 0], [], []>} : vector<16x32xbf16>, vector<16x32xbf16>, vector<16x16xf32> -> vector<16x16xf32>
    %229 = arith.addf %228, %2 : vector<16x16xf32>
    %cst_107 = arith.constant dense<0xFF800000> : vector<16xf32>
    %230 = vector.multi_reduction <maximumf>, %229, %cst_107 [1] : vector<16x16xf32> to vector<16xf32>
    %231 = vector.shape_cast %230 : vector<16xf32> to vector<16x1xf32>
    %232 = vector.broadcast %231 : vector<16x1xf32> to vector<16x16xf32>
    %233 = arith.subf %229, %232 : vector<16x16xf32>
    %234 = math.exp %233 : vector<16x16xf32>
    %cst_108 = arith.constant dense<0.000000e+00> : vector<16xf32>
    %235 = vector.multi_reduction <add>, %234, %cst_108 [1] : vector<16x16xf32> to vector<16xf32>
    %236 = vector.shape_cast %235 : vector<16xf32> to vector<16x1xf32>
    %237 = tpu.reciprocal %236 {approx = true} : vector<16x1xf32> -> vector<16x1xf32>
    %238 = vector.broadcast %237 : vector<16x1xf32> to vector<16x16xf32>
    %239 = arith.mulf %234, %238 : vector<16x16xf32>
    %240 = arith.truncf %239 : vector<16x16xf32> to vector<16x16xbf16>
    %cst_109 = arith.constant dense<0.000000e+00> : vector<16x32xf32>
    %241 = tpu.matmul %240, %227, %cst_109 {dimension_numbers = #tpu.dot_dimension_numbers<[1], [0], [0], [1], [0, 0, 1, 1], [], []>} : vector<16x16xbf16>, vector<16x32xbf16>, vector<16x32xf32> -> vector<16x32xf32>
    %242 = arith.truncf %241 : vector<16x32xf32> to vector<16x32xbf16>
    %243 = vector.extract_strided_slice %221 {offsets = [0, 0], sizes = [32, 64], strides = [1, 1]} : vector<64x64xbf16> to vector<32x64xbf16>
    %cst_110 = arith.constant dense<0.000000e+00> : vector<16x64xf32>
    %244 = tpu.matmul %242, %243, %cst_110 {dimension_numbers = #tpu.dot_dimension_numbers<[1], [0], [0], [1], [0, 0, 1, 1], [], []>} : vector<16x32xbf16>, vector<32x64xbf16>, vector<16x64xf32> -> vector<16x64xf32>
    %245 = vector.extract_strided_slice %208 {offsets = [0, 32], sizes = [16, 32], strides = [1, 1]} : vector<16x64xf32> to vector<16x32xf32>
    %246 = arith.truncf %245 : vector<16x32xf32> to vector<16x32xbf16>
    %247 = vector.extract_strided_slice %214 {offsets = [0, 32], sizes = [16, 32], strides = [1, 1]} : vector<16x64xf32> to vector<16x32xf32>
    %248 = arith.truncf %247 : vector<16x32xf32> to vector<16x32xbf16>
    %249 = vector.extract_strided_slice %220 {offsets = [0, 32], sizes = [16, 32], strides = [1, 1]} : vector<16x64xf32> to vector<16x32xf32>
    %250 = arith.truncf %249 : vector<16x32xf32> to vector<16x32xbf16>
    %cst_111 = arith.constant dense<0.000000e+00> : vector<16x16xf32>
    %251 = tpu.matmul %246, %248, %cst_111 {dimension_numbers = #tpu.dot_dimension_numbers<[1], [1], [0], [0], [0, 0, 1, 0], [], []>} : vector<16x32xbf16>, vector<16x32xbf16>, vector<16x16xf32> -> vector<16x16xf32>
    %252 = arith.addf %251, %2 : vector<16x16xf32>
    %cst_112 = arith.constant dense<0xFF800000> : vector<16xf32>
    %253 = vector.multi_reduction <maximumf>, %252, %cst_112 [1] : vector<16x16xf32> to vector<16xf32>
    %254 = vector.shape_cast %253 : vector<16xf32> to vector<16x1xf32>
    %255 = vector.broadcast %254 : vector<16x1xf32> to vector<16x16xf32>
    %256 = arith.subf %252, %255 : vector<16x16xf32>
    %257 = math.exp %256 : vector<16x16xf32>
    %cst_113 = arith.constant dense<0.000000e+00> : vector<16xf32>
    %258 = vector.multi_reduction <add>, %257, %cst_113 [1] : vector<16x16xf32> to vector<16xf32>
    %259 = vector.shape_cast %258 : vector<16xf32> to vector<16x1xf32>
    %260 = tpu.reciprocal %259 {approx = true} : vector<16x1xf32> -> vector<16x1xf32>
    %261 = vector.broadcast %260 : vector<16x1xf32> to vector<16x16xf32>
    %262 = arith.mulf %257, %261 : vector<16x16xf32>
    %263 = arith.truncf %262 : vector<16x16xf32> to vector<16x16xbf16>
    %cst_114 = arith.constant dense<0.000000e+00> : vector<16x32xf32>
    %264 = tpu.matmul %263, %250, %cst_114 {dimension_numbers = #tpu.dot_dimension_numbers<[1], [0], [0], [1], [0, 0, 1, 1], [], []>} : vector<16x16xbf16>, vector<16x32xbf16>, vector<16x32xf32> -> vector<16x32xf32>
    %265 = arith.truncf %264 : vector<16x32xf32> to vector<16x32xbf16>
    %266 = vector.extract_strided_slice %221 {offsets = [32, 0], sizes = [32, 64], strides = [1, 1]} : vector<64x64xbf16> to vector<32x64xbf16>
    %cst_115 = arith.constant dense<0.000000e+00> : vector<16x64xf32>
    %267 = tpu.matmul %265, %266, %cst_115 {dimension_numbers = #tpu.dot_dimension_numbers<[1], [0], [0], [1], [0, 0, 1, 1], [], []>} : vector<16x32xbf16>, vector<32x64xbf16>, vector<16x64xf32> -> vector<16x64xf32>
    %268 = arith.addf %244, %267 : vector<16x64xf32>
    %c0_116 = arith.constant 0 : index
    %c0_117 = arith.constant 0 : index
    %269 = vector.load %arg31[%c0_116, %c0_117] : memref<1x64xf32, #tpu.memory_space<vmem>>, vector<1x64xf32>
    %270 = vector.broadcast %269 : vector<1x64xf32> to vector<16x64xf32>
    %271 = arith.addf %268, %270 : vector<16x64xf32>
    %272 = arith.addf %178, %271 : vector<16x64xf32>
    %c0_118 = arith.constant 0 : index
    %c0_119 = arith.constant 0 : index
    %273 = vector.load %arg27[%c0_118, %c0_119] : memref<1x64xf32, #tpu.memory_space<vmem>>, vector<1x64xf32>
    %c0_120 = arith.constant 0 : index
    %c0_121 = arith.constant 0 : index
    %274 = vector.load %arg26[%c0_120, %c0_121] : memref<1x64xf32, #tpu.memory_space<vmem>>, vector<1x64xf32>
    %cst_122 = arith.constant dense<0.000000e+00> : vector<16xf32>
    %275 = vector.multi_reduction <add>, %272, %cst_122 [1] : vector<16x64xf32> to vector<16xf32>
    %276 = vector.shape_cast %275 : vector<16xf32> to vector<16x1xf32>
    %cst_123 = arith.constant 6.400000e+01 : f32
    %277 = vector.broadcast %cst_123 : f32 to vector<16x1xf32>
    %278 = arith.divf %276, %277 : vector<16x1xf32>
    %279 = vector.broadcast %278 : vector<16x1xf32> to vector<16x64xf32>
    %280 = arith.subf %272, %279 : vector<16x64xf32>
    %281 = arith.mulf %280, %280 : vector<16x64xf32>
    %cst_124 = arith.constant dense<0.000000e+00> : vector<16xf32>
    %282 = vector.multi_reduction <add>, %281, %cst_124 [1] : vector<16x64xf32> to vector<16xf32>
    %283 = vector.shape_cast %282 : vector<16xf32> to vector<16x1xf32>
    %cst_125 = arith.constant 6.400000e+01 : f32
    %284 = vector.broadcast %cst_125 : f32 to vector<16x1xf32>
    %285 = arith.divf %283, %284 : vector<16x1xf32>
    %286 = vector.broadcast %278 : vector<16x1xf32> to vector<16x64xf32>
    %287 = arith.subf %272, %286 : vector<16x64xf32>
    %cst_126 = arith.constant 9.99999974E-6 : f32
    %288 = vector.broadcast %cst_126 : f32 to vector<16x1xf32>
    %289 = arith.addf %285, %288 : vector<16x1xf32>
    %290 = math.rsqrt %289 : vector<16x1xf32>
    %291 = vector.broadcast %290 : vector<16x1xf32> to vector<16x64xf32>
    %292 = arith.mulf %287, %291 : vector<16x64xf32>
    %293 = vector.broadcast %273 : vector<1x64xf32> to vector<16x64xf32>
    %294 = arith.mulf %292, %293 : vector<16x64xf32>
    %295 = vector.broadcast %274 : vector<1x64xf32> to vector<16x64xf32>
    %296 = arith.addf %294, %295 : vector<16x64xf32>
    %c0_127 = arith.constant 0 : index
    %c0_128 = arith.constant 0 : index
    %297 = vector.load %arg18[%c0_127, %c0_128] : memref<64x64xbf16, #tpu.memory_space<vmem>>, vector<64x64xbf16>
    %298 = arith.truncf %296 : vector<16x64xf32> to vector<16x64xbf16>
    %cst_129 = arith.constant dense<0.000000e+00> : vector<16x64xf32>
    %299 = tpu.matmul %298, %297, %cst_129 {dimension_numbers = #tpu.dot_dimension_numbers<[1], [0], [0], [1], [0, 0, 1, 1], [], []>} : vector<16x64xbf16>, vector<64x64xbf16>, vector<16x64xf32> -> vector<16x64xf32>
    %c0_130 = arith.constant 0 : index
    %c0_131 = arith.constant 0 : index
    %300 = vector.load %arg14[%c0_130, %c0_131] : memref<1x64xf32, #tpu.memory_space<vmem>>, vector<1x64xf32>
    %301 = vector.broadcast %300 : vector<1x64xf32> to vector<16x64xf32>
    %302 = arith.addf %299, %301 : vector<16x64xf32>
    %c0_132 = arith.constant 0 : index
    %c0_133 = arith.constant 0 : index
    %303 = vector.load %arg16[%c0_132, %c0_133] : memref<64x64xbf16, #tpu.memory_space<vmem>>, vector<64x64xbf16>
    %304 = arith.truncf %178 : vector<16x64xf32> to vector<16x64xbf16>
    %cst_134 = arith.constant dense<0.000000e+00> : vector<16x64xf32>
    %305 = tpu.matmul %304, %303, %cst_134 {dimension_numbers = #tpu.dot_dimension_numbers<[1], [0], [0], [1], [0, 0, 1, 1], [], []>} : vector<16x64xbf16>, vector<64x64xbf16>, vector<16x64xf32> -> vector<16x64xf32>
    %c0_135 = arith.constant 0 : index
    %c0_136 = arith.constant 0 : index
    %306 = vector.load %arg12[%c0_135, %c0_136] : memref<1x64xf32, #tpu.memory_space<vmem>>, vector<1x64xf32>
    %307 = vector.broadcast %306 : vector<1x64xf32> to vector<16x64xf32>
    %308 = arith.addf %305, %307 : vector<16x64xf32>
    %c0_137 = arith.constant 0 : index
    %c0_138 = arith.constant 0 : index
    %309 = vector.load %arg19[%c0_137, %c0_138] : memref<64x64xbf16, #tpu.memory_space<vmem>>, vector<64x64xbf16>
    %310 = arith.truncf %178 : vector<16x64xf32> to vector<16x64xbf16>
    %cst_139 = arith.constant dense<0.000000e+00> : vector<16x64xf32>
    %311 = tpu.matmul %310, %309, %cst_139 {dimension_numbers = #tpu.dot_dimension_numbers<[1], [0], [0], [1], [0, 0, 1, 1], [], []>} : vector<16x64xbf16>, vector<64x64xbf16>, vector<16x64xf32> -> vector<16x64xf32>
    %c0_140 = arith.constant 0 : index
    %c0_141 = arith.constant 0 : index
    %312 = vector.load %arg15[%c0_140, %c0_141] : memref<1x64xf32, #tpu.memory_space<vmem>>, vector<1x64xf32>
    %313 = vector.broadcast %312 : vector<1x64xf32> to vector<16x64xf32>
    %314 = arith.addf %311, %313 : vector<16x64xf32>
    %c0_142 = arith.constant 0 : index
    %c0_143 = arith.constant 0 : index
    %315 = vector.load %arg17[%c0_142, %c0_143] : memref<64x64xbf16, #tpu.memory_space<vmem>>, vector<64x64xbf16>
    %316 = vector.extract_strided_slice %302 {offsets = [0, 0], sizes = [16, 32], strides = [1, 1]} : vector<16x64xf32> to vector<16x32xf32>
    %317 = arith.truncf %316 : vector<16x32xf32> to vector<16x32xbf16>
    %318 = vector.extract_strided_slice %308 {offsets = [0, 0], sizes = [16, 32], strides = [1, 1]} : vector<16x64xf32> to vector<16x32xf32>
    %319 = arith.truncf %318 : vector<16x32xf32> to vector<16x32xbf16>
    %320 = vector.extract_strided_slice %314 {offsets = [0, 0], sizes = [16, 32], strides = [1, 1]} : vector<16x64xf32> to vector<16x32xf32>
    %321 = arith.truncf %320 : vector<16x32xf32> to vector<16x32xbf16>
    %cst_144 = arith.constant dense<0.000000e+00> : vector<16x16xf32>
    %322 = tpu.matmul %317, %319, %cst_144 {dimension_numbers = #tpu.dot_dimension_numbers<[1], [1], [0], [0], [0, 0, 1, 0], [], []>} : vector<16x32xbf16>, vector<16x32xbf16>, vector<16x16xf32> -> vector<16x16xf32>
    %323 = arith.addf %322, %1 : vector<16x16xf32>
    %cst_145 = arith.constant dense<0xFF800000> : vector<16xf32>
    %324 = vector.multi_reduction <maximumf>, %323, %cst_145 [1] : vector<16x16xf32> to vector<16xf32>
    %325 = vector.shape_cast %324 : vector<16xf32> to vector<16x1xf32>
    %326 = vector.broadcast %325 : vector<16x1xf32> to vector<16x16xf32>
    %327 = arith.subf %323, %326 : vector<16x16xf32>
    %328 = math.exp %327 : vector<16x16xf32>
    %cst_146 = arith.constant dense<0.000000e+00> : vector<16xf32>
    %329 = vector.multi_reduction <add>, %328, %cst_146 [1] : vector<16x16xf32> to vector<16xf32>
    %330 = vector.shape_cast %329 : vector<16xf32> to vector<16x1xf32>
    %331 = tpu.reciprocal %330 {approx = true} : vector<16x1xf32> -> vector<16x1xf32>
    %332 = vector.broadcast %331 : vector<16x1xf32> to vector<16x16xf32>
    %333 = arith.mulf %328, %332 : vector<16x16xf32>
    %334 = arith.truncf %333 : vector<16x16xf32> to vector<16x16xbf16>
    %cst_147 = arith.constant dense<0.000000e+00> : vector<16x32xf32>
    %335 = tpu.matmul %334, %321, %cst_147 {dimension_numbers = #tpu.dot_dimension_numbers<[1], [0], [0], [1], [0, 0, 1, 1], [], []>} : vector<16x16xbf16>, vector<16x32xbf16>, vector<16x32xf32> -> vector<16x32xf32>
    %336 = arith.truncf %335 : vector<16x32xf32> to vector<16x32xbf16>
    %337 = vector.extract_strided_slice %315 {offsets = [0, 0], sizes = [32, 64], strides = [1, 1]} : vector<64x64xbf16> to vector<32x64xbf16>
    %cst_148 = arith.constant dense<0.000000e+00> : vector<16x64xf32>
    %338 = tpu.matmul %336, %337, %cst_148 {dimension_numbers = #tpu.dot_dimension_numbers<[1], [0], [0], [1], [0, 0, 1, 1], [], []>} : vector<16x32xbf16>, vector<32x64xbf16>, vector<16x64xf32> -> vector<16x64xf32>
    %339 = vector.extract_strided_slice %302 {offsets = [0, 32], sizes = [16, 32], strides = [1, 1]} : vector<16x64xf32> to vector<16x32xf32>
    %340 = arith.truncf %339 : vector<16x32xf32> to vector<16x32xbf16>
    %341 = vector.extract_strided_slice %308 {offsets = [0, 32], sizes = [16, 32], strides = [1, 1]} : vector<16x64xf32> to vector<16x32xf32>
    %342 = arith.truncf %341 : vector<16x32xf32> to vector<16x32xbf16>
    %343 = vector.extract_strided_slice %314 {offsets = [0, 32], sizes = [16, 32], strides = [1, 1]} : vector<16x64xf32> to vector<16x32xf32>
    %344 = arith.truncf %343 : vector<16x32xf32> to vector<16x32xbf16>
    %cst_149 = arith.constant dense<0.000000e+00> : vector<16x16xf32>
    %345 = tpu.matmul %340, %342, %cst_149 {dimension_numbers = #tpu.dot_dimension_numbers<[1], [1], [0], [0], [0, 0, 1, 0], [], []>} : vector<16x32xbf16>, vector<16x32xbf16>, vector<16x16xf32> -> vector<16x16xf32>
    %346 = arith.addf %345, %1 : vector<16x16xf32>
    %cst_150 = arith.constant dense<0xFF800000> : vector<16xf32>
    %347 = vector.multi_reduction <maximumf>, %346, %cst_150 [1] : vector<16x16xf32> to vector<16xf32>
    %348 = vector.shape_cast %347 : vector<16xf32> to vector<16x1xf32>
    %349 = vector.broadcast %348 : vector<16x1xf32> to vector<16x16xf32>
    %350 = arith.subf %346, %349 : vector<16x16xf32>
    %351 = math.exp %350 : vector<16x16xf32>
    %cst_151 = arith.constant dense<0.000000e+00> : vector<16xf32>
    %352 = vector.multi_reduction <add>, %351, %cst_151 [1] : vector<16x16xf32> to vector<16xf32>
    %353 = vector.shape_cast %352 : vector<16xf32> to vector<16x1xf32>
    %354 = tpu.reciprocal %353 {approx = true} : vector<16x1xf32> -> vector<16x1xf32>
    %355 = vector.broadcast %354 : vector<16x1xf32> to vector<16x16xf32>
    %356 = arith.mulf %351, %355 : vector<16x16xf32>
    %357 = arith.truncf %356 : vector<16x16xf32> to vector<16x16xbf16>
    %cst_152 = arith.constant dense<0.000000e+00> : vector<16x32xf32>
    %358 = tpu.matmul %357, %344, %cst_152 {dimension_numbers = #tpu.dot_dimension_numbers<[1], [0], [0], [1], [0, 0, 1, 1], [], []>} : vector<16x16xbf16>, vector<16x32xbf16>, vector<16x32xf32> -> vector<16x32xf32>
    %359 = arith.truncf %358 : vector<16x32xf32> to vector<16x32xbf16>
    %360 = vector.extract_strided_slice %315 {offsets = [32, 0], sizes = [32, 64], strides = [1, 1]} : vector<64x64xbf16> to vector<32x64xbf16>
    %cst_153 = arith.constant dense<0.000000e+00> : vector<16x64xf32>
    %361 = tpu.matmul %359, %360, %cst_153 {dimension_numbers = #tpu.dot_dimension_numbers<[1], [0], [0], [1], [0, 0, 1, 1], [], []>} : vector<16x32xbf16>, vector<32x64xbf16>, vector<16x64xf32> -> vector<16x64xf32>
    %362 = arith.addf %338, %361 : vector<16x64xf32>
    %c0_154 = arith.constant 0 : index
    %c0_155 = arith.constant 0 : index
    %363 = vector.load %arg13[%c0_154, %c0_155] : memref<1x64xf32, #tpu.memory_space<vmem>>, vector<1x64xf32>
    %364 = vector.broadcast %363 : vector<1x64xf32> to vector<16x64xf32>
    %365 = arith.addf %362, %364 : vector<16x64xf32>
    %366 = arith.addf %272, %365 : vector<16x64xf32>
    %c0_156 = arith.constant 0 : index
    %c0_157 = arith.constant 0 : index
    %367 = vector.load %arg29[%c0_156, %c0_157] : memref<1x64xf32, #tpu.memory_space<vmem>>, vector<1x64xf32>
    %c0_158 = arith.constant 0 : index
    %c0_159 = arith.constant 0 : index
    %368 = vector.load %arg28[%c0_158, %c0_159] : memref<1x64xf32, #tpu.memory_space<vmem>>, vector<1x64xf32>
    %cst_160 = arith.constant dense<0.000000e+00> : vector<16xf32>
    %369 = vector.multi_reduction <add>, %366, %cst_160 [1] : vector<16x64xf32> to vector<16xf32>
    %370 = vector.shape_cast %369 : vector<16xf32> to vector<16x1xf32>
    %cst_161 = arith.constant 6.400000e+01 : f32
    %371 = vector.broadcast %cst_161 : f32 to vector<16x1xf32>
    %372 = arith.divf %370, %371 : vector<16x1xf32>
    %373 = vector.broadcast %372 : vector<16x1xf32> to vector<16x64xf32>
    %374 = arith.subf %366, %373 : vector<16x64xf32>
    %375 = arith.mulf %374, %374 : vector<16x64xf32>
    %cst_162 = arith.constant dense<0.000000e+00> : vector<16xf32>
    %376 = vector.multi_reduction <add>, %375, %cst_162 [1] : vector<16x64xf32> to vector<16xf32>
    %377 = vector.shape_cast %376 : vector<16xf32> to vector<16x1xf32>
    %cst_163 = arith.constant 6.400000e+01 : f32
    %378 = vector.broadcast %cst_163 : f32 to vector<16x1xf32>
    %379 = arith.divf %377, %378 : vector<16x1xf32>
    %380 = vector.broadcast %372 : vector<16x1xf32> to vector<16x64xf32>
    %381 = arith.subf %366, %380 : vector<16x64xf32>
    %cst_164 = arith.constant 9.99999974E-6 : f32
    %382 = vector.broadcast %cst_164 : f32 to vector<16x1xf32>
    %383 = arith.addf %379, %382 : vector<16x1xf32>
    %384 = math.rsqrt %383 : vector<16x1xf32>
    %385 = vector.broadcast %384 : vector<16x1xf32> to vector<16x64xf32>
    %386 = arith.mulf %381, %385 : vector<16x64xf32>
    %387 = vector.broadcast %367 : vector<1x64xf32> to vector<16x64xf32>
    %388 = arith.mulf %386, %387 : vector<16x64xf32>
    %389 = vector.broadcast %368 : vector<1x64xf32> to vector<16x64xf32>
    %390 = arith.addf %388, %389 : vector<16x64xf32>
    %c0_165 = arith.constant 0 : index
    %c0_166 = arith.constant 0 : index
    %391 = vector.load %arg21[%c0_165, %c0_166] : memref<64x1024xbf16, #tpu.memory_space<vmem>>, vector<64x1024xbf16>
    %392 = arith.truncf %390 : vector<16x64xf32> to vector<16x64xbf16>
    %cst_167 = arith.constant dense<0.000000e+00> : vector<16x1024xf32>
    %393 = tpu.matmul %392, %391, %cst_167 {dimension_numbers = #tpu.dot_dimension_numbers<[1], [0], [0], [1], [0, 0, 1, 1], [], []>} : vector<16x64xbf16>, vector<64x1024xbf16>, vector<16x1024xf32> -> vector<16x1024xf32>
    %c0_168 = arith.constant 0 : index
    %c0_169 = arith.constant 0 : index
    %394 = vector.load %arg20[%c0_168, %c0_169] : memref<1x1024xf32, #tpu.memory_space<vmem>>, vector<1x1024xf32>
    %395 = vector.broadcast %394 : vector<1x1024xf32> to vector<16x1024xf32>
    %396 = arith.addf %393, %395 : vector<16x1024xf32>
    %cst_170 = arith.constant 0.000000e+00 : f32
    %397 = vector.broadcast %cst_170 : f32 to vector<16x1024xf32>
    %398 = arith.maximumf %396, %397 : vector<16x1024xf32>
    %c0_171 = arith.constant 0 : index
    %c0_172 = arith.constant 0 : index
    %399 = vector.load %arg23[%c0_171, %c0_172] : memref<1024x64xbf16, #tpu.memory_space<vmem>>, vector<1024x64xbf16>
    %400 = arith.truncf %398 : vector<16x1024xf32> to vector<16x1024xbf16>
    %cst_173 = arith.constant dense<0.000000e+00> : vector<16x64xf32>
    %401 = tpu.matmul %400, %399, %cst_173 {dimension_numbers = #tpu.dot_dimension_numbers<[1], [0], [0], [1], [0, 0, 1, 1], [], []>} : vector<16x1024xbf16>, vector<1024x64xbf16>, vector<16x64xf32> -> vector<16x64xf32>
    %c0_174 = arith.constant 0 : index
    %c0_175 = arith.constant 0 : index
    %402 = vector.load %arg22[%c0_174, %c0_175] : memref<1x64xf32, #tpu.memory_space<vmem>>, vector<1x64xf32>
    %403 = vector.broadcast %402 : vector<1x64xf32> to vector<16x64xf32>
    %404 = arith.addf %401, %403 : vector<16x64xf32>
    %405 = arith.addf %366, %404 : vector<16x64xf32>
    %c0_176 = arith.constant 0 : index
    %c0_177 = arith.constant 0 : index
    %406 = vector.load %arg9[%c0_176, %c0_177] : memref<64x128xbf16, #tpu.memory_space<vmem>>, vector<64x128xbf16>
    %407 = arith.truncf %405 : vector<16x64xf32> to vector<16x64xbf16>
    %cst_178 = arith.constant dense<0.000000e+00> : vector<16x128xf32>
    %408 = tpu.matmul %407, %406, %cst_178 {dimension_numbers = #tpu.dot_dimension_numbers<[1], [0], [0], [1], [0, 0, 1, 1], [], []>} : vector<16x64xbf16>, vector<64x128xbf16>, vector<16x128xf32> -> vector<16x128xf32>
    %c0_179 = arith.constant 0 : index
    %c0_180 = arith.constant 0 : index
    %409 = vector.load %arg4[%c0_179, %c0_180] : memref<1x128xf32, #tpu.memory_space<vmem>>, vector<1x128xf32>
    %410 = vector.broadcast %409 : vector<1x128xf32> to vector<16x128xf32>
    %411 = arith.addf %408, %410 : vector<16x128xf32>
    %cst_181 = arith.constant 5.000000e-01 : f32
    %412 = vector.broadcast %cst_181 : f32 to vector<16x128xf32>
    %413 = arith.mulf %412, %411 : vector<16x128xf32>
    %cst_182 = arith.constant 4.471500e-02 : f32
    %414 = vector.broadcast %cst_182 : f32 to vector<16x128xf32>
    %415 = arith.mulf %414, %411 : vector<16x128xf32>
    %416 = arith.mulf %415, %411 : vector<16x128xf32>
    %417 = arith.mulf %416, %411 : vector<16x128xf32>
    %418 = arith.addf %411, %417 : vector<16x128xf32>
    %cst_183 = arith.constant 0.797884583 : f32
    %419 = vector.broadcast %cst_183 : f32 to vector<16x128xf32>
    %420 = arith.mulf %419, %418 : vector<16x128xf32>
    %421 = math.tanh %420 : vector<16x128xf32>
    %cst_184 = arith.constant 1.000000e+00 : f32
    %422 = vector.broadcast %cst_184 : f32 to vector<16x128xf32>
    %423 = arith.addf %422, %421 : vector<16x128xf32>
    %424 = arith.mulf %413, %423 : vector<16x128xf32>
    %c0_185 = arith.constant 0 : index
    %c0_186 = arith.constant 0 : index
    %425 = vector.load %arg10[%c0_185, %c0_186] : memref<128x128xbf16, #tpu.memory_space<vmem>>, vector<128x128xbf16>
    %426 = arith.truncf %424 : vector<16x128xf32> to vector<16x128xbf16>
    %cst_187 = arith.constant dense<0.000000e+00> : vector<16x128xf32>
    %427 = tpu.matmul %426, %425, %cst_187 {dimension_numbers = #tpu.dot_dimension_numbers<[1], [0], [0], [1], [0, 0, 1, 1], [], []>} : vector<16x128xbf16>, vector<128x128xbf16>, vector<16x128xf32> -> vector<16x128xf32>
    %c0_188 = arith.constant 0 : index
    %c0_189 = arith.constant 0 : index
    %428 = vector.load %arg5[%c0_188, %c0_189] : memref<1x128xf32, #tpu.memory_space<vmem>>, vector<1x128xf32>
    %429 = vector.broadcast %428 : vector<1x128xf32> to vector<16x128xf32>
    %430 = arith.addf %427, %429 : vector<16x128xf32>
    %cst_190 = arith.constant 5.000000e-01 : f32
    %431 = vector.broadcast %cst_190 : f32 to vector<16x128xf32>
    %432 = arith.mulf %431, %430 : vector<16x128xf32>
    %cst_191 = arith.constant 4.471500e-02 : f32
    %433 = vector.broadcast %cst_191 : f32 to vector<16x128xf32>
    %434 = arith.mulf %433, %430 : vector<16x128xf32>
    %435 = arith.mulf %434, %430 : vector<16x128xf32>
    %436 = arith.mulf %435, %430 : vector<16x128xf32>
    %437 = arith.addf %430, %436 : vector<16x128xf32>
    %cst_192 = arith.constant 0.797884583 : f32
    %438 = vector.broadcast %cst_192 : f32 to vector<16x128xf32>
    %439 = arith.mulf %438, %437 : vector<16x128xf32>
    %440 = math.tanh %439 : vector<16x128xf32>
    %cst_193 = arith.constant 1.000000e+00 : f32
    %441 = vector.broadcast %cst_193 : f32 to vector<16x128xf32>
    %442 = arith.addf %441, %440 : vector<16x128xf32>
    %443 = arith.mulf %432, %442 : vector<16x128xf32>
    %c0_194 = arith.constant 0 : index
    %c0_195 = arith.constant 0 : index
    %444 = vector.load %arg8[%c0_194, %c0_195] : memref<1x128xf32, #tpu.memory_space<vmem>>, vector<1x128xf32>
    %c0_196 = arith.constant 0 : index
    %c0_197 = arith.constant 0 : index
    %445 = vector.load %arg7[%c0_196, %c0_197] : memref<1x128xf32, #tpu.memory_space<vmem>>, vector<1x128xf32>
    %cst_198 = arith.constant dense<0.000000e+00> : vector<16xf32>
    %446 = vector.multi_reduction <add>, %443, %cst_198 [1] : vector<16x128xf32> to vector<16xf32>
    %447 = vector.shape_cast %446 : vector<16xf32> to vector<16x1xf32>
    %cst_199 = arith.constant 1.280000e+02 : f32
    %448 = vector.broadcast %cst_199 : f32 to vector<16x1xf32>
    %449 = arith.divf %447, %448 : vector<16x1xf32>
    %450 = vector.broadcast %449 : vector<16x1xf32> to vector<16x128xf32>
    %451 = arith.subf %443, %450 : vector<16x128xf32>
    %452 = arith.mulf %451, %451 : vector<16x128xf32>
    %cst_200 = arith.constant dense<0.000000e+00> : vector<16xf32>
    %453 = vector.multi_reduction <add>, %452, %cst_200 [1] : vector<16x128xf32> to vector<16xf32>
    %454 = vector.shape_cast %453 : vector<16xf32> to vector<16x1xf32>
    %cst_201 = arith.constant 1.280000e+02 : f32
    %455 = vector.broadcast %cst_201 : f32 to vector<16x1xf32>
    %456 = arith.divf %454, %455 : vector<16x1xf32>
    %457 = vector.broadcast %449 : vector<16x1xf32> to vector<16x128xf32>
    %458 = arith.subf %443, %457 : vector<16x128xf32>
    %cst_202 = arith.constant 9.99999974E-6 : f32
    %459 = vector.broadcast %cst_202 : f32 to vector<16x1xf32>
    %460 = arith.addf %456, %459 : vector<16x1xf32>
    %461 = math.rsqrt %460 : vector<16x1xf32>
    %462 = vector.broadcast %461 : vector<16x1xf32> to vector<16x128xf32>
    %463 = arith.mulf %458, %462 : vector<16x128xf32>
    %464 = vector.broadcast %444 : vector<1x128xf32> to vector<16x128xf32>
    %465 = arith.mulf %463, %464 : vector<16x128xf32>
    %466 = vector.broadcast %445 : vector<1x128xf32> to vector<16x128xf32>
    %467 = arith.addf %465, %466 : vector<16x128xf32>
    %c0_203 = arith.constant 0 : index
    %c0_204 = arith.constant 0 : index
    %468 = vector.load %arg11[%c0_203, %c0_204] : memref<128x128xbf16, #tpu.memory_space<vmem>>, vector<128x128xbf16>
    %469 = arith.truncf %467 : vector<16x128xf32> to vector<16x128xbf16>
    %cst_205 = arith.constant dense<0.000000e+00> : vector<16x128xf32>
    %470 = tpu.matmul %469, %468, %cst_205 {dimension_numbers = #tpu.dot_dimension_numbers<[1], [0], [0], [1], [0, 0, 1, 1], [], []>} : vector<16x128xbf16>, vector<128x128xbf16>, vector<16x128xf32> -> vector<16x128xf32>
    %c0_206 = arith.constant 0 : index
    %c0_207 = arith.constant 0 : index
    %471 = vector.load %arg6[%c0_206, %c0_207] : memref<1x128xf32, #tpu.memory_space<vmem>>, vector<1x128xf32>
    %472 = vector.broadcast %471 : vector<1x128xf32> to vector<16x128xf32>
    %473 = arith.addf %470, %472 : vector<16x128xf32>
    %c0_208 = arith.constant 0 : index
    %c0_209 = arith.constant 0 : index
    %474 = vector.load %arg68[%c0_208, %c0_209] : memref<16x128xf32, #tpu.memory_space<vmem>>, vector<16x128xf32>
    tpu.vector_store %arg68[%c0_208, %c0_209], %473 {strides = array<i32>} : memref<16x128xf32, #tpu.memory_space<vmem>>, vector<16x128xf32>,
    %475 = arith.truncf %178 : vector<16x64xf32> to vector<16x64xbf16>
    %c0_210 = arith.constant 0 : index
    %c0_211 = arith.constant 0 : index
    %476 = vector.load %arg67[%c0_210, %c0_211] : memref<1x64xbf16, #tpu.memory_space<vmem>>, vector<1x64xbf16>
    %cst_212 = arith.constant dense<0.000000e+00> : vector<1x16xf32>
    %477 = tpu.matmul %476, %475, %cst_212 {dimension_numbers = #tpu.dot_dimension_numbers<[1], [1], [0], [0], [0, 0, 1, 0], [], []>} : vector<1x64xbf16>, vector<16x64xbf16>, vector<1x16xf32> -> vector<1x16xf32>
    %c0_213 = arith.constant 0 : index
    %c0_214 = arith.constant 0 : index
    %478 = vector.load %arg66[%c0_213, %c0_214] : memref<1x1xf32, #tpu.memory_space<vmem>>, vector<1x1xf32>
    %479 = vector.broadcast %478 : vector<1x1xf32> to vector<1x16xf32>
    %480 = arith.addf %477, %479 : vector<1x16xf32>
    %c0_215 = arith.constant 0 : index
    %c0_216 = arith.constant 0 : index
    %481 = vector.load %arg3[%c0_215, %c0_216] : memref<2x16xf32, #tpu.memory_space<vmem>>, vector<2x16xf32>
    %482 = vector.broadcast %480 : vector<1x16xf32> to vector<2x16xf32>
    %483 = arith.addf %482, %481 : vector<2x16xf32>
    %cst_217 = arith.constant dense<0xFF800000> : vector<2xf32>
    %484 = vector.multi_reduction <maximumf>, %483, %cst_217 [1] : vector<2x16xf32> to vector<2xf32>
    %485 = vector.shape_cast %484 : vector<2xf32> to vector<2x1xf32>
    %486 = vector.broadcast %485 : vector<2x1xf32> to vector<2x16xf32>
    %487 = arith.subf %483, %486 : vector<2x16xf32>
    %488 = math.exp %487 : vector<2x16xf32>
    %cst_218 = arith.constant dense<0.000000e+00> : vector<2xf32>
    %489 = vector.multi_reduction <add>, %488, %cst_218 [1] : vector<2x16xf32> to vector<2xf32>
    %490 = vector.shape_cast %489 : vector<2xf32> to vector<2x1xf32>
    %491 = tpu.reciprocal %490 {approx = true} : vector<2x1xf32> -> vector<2x1xf32>
    %492 = vector.broadcast %491 : vector<2x1xf32> to vector<2x16xf32>
    %493 = arith.mulf %488, %492 : vector<2x16xf32>
    %494 = arith.truncf %493 : vector<2x16xf32> to vector<2x16xbf16>
    %cst_219 = arith.constant dense<0.000000e+00> : vector<2x64xf32>
    %495 = tpu.matmul %494, %475, %cst_219 {dimension_numbers = #tpu.dot_dimension_numbers<[1], [0], [0], [1], [0, 0, 1, 1], [], []>} : vector<2x16xbf16>, vector<16x64xbf16>, vector<2x64xf32> -> vector<2x64xf32>
    %c0_220 = arith.constant 0 : index
    %c0_221 = arith.constant 0 : index
    %496 = vector.load %arg63[%c0_220, %c0_221] : memref<64x128xbf16, #tpu.memory_space<vmem>>, vector<64x128xbf16>
    %497 = arith.truncf %495 : vector<2x64xf32> to vector<2x64xbf16>
    %cst_222 = arith.constant dense<0.000000e+00> : vector<2x128xf32>
    %498 = tpu.matmul %497, %496, %cst_222 {dimension_numbers = #tpu.dot_dimension_numbers<[1], [0], [0], [1], [0, 0, 1, 1], [], []>} : vector<2x64xbf16>, vector<64x128xbf16>, vector<2x128xf32> -> vector<2x128xf32>
    %c0_223 = arith.constant 0 : index
    %c0_224 = arith.constant 0 : index
    %499 = vector.load %arg58[%c0_223, %c0_224] : memref<1x128xf32, #tpu.memory_space<vmem>>, vector<1x128xf32>
    %500 = vector.broadcast %499 : vector<1x128xf32> to vector<2x128xf32>
    %501 = arith.addf %498, %500 : vector<2x128xf32>
    %cst_225 = arith.constant 5.000000e-01 : f32
    %502 = vector.broadcast %cst_225 : f32 to vector<2x128xf32>
    %503 = arith.mulf %502, %501 : vector<2x128xf32>
    %cst_226 = arith.constant 4.471500e-02 : f32
    %504 = vector.broadcast %cst_226 : f32 to vector<2x128xf32>
    %505 = arith.mulf %504, %501 : vector<2x128xf32>
    %506 = arith.mulf %505, %501 : vector<2x128xf32>
    %507 = arith.mulf %506, %501 : vector<2x128xf32>
    %508 = arith.addf %501, %507 : vector<2x128xf32>
    %cst_227 = arith.constant 0.797884583 : f32
    %509 = vector.broadcast %cst_227 : f32 to vector<2x128xf32>
    %510 = arith.mulf %509, %508 : vector<2x128xf32>
    %511 = math.tanh %510 : vector<2x128xf32>
    %cst_228 = arith.constant 1.000000e+00 : f32
    %512 = vector.broadcast %cst_228 : f32 to vector<2x128xf32>
    %513 = arith.addf %512, %511 : vector<2x128xf32>
    %514 = arith.mulf %503, %513 : vector<2x128xf32>
    %c0_229 = arith.constant 0 : index
    %c0_230 = arith.constant 0 : index
    %515 = vector.load %arg64[%c0_229, %c0_230] : memref<128x128xbf16, #tpu.memory_space<vmem>>, vector<128x128xbf16>
    %516 = arith.truncf %514 : vector<2x128xf32> to vector<2x128xbf16>
    %cst_231 = arith.constant dense<0.000000e+00> : vector<2x128xf32>
    %517 = tpu.matmul %516, %515, %cst_231 {dimension_numbers = #tpu.dot_dimension_numbers<[1], [0], [0], [1], [0, 0, 1, 1], [], []>} : vector<2x128xbf16>, vector<128x128xbf16>, vector<2x128xf32> -> vector<2x128xf32>
    %c0_232 = arith.constant 0 : index
    %c0_233 = arith.constant 0 : index
    %518 = vector.load %arg59[%c0_232, %c0_233] : memref<1x128xf32, #tpu.memory_space<vmem>>, vector<1x128xf32>
    %519 = vector.broadcast %518 : vector<1x128xf32> to vector<2x128xf32>
    %520 = arith.addf %517, %519 : vector<2x128xf32>
    %cst_234 = arith.constant 5.000000e-01 : f32
    %521 = vector.broadcast %cst_234 : f32 to vector<2x128xf32>
    %522 = arith.mulf %521, %520 : vector<2x128xf32>
    %cst_235 = arith.constant 4.471500e-02 : f32
    %523 = vector.broadcast %cst_235 : f32 to vector<2x128xf32>
    %524 = arith.mulf %523, %520 : vector<2x128xf32>
    %525 = arith.mulf %524, %520 : vector<2x128xf32>
    %526 = arith.mulf %525, %520 : vector<2x128xf32>
    %527 = arith.addf %520, %526 : vector<2x128xf32>
    %cst_236 = arith.constant 0.797884583 : f32
    %528 = vector.broadcast %cst_236 : f32 to vector<2x128xf32>
    %529 = arith.mulf %528, %527 : vector<2x128xf32>
    %530 = math.tanh %529 : vector<2x128xf32>
    %cst_237 = arith.constant 1.000000e+00 : f32
    %531 = vector.broadcast %cst_237 : f32 to vector<2x128xf32>
    %532 = arith.addf %531, %530 : vector<2x128xf32>
    %533 = arith.mulf %522, %532 : vector<2x128xf32>
    %c0_238 = arith.constant 0 : index
    %c0_239 = arith.constant 0 : index
    %534 = vector.load %arg62[%c0_238, %c0_239] : memref<1x128xf32, #tpu.memory_space<vmem>>, vector<1x128xf32>
    %c0_240 = arith.constant 0 : index
    %c0_241 = arith.constant 0 : index
    %535 = vector.load %arg61[%c0_240, %c0_241] : memref<1x128xf32, #tpu.memory_space<vmem>>, vector<1x128xf32>
    %cst_242 = arith.constant dense<0.000000e+00> : vector<2xf32>
    %536 = vector.multi_reduction <add>, %533, %cst_242 [1] : vector<2x128xf32> to vector<2xf32>
    %537 = vector.shape_cast %536 : vector<2xf32> to vector<2x1xf32>
    %cst_243 = arith.constant 1.280000e+02 : f32
    %538 = vector.broadcast %cst_243 : f32 to vector<2x1xf32>
    %539 = arith.divf %537, %538 : vector<2x1xf32>
    %540 = vector.broadcast %539 : vector<2x1xf32> to vector<2x128xf32>
    %541 = arith.subf %533, %540 : vector<2x128xf32>
    %542 = arith.mulf %541, %541 : vector<2x128xf32>
    %cst_244 = arith.constant dense<0.000000e+00> : vector<2xf32>
    %543 = vector.multi_reduction <add>, %542, %cst_244 [1] : vector<2x128xf32> to vector<2xf32>
    %544 = vector.shape_cast %543 : vector<2xf32> to vector<2x1xf32>
    %cst_245 = arith.constant 1.280000e+02 : f32
    %545 = vector.broadcast %cst_245 : f32 to vector<2x1xf32>
    %546 = arith.divf %544, %545 : vector<2x1xf32>
    %547 = vector.broadcast %539 : vector<2x1xf32> to vector<2x128xf32>
    %548 = arith.subf %533, %547 : vector<2x128xf32>
    %cst_246 = arith.constant 9.99999974E-6 : f32
    %549 = vector.broadcast %cst_246 : f32 to vector<2x1xf32>
    %550 = arith.addf %546, %549 : vector<2x1xf32>
    %551 = math.rsqrt %550 : vector<2x1xf32>
    %552 = vector.broadcast %551 : vector<2x1xf32> to vector<2x128xf32>
    %553 = arith.mulf %548, %552 : vector<2x128xf32>
    %554 = vector.broadcast %534 : vector<1x128xf32> to vector<2x128xf32>
    %555 = arith.mulf %553, %554 : vector<2x128xf32>
    %556 = vector.broadcast %535 : vector<1x128xf32> to vector<2x128xf32>
    %557 = arith.addf %555, %556 : vector<2x128xf32>
    %c0_247 = arith.constant 0 : index
    %c0_248 = arith.constant 0 : index
    %558 = vector.load %arg65[%c0_247, %c0_248] : memref<128x128xbf16, #tpu.memory_space<vmem>>, vector<128x128xbf16>
    %559 = arith.truncf %557 : vector<2x128xf32> to vector<2x128xbf16>
    %cst_249 = arith.constant dense<0.000000e+00> : vector<2x128xf32>
    %560 = tpu.matmul %559, %558, %cst_249 {dimension_numbers = #tpu.dot_dimension_numbers<[1], [0], [0], [1], [0, 0, 1, 1], [], []>} : vector<2x128xbf16>, vector<128x128xbf16>, vector<2x128xf32> -> vector<2x128xf32>
    %c0_250 = arith.constant 0 : index
    %c0_251 = arith.constant 0 : index
    %561 = vector.load %arg60[%c0_250, %c0_251] : memref<1x128xf32, #tpu.memory_space<vmem>>, vector<1x128xf32>
    %562 = vector.broadcast %561 : vector<1x128xf32> to vector<2x128xf32>
    %563 = arith.addf %560, %562 : vector<2x128xf32>
    %c0_252 = arith.constant 0 : index
    %c0_253 = arith.constant 0 : index
    %564 = vector.load %arg69[%c0_252, %c0_253] : memref<2x128xf32, #tpu.memory_space<vmem>>, vector<2x128xf32>
    tpu.vector_store %arg69[%c0_252, %c0_253], %563 {strides = array<i32>} : memref<2x128xf32, #tpu.memory_space<vmem>>, vector<2x128xf32>,
    return
  }
}

</mosaic_0001>

<bundles_post_ra>
// kernel: actor_critic_forward.1
= control target key start
LH: loop header
LB: loop body
LE: loop exit
PB: predicated region body
PF: predicated region fallthrough
CT: control target
= control target key end

     0   :  { %s7057_s6 = smov 1   ;;  %s7058_s10 = smov 2   ;;  %s8222_s0 = inlined_call_operand.smem [shape: u32[70], index: -1, kind: input, shape index: {}] }
   0x1   :  { %s7162_s5 = sld [smem:[%s8222_s0]]   ;;  %s7059_s14 = smov 3  }
   0x2   :  { %s7167_s9 = sld [smem:[%s8222_s0 + %s7057_s6]]   ;;  %s7060_s18 = smov 4  }
   0x3   :  { %s7172_s13 = sld [smem:[%s8222_s0 + %s7058_s10]]   ;;  %s7061_s22 = smov 5  }
   0x4   :  { %s7177_s17 = sld [smem:[%s8222_s0 + %s7059_s14]]   ;;  %s7062_s26 = smov 6  }
   0x5   :  { %s7182_s21 = sld [smem:[%s8222_s0 + %s7060_s18]]   ;;  %s7063_s30 = smov 7  }
   0x6   :  { %s7187_s25 = sld [smem:[%s8222_s0 + %s7061_s22]]   ;;  %s7064_s4 = smov 8  }
   0x7   :  { %8256 = sst [smem:[#allocation50_spill]] %s7162_s5  ;;  %s7065_s10 = smov 9  }
   0x8   :  { %8257 = sst [smem:[#allocation51_spill]] %s7167_s9  ;;  %s7066_s15 = smov 10  }
   0x9   :  { %8258 = sst [smem:[#allocation52_spill]] %s7172_s13  ;;  %s7067_s20 = smov 11  }
   0xa   :  { %8259 = sst [smem:[#allocation53_spill]] %s7177_s17  ;;  %s7069_s1 = smov 13  }
   0xb   :  { %8260 = sst [smem:[#allocation54_spill]] %s7182_s21  ;;  %s7070_s7 = smov 14  }
   0xc   :  { %8261 = sst [smem:[#allocation55_spill]] %s7187_s25  ;;  %s7072_s22 = smov 16  }
   0xd   :  { %s7192_s29 = sld [smem:[%s8222_s0 + %s7062_s26]]   ;;  %s7068_s26 = smov 12  }
   0xe   :  { %s7197_s3 = sld [smem:[%s8222_s0 + %s7063_s30]]   ;;  %s7073_s28 = smov 17  }
   0xf   :  { %s7202_s8 = sld [smem:[%s8222_s0 + %s7064_s4]]   ;;  %s7123_s16 = smov 67  }
  0x10   :  { %s7207_s14 = sld [smem:[%s8222_s0 + %s7065_s10]]   ;;  %s7124_s23 = smov 68  }
  0x11   :  { %s7212_s19 = sld [smem:[%s8222_s0 + %s7066_s15]]   ;;  %s7071_s15 = smov 15  }
  0x12   :  { %s7217_s24 = sld [smem:[%s8222_s0 + %s7067_s20]]  }
  0x13   :  { %8262 = sst [smem:[#allocation56_spill]] %s7192_s29 }
  0x14   :  { %8263 = sst [smem:[#allocation57_spill]] %s7197_s3 }
  0x15   :  { %8264 = sst [smem:[#allocation58_spill]] %s7202_s8 }
  0x16   :  { %8265 = sst [smem:[#allocation59_spill]] %s7207_s14 }
  0x17   :  { %8266 = sst [smem:[#allocation60_spill]] %s7212_s19 }
  0x18   :  { %8267 = sst [smem:[#allocation61_spill]] %s7217_s24 }
  0x19   :  { %s7222_s30 = sld [smem:[%s8222_s0 + %s7068_s26]]  }
  0x1a   :  { %s7227_s6 = sld [smem:[%s8222_s0 + %s7069_s1]]   ;;  %s7125_s1 = smov 69  }
  0x1b   :  { %s7232_s12 = sld [smem:[%s8222_s0 + %s7070_s7]]   ;;  %s7074_s7 = smov 18  }
  0x1c   :  { %s7237_s20 = sld [smem:[%s8222_s0 + %s7071_s15]]   ;;  %s7075_s15 = smov 19  }
  0x1d   :  { %s7242_s27 = sld [smem:[%s8222_s0 + %s7072_s22]]   ;;  %s7076_s22 = smov 20  }
  0x1e   :  { %s7247_s4 = sld [smem:[%s8222_s0 + %s7073_s28]]   ;;  %s7077_s28 = smov 21  }
  0x1f   :  { %8268 = sst [smem:[#allocation62_spill]] %s7222_s30 }
  0x20   :  { %8269 = sst [smem:[#allocation63_spill]] %s7227_s6 }
  0x21   :  { %8270 = sst [smem:[#allocation64_spill]] %s7232_s12 }
  0x22   :  { %8271 = sst [smem:[#allocation65_spill]] %s7237_s20 }
  0x23   :  { %8272 = sst [smem:[#allocation66_spill]] %s7242_s27 }
  0x24   :  { %8273 = sst [smem:[#allocation67_spill]] %s7247_s4 }
  0x25   :  { %s7252_s29 = sld [smem:[%s8222_s0 + %s7074_s7]]   ;;  %s7078_s7 = smov 22  }
  0x26   :  { %s7257_s3 = sld [smem:[%s8222_s0 + %s7075_s15]]   ;;  %s7079_s15 = smov 23  }
  0x27   :  { %s7262_s8 = sld [smem:[%s8222_s0 + %s7076_s22]]   ;;  %s7080_s22 = smov 24  }
  0x28   :  { %s7267_s24 = sld [smem:[%s8222_s0 + %s7077_s28]]   ;;  %s7081_s28 = smov 25  }
  0x29   :  { %s7272_s25 = sld [smem:[%s8222_s0 + %s7078_s7]]   ;;  %s7082_s7 = smov 26  }
  0x2a   :  { %s7277_s21 = sld [smem:[%s8222_s0 + %s7079_s15]]   ;;  %s7083_s15 = smov 27  }
  0x2b   :  { %8274 = sst [smem:[#allocation68_spill]] %s7252_s29 }
  0x2c   :  { %8275 = sst [smem:[#allocation69_spill]] %s7257_s3 }
  0x2d   :  { %8276 = sst [smem:[#allocation70_spill]] %s7262_s8 }
  0x2e   :  { %8277 = sst [smem:[#allocation71_spill]] %s7267_s24 }
  0x2f   :  { %8278 = sst [smem:[#allocation72_spill]] %s7272_s25 }
  0x30   :  { %8279 = sst [smem:[#allocation73_spill]] %s7277_s21 }
  0x31   :  { %s7282_s19 = sld [smem:[%s8222_s0 + %s7080_s22]]   ;;  %s7084_s22 = smov 28  }
  0x32   :  { %s7287_s17 = sld [smem:[%s8222_s0 + %s7081_s28]]   ;;  %s7085_s28 = smov 29  }
  0x33   :  { %s7292_s25 = sld [smem:[%s8222_s0 + %s7082_s7]]   ;;  %s7086_s7 = smov 30  }
  0x34   :  { %s7297_s14 = sld [smem:[%s8222_s0 + %s7083_s15]]   ;;  %s7087_s15 = smov 31  }
  0x35   :  { %s7302_s8 = sld [smem:[%s8222_s0 + %s7084_s22]]   ;;  %s7088_s22 = smov 32  }
  0x36   :  { %s7307_s21 = sld [smem:[%s8222_s0 + %s7085_s28]]   ;;  %s7089_s28 = smov 33  }
  0x37   :  { %8280 = sst [smem:[#allocation74_spill]] %s7282_s19 }
  0x38   :  { %8281 = sst [smem:[#allocation75_spill]] %s7287_s17 }
  0x39   :  { %8282 = sst [smem:[#allocation76_spill]] %s7292_s25 }
  0x3a   :  { %8283 = sst [smem:[#allocation77_spill]] %s7297_s14 }
  0x3b   :  { %8284 = sst [smem:[#allocation78_spill]] %s7302_s8 }
  0x3c   :  { %s7312_s24 = sld [smem:[%s8222_s0 + %s7086_s7]]   ;;  %s7090_s7 = smov 34  }
  0x3d   :  { %s7317_s6 = sld [smem:[%s8222_s0 + %s7087_s15]]   ;;  %s7091_s15 = smov 35  }
  0x3e   :  { %s7322_s8 = sld [smem:[%s8222_s0 + %s7088_s22]]   ;;  %s7092_s22 = smov 36  }
  0x3f   :  { %s7327_s4 = sld [smem:[%s8222_s0 + %s7089_s28]]   ;;  %s7093_s28 = smov 37  }
  0x40   :  { %s7332_s12 = sld [smem:[%s8222_s0 + %s7090_s7]]   ;;  %s7094_s7 = smov 38  }
  0x41   :  { %s7337_s25 = sld [smem:[%s8222_s0 + %s7091_s15]]   ;;  %s7095_s15 = smov 39  }
  0x42   :  { %s7342_s14 = sld [smem:[%s8222_s0 + %s7092_s22]]   ;;  %s7096_s22 = smov 40  }
  0x43   :  { %s7347_s20 = sld [smem:[%s8222_s0 + %s7093_s28]]   ;;  %s7097_s28 = smov 41  }
  0x44   :  { %s7352_s29 = sld [smem:[%s8222_s0 + %s7094_s7]]   ;;  %s7098_s7 = smov 42  }
  0x45   :  { %s7357_s30 = sld [smem:[%s8222_s0 + %s7095_s15]]   ;;  %s7099_s15 = smov 43  }
  0x46   :  { %8285 = sst [smem:[#allocation79_spill]] %s7332_s12 }
  0x47   :  { %8286 = sst [smem:[#allocation80_spill]] %s7337_s25 }
  0x48   :  { %8287 = sst [smem:[#allocation81_spill]] %s7342_s14 }
  0x49   :  { %8288 = sst [smem:[#allocation82_spill]] %s7347_s20 }
  0x4a   :  { %s7362_s3 = sld [smem:[%s8222_s0 + %s7096_s22]]   ;;  %s7100_s22 = smov 44  }
  0x4b   :  { %8289 = sst [smem:[#allocation83_spill]] %s7357_s30 }
  0x4c   :  { %s7367_s25 = sld [smem:[%s8222_s0 + %s7097_s28]]   ;;  %s7101_s28 = smov 45  }
  0x4d   :  { %s7372_s27 = sld [smem:[%s8222_s0 + %s7098_s7]]   ;;  %s7102_s7 = smov 46  }
  0x4e   :  { %s7377_s13 = sld [smem:[%s8222_s0 + %s7099_s15]]   ;;  %s7103_s15 = smov 47  }
  0x4f   :  { %s7382_s19 = sld [smem:[%s8222_s0 + %s7100_s22]]   ;;  %s7104_s22 = smov 48  }
  0x50   :  { %s7387_s17 = sld [smem:[%s8222_s0 + %s7101_s28]]   ;;  %s7105_s28 = smov 49  }
  0x51   :  { %s7392_s20 = sld [smem:[%s8222_s0 + %s7102_s7]]   ;;  %s7106_s7 = smov 50  }
  0x52   :  { %8290 = sst [smem:[#allocation84_spill]] %s7367_s25 }
  0x53   :  { %8291 = sst [smem:[#allocation85_spill]] %s7372_s27 }
  0x54   :  { %s7397_s12 = sld [smem:[%s8222_s0 + %s7103_s15]]   ;;  %s7107_s15 = smov 51  }
  0x55   :  { %8292 = sst [smem:[#allocation86_spill]] %s7382_s19 }
  0x56   :  { %s7402_s14 = sld [smem:[%s8222_s0 + %s7104_s22]]   ;;  %s7108_s22 = smov 52  }
  0x57   :  { %8293 = sst [smem:[#allocation87_spill]] %s7392_s20 }
  0x58   :  { %s7407_s9 = sld [smem:[%s8222_s0 + %s7105_s28]]   ;;  %s7109_s28 = smov 53  }
  0x59   :  { %s7412_s20 = sld [smem:[%s8222_s0 + %s7106_s7]]   ;;  %s7110_s7 = smov 54  }
  0x5a   :  { %8294 = sst [smem:[#allocation88_spill]] %s7397_s12 }
  0x5b   :  { %s7417_s12 = sld [smem:[%s8222_s0 + %s7107_s15]]   ;;  %s7111_s15 = smov 55  }
  0x5c   :  { %8295 = sst [smem:[#allocation89_spill]] %s7402_s14 }
  0x5d   :  { %s7422_s25 = sld [smem:[%s8222_s0 + %s7108_s22]]   ;;  %s7112_s22 = smov 56  }
  0x5e   :  { %8296 = sst [smem:[#allocation90_spill]] %s7407_s9 }
  0x5f   :  { %s7427_s9 = sld [smem:[%s8222_s0 + %s7109_s28]]   ;;  %s7113_s28 = smov 57  }
  0x60   :  { %s7432_s5 = sld [smem:[%s8222_s0 + %s7110_s7]]   ;;  %s7114_s7 = smov 58  }
  0x61   :  { %8297 = sst [smem:[#allocation91_spill]] %s7417_s12 }
  0x62   :  { %s7437_s12 = sld [smem:[%s8222_s0 + %s7111_s15]]   ;;  %s7115_s15 = smov 59  }
  0x63   :  { %s7442_s14 = sld [smem:[%s8222_s0 + %s7112_s22]]   ;;  %s7116_s22 = smov 60  }
  0x65   :  { %8298 = sst [smem:[#allocation92_spill]] %s7427_s9 }
  0x66   :  { %8299 = sst [smem:[#allocation93_spill]] %s7432_s5 }
  0x67   :  { %s7447_s9 = sld [smem:[%s8222_s0 + %s7113_s28]]   ;;  %s7117_s28 = smov 61  }
  0x68   :  { %8300 = sst [smem:[#allocation94_spill]] %s7437_s12 }
  0x69   :  { %8301 = sst [smem:[#allocation95_spill]] %s7442_s14 }
  0x6a   :  { %s7452_s5 = sld [smem:[%s8222_s0 + %s7114_s7]]   ;;  %s7118_s7 = smov 62  }
  0x6b   :  { %s7457_s12 = sld [smem:[%s8222_s0 + %s7115_s15]]   ;;  %s7119_s15 = smov 63  }
  0x6c   :  { %s7462_s14 = sld [smem:[%s8222_s0 + %s7116_s22]]   ;;  %s7120_s22 = smov 64  }
  0x6d   :  { %8302 = sst [smem:[#allocation96_spill]] %s7447_s9 }
  0x6e   :  { %s7467_s9 = sld [smem:[%s8222_s0 + %s7117_s28]]   ;;  %s7121_s28 = smov 65  }
  0x6f   :  { %s7472_s19 = sld [smem:[%s8222_s0 + %s7118_s7]]   ;;  %s7122_s7 = smov 66  }
  0x70   :  { %s7482_s27 = sld [smem:[%s8222_s0 + %s7120_s22]]  }
  0x71   :  { %8303 = sst [smem:[#allocation97_spill]] %s7457_s12 }
  0x72   :  { %s7477_s12 = sld [smem:[%s8222_s0 + %s7119_s15]]  }
  0x73   :  { %s4782_s30 = sld [smem:[%s8222_s0 + %s7122_s7]]  }
  0x74   :  { %8304 = sst [smem:[#allocation98_spill]] %s7467_s9 }
  0x75   :  { %s7487_s9 = sld [smem:[%s8222_s0 + %s7121_s28]]  }
  0x76   :  { %8306 = sst [smem:[#allocation100_spill]] %s7482_s27 }
  0x77   :  { %s7500_s27 = sld [smem:[%s8222_s0 + %s7124_s23]]  }
  0x78   :  { %8305 = sst [smem:[#allocation99_spill]] %s7477_s12 }
  0x79   :  { %s7495_s12 = sld [smem:[%s8222_s0 + %s7123_s16]]   ;;  %v145_v0 = vstv %s4782_s30 }
  0x7a   :  { %146 = vst [vmem:[#allocation2] sm:$0x1] %v145_v0 }
  0x7b   :  { %8307 = sst [smem:[#allocation101_spill]] %s7487_s9 }
  0x7c   :  { %s7505_s9 = sld [smem:[%s8222_s0 + %s7125_s1]]  }
  0x7d   :  { %147 = vsyncpa [#allocation4], 0 }
  0x7e   :  { %148 = vsyncpa [#allocation6], 0 }
  0x7f   :  { %149 = vsyncpa [#allocation9], 0 }
  0x80   :  { %150 = vsyncpa [#allocation12], 0 }
  0x81   :  { %151 = vsyncpa [#allocation15], 0 }
  0x82   :  { %152 = vsyncpa [#allocation18], 0 }
  0x83   :  { %153 = vsyncpa [#allocation21], 0 }
  0x84   :  { %154 = vsyncpa [#allocation24], 0 }
  0x85   :  { %155 = vsyncpa [#allocation27], 0 }
  0x86   :  { %156 = vsyncpa [#allocation30], 0 }
  0x87   :  { %157 = vsyncpa [#allocation33], 0  ;;  %s233_s7 = sshll.u32 %s7312_s24, 4  ;;  %s234_s7 = int_to_ptr.hbm [resolvable:$true] %s233_s7 }
  0x88   :  { %158 = vsyncpa [#allocation36], 0  ;;  %s7126_s0 = smov [#allocation5]   ;;  %s255_s10 = sshll.u32 %s7322_s8, 4  ;;  %s256_s10 = int_to_ptr.hbm [resolvable:$true] %s255_s10 }
  0x89   :  { %s235_s30 = sshll.u32 %s7126_s0, 4  ;;  %s6481_s11 = sshra.s32 %s234_s7, 4  ;;  %s236_s30 = int_to_ptr.vmem [resolvable:$true] %s235_s30  ;;  %s6482_s11 = int_to_ptr.hbm [resolvable:$true] %s6481_s11 }
  0x8a   :  { %s6483_s16 = scalar_lea.hbm %s6482_s11, 1  ;;  %s6485_s15 = scalar_lea.hbm %s7312_s24, 1 }
  0x8b   :  { %p6484_p0 = scmp.ne.s32.totalorder %s6482_s11, %s6483_s16  ;;  %p6486_p1 = scmp.lt.s32.totalorder %s6482_s11, %s7312_s24 }
  0x8c   :  { %p6487_p2 = scmp.lt.s32.totalorder %s6485_s15, %s6483_s16 }
  0x8e   :  { %p6488_p3 = por %p6487_p2, %p6486_p1 }
  0x90   :  { %p6489_p4 = pnand %p6488_p3, %p6484_p0 }
  0x92   :  { %6492 = shalt.err (!%p6489_p4)
}
  0x93   :  { %238 = dma.hbm_to_vmem [thread:$0]  %s234_s7, 16, %s236_s30, [#allocation6]  }
  0x94   :  { %s7127_s18 = smov [#allocation8]   ;;  %s285_s22 = sshll.u32 %s7352_s29, 4  ;;  %s286_s22 = int_to_ptr.hbm [resolvable:$true] %s285_s22 }
  0x95   :  { %s257_s23 = sshll.u32 %s7127_s18, 4  ;;  %s6505_s26 = sshra.s32 %s256_s10, 4  ;;  %s258_s23 = int_to_ptr.vmem [resolvable:$true] %s257_s23  ;;  %s6506_s26 = int_to_ptr.hbm [resolvable:$true] %s6505_s26 }
  0x96   :  { %s6507_s1 = scalar_lea.hbm %s6506_s26, 1  ;;  %s6509_s28 = scalar_lea.hbm %s7322_s8, 1 }
  0x97   :  { %p6508_p5 = scmp.ne.s32.totalorder %s6506_s26, %s6507_s1  ;;  %p6510_p6 = scmp.lt.s32.totalorder %s6506_s26, %s7322_s8 }
  0x98   :  { %p6511_p7 = scmp.lt.s32.totalorder %s6509_s28, %s6507_s1 }
  0x9a   :  { %p6512_p8 = por %p6511_p7, %p6510_p6 }
  0x9c   :  { %p6513_p9 = pnand %p6512_p8, %p6508_p5 }
  0x9e   :  { %6516 = shalt.err (!%p6513_p9)
}
  0x9f   :  { %260 = dma.hbm_to_vmem [thread:$0]  %s256_s10, 16, %s258_s23, [#allocation9]  }
  0xa0   :  { %s307_s24 = sshll.u32 %s7362_s3, 4  ;;  %s7128_s2 = smov [#allocation11]   ;;  %s308_s24 = int_to_ptr.hbm [resolvable:$true] %s307_s24 }
  0xa1   :  { %s287_s7 = sshll.u32 %s7128_s2, 4  ;;  %s6529_s0 = sshra.s32 %s286_s22, 4  ;;  %s288_s7 = int_to_ptr.vmem [resolvable:$true] %s287_s7  ;;  %s6530_s0 = int_to_ptr.hbm [resolvable:$true] %s6529_s0 }
  0xa2   :  { %s6531_s30 = scalar_lea.hbm %s6530_s0, 1  ;;  %s6533_s11 = scalar_lea.hbm %s7352_s29, 1 }
  0xa3   :  { %p6532_p10 = scmp.ne.s32.totalorder %s6530_s0, %s6531_s30  ;;  %p6534_p11 = scmp.lt.s32.totalorder %s6530_s0, %s7352_s29 }
  0xa4   :  { %p6535_p12 = scmp.lt.s32.totalorder %s6533_s11, %s6531_s30 }
  0xa6   :  { %p6536_p13 = por %p6535_p12, %p6534_p11 }
  0xa8   :  { %p6537_p0 = pnand %p6536_p13, %p6532_p10 }
  0xaa   :  { %6540 = shalt.err (!%p6537_p0)
}
  0xab   :  { %290 = dma.hbm_to_vmem [thread:$0]  %s286_s22, 16, %s288_s7, [#allocation12]  }
  0xac   :  { %s7129_s8 = smov [#allocation14]   ;;  %s331_s16 = sshll.u32 %s7377_s13, 4  ;;  %s332_s16 = int_to_ptr.hbm [resolvable:$true] %s331_s16 }
  0xad   :  { %s309_s10 = sshll.u32 %s7129_s8, 4  ;;  %s6553_s15 = sshra.s32 %s308_s24, 4  ;;  %s310_s10 = int_to_ptr.vmem [resolvable:$true] %s309_s10  ;;  %s6554_s15 = int_to_ptr.hbm [resolvable:$true] %s6553_s15 }
  0xae   :  { %s6555_s18 = scalar_lea.hbm %s6554_s15, 1  ;;  %s6557_s23 = scalar_lea.hbm %s7362_s3, 1 }
  0xaf   :  { %p6556_p1 = scmp.ne.s32.totalorder %s6554_s15, %s6555_s18  ;;  %p6558_p2 = scmp.lt.s32.totalorder %s6554_s15, %s7362_s3 }
  0xb0   :  { %p6559_p3 = scmp.lt.s32.totalorder %s6557_s23, %s6555_s18 }
  0xb2   :  { %p6560_p4 = por %p6559_p3, %p6558_p2 }
  0xb4   :  { %p6561_p5 = pnand %p6560_p4, %p6556_p1 }
  0xb6   :  { %6564 = shalt.err (!%p6561_p5)
}
  0xb7   :  { %312 = dma.hbm_to_vmem [thread:$0]  %s308_s24, 16, %s310_s10, [#allocation15]  }
  0xb8   :  { %s353_s29 = sshll.u32 %s7387_s17, 4  ;;  %s7130_s22 = smov [#allocation17]   ;;  %s354_s29 = int_to_ptr.hbm [resolvable:$true] %s353_s29 }
  0xb9   :  { %s333_s26 = sshll.u32 %s7130_s22, 4  ;;  %s6577_s1 = sshra.s32 %s332_s16, 4  ;;  %s334_s26 = int_to_ptr.vmem [resolvable:$true] %s333_s26  ;;  %s6578_s1 = int_to_ptr.hbm [resolvable:$true] %s6577_s1 }
  0xba   :  { %s6579_s28 = scalar_lea.hbm %s6578_s1, 1  ;;  %s6581_s2 = scalar_lea.hbm %s7377_s13, 1 }
  0xbb   :  { %p6580_p6 = scmp.ne.s32.totalorder %s6578_s1, %s6579_s28  ;;  %p6582_p7 = scmp.lt.s32.totalorder %s6578_s1, %s7377_s13 }
  0xbc   :  { %p6583_p8 = scmp.lt.s32.totalorder %s6581_s2, %s6579_s28 }
  0xbe   :  { %p6584_p9 = por %p6583_p8, %p6582_p7 }
  0xc0   :  { %p6585_p10 = pnand %p6584_p9, %p6580_p6 }
  0xc2   :  { %6588 = shalt.err (!%p6585_p10)
}
  0xc3   :  { %336 = dma.hbm_to_vmem [thread:$0]  %s332_s16, 16, %s334_s26, [#allocation18]  }
  0xc4   :  { %s7131_s3 = smov [#allocation20]   ;;  %s381_s7 = sshll.u32 %s7412_s20, 4  ;;  %s382_s7 = int_to_ptr.hbm [resolvable:$true] %s381_s7 }
  0xc5   :  { %s355_s24 = sshll.u32 %s7131_s3, 4  ;;  %s6601_s0 = sshra.s32 %s354_s29, 4  ;;  %s356_s24 = int_to_ptr.vmem [resolvable:$true] %s355_s24  ;;  %s6602_s0 = int_to_ptr.hbm [resolvable:$true] %s6601_s0 }
  0xc6   :  { %s6603_s30 = scalar_lea.hbm %s6602_s0, 1  ;;  %s6605_s11 = scalar_lea.hbm %s7387_s17, 1 }
  0xc7   :  { %p6604_p11 = scmp.ne.s32.totalorder %s6602_s0, %s6603_s30  ;;  %p6606_p12 = scmp.lt.s32.totalorder %s6602_s0, %s7387_s17 }
  0xc8   :  { %p6607_p13 = scmp.lt.s32.totalorder %s6605_s11, %s6603_s30 }
  0xca   :  { %p6608_p0 = por %p6607_p13, %p6606_p12 }
  0xcc   :  { %p6609_p1 = pnand %p6608_p0, %p6604_p11 }
  0xce   :  { %6612 = shalt.err (!%p6609_p1)
}
  0xcf   :  { %358 = dma.hbm_to_vmem [thread:$0]  %s354_s29, 16, %s356_s24, [#allocation21]  }
  0xd0   :  { %s403_s13 = sshll.u32 %s7422_s25, 4  ;;  %s7132_s8 = smov [#allocation23]   ;;  %s404_s13 = int_to_ptr.hbm [resolvable:$true] %s403_s13 }
  0xd1   :  { %s383_s10 = sshll.u32 %s7132_s8, 4  ;;  %s6625_s16 = sshra.s32 %s382_s7, 4  ;;  %s384_s10 = int_to_ptr.vmem [resolvable:$true] %s383_s10  ;;  %s6626_s16 = int_to_ptr.hbm [resolvable:$true] %s6625_s16 }
  0xd2   :  { %s6627_s15 = scalar_lea.hbm %s6626_s16, 1  ;;  %s6629_s18 = scalar_lea.hbm %s7412_s20, 1 }
  0xd3   :  { %p6628_p2 = scmp.ne.s32.totalorder %s6626_s16, %s6627_s15  ;;  %p6630_p3 = scmp.lt.s32.totalorder %s6626_s16, %s7412_s20 }
  0xd4   :  { %p6631_p4 = scmp.lt.s32.totalorder %s6629_s18, %s6627_s15 }
  0xd6   :  { %p6632_p5 = por %p6631_p4, %p6630_p3 }
  0xd8   :  { %p6633_p6 = pnand %p6632_p5, %p6628_p2 }
  0xda   :  { %6636 = shalt.err (!%p6633_p6)
}
  0xdb   :  { %386 = dma.hbm_to_vmem [thread:$0]  %s382_s7, 16, %s384_s10, [#allocation24]  }
  0xdc   :  { %s7133_s17 = smov [#allocation26]   ;;  %s433_s29 = sshll.u32 %s7452_s5, 4  ;;  %s434_s29 = int_to_ptr.hbm [resolvable:$true] %s433_s29 }
  0xdd   :  { %s405_s23 = sshll.u32 %s7133_s17, 4  ;;  %s6649_s22 = sshra.s32 %s404_s13, 4  ;;  %s406_s23 = int_to_ptr.vmem [resolvable:$true] %s405_s23  ;;  %s6650_s22 = int_to_ptr.hbm [resolvable:$true] %s6649_s22 }
  0xde   :  { %s6651_s26 = scalar_lea.hbm %s6650_s22, 1  ;;  %s6653_s1 = scalar_lea.hbm %s7422_s25, 1 }
  0xdf   :  { %p6652_p7 = scmp.ne.s32.totalorder %s6650_s22, %s6651_s26  ;;  %p6654_p8 = scmp.lt.s32.totalorder %s6650_s22, %s7422_s25 }
  0xe0   :  { %p6655_p9 = scmp.lt.s32.totalorder %s6653_s1, %s6651_s26 }
  0xe2   :  { %p6656_p10 = por %p6655_p9, %p6654_p8 }
  0xe4   :  { %p6657_p11 = pnand %p6656_p10, %p6652_p7 }
  0xe6   :  { %6660 = shalt.err (!%p6657_p11)
}
  0xe7   :  { %408 = dma.hbm_to_vmem [thread:$0]  %s404_s13, 16, %s406_s23, [#allocation27]  }
  0xe8   :  { %s455_s20 = sshll.u32 %s7462_s14, 4  ;;  %s7134_s28 = smov [#allocation29]   ;;  %s456_s20 = int_to_ptr.hbm [resolvable:$true] %s455_s20 }
  0xe9   :  { %s435_s2 = sshll.u32 %s7134_s28, 4  ;;  %s6673_s3 = sshra.s32 %s434_s29, 4  ;;  %s436_s2 = int_to_ptr.vmem [resolvable:$true] %s435_s2  ;;  %s6674_s3 = int_to_ptr.hbm [resolvable:$true] %s6673_s3 }
  0xea   :  { %s6675_s24 = scalar_lea.hbm %s6674_s3, 1  ;;  %s6677_s7 = scalar_lea.hbm %s7452_s5, 1 }
  0xeb   :  { %p6676_p12 = scmp.ne.s32.totalorder %s6674_s3, %s6675_s24  ;;  %p6678_p13 = scmp.lt.s32.totalorder %s6674_s3, %s7452_s5 }
  0xec   :  { %p6679_p0 = scmp.lt.s32.totalorder %s6677_s7, %s6675_s24 }
  0xee   :  { %p6680_p1 = por %p6679_p0, %p6678_p13 }
  0xf0   :  { %p6681_p2 = pnand %p6680_p1, %p6676_p12 }
  0xf2   :  { %6684 = shalt.err (!%p6681_p2)
}
  0xf3   :  { %438 = dma.hbm_to_vmem [thread:$0]  %s434_s29, 16, %s436_s2, [#allocation30]  }
  0xf4   :  { %s7135_s25 = smov [#allocation32]   ;;  %s477_s30 = sshll.u32 %s7472_s19, 4  ;;  %s478_s30 = int_to_ptr.hbm [resolvable:$true] %s477_s30 }
  0xf5   :  { %s457_s0 = sshll.u32 %s7135_s25, 4  ;;  %s6697_s11 = sshra.s32 %s456_s20, 4  ;;  %s458_s0 = int_to_ptr.vmem [resolvable:$true] %s457_s0  ;;  %s6698_s11 = int_to_ptr.hbm [resolvable:$true] %s6697_s11 }
  0xf6   :  { %s6699_s13 = scalar_lea.hbm %s6698_s11, 1  ;;  %s6701_s8 = scalar_lea.hbm %s7462_s14, 1 }
  0xf7   :  { %p6700_p3 = scmp.ne.s32.totalorder %s6698_s11, %s6699_s13  ;;  %p6702_p4 = scmp.lt.s32.totalorder %s6698_s11, %s7462_s14 }
  0xf8   :  { %p6703_p5 = scmp.lt.s32.totalorder %s6701_s8, %s6699_s13 }
  0xfa   :  { %p6704_p6 = por %p6703_p5, %p6702_p4 }
  0xfc   :  { %p6705_p7 = pnand %p6704_p6, %p6700_p3 }
  0xfe   :  { %6708 = shalt.err (!%p6705_p7)
}
  0xff   :  { %460 = dma.hbm_to_vmem [thread:$0]  %s456_s20, 16, %s458_s0, [#allocation33]  }
 0x100   :  { %s222_s5 = sshll.u32 %s7307_s21, 4  ;;  %s7136_s10 = smov [#allocation35]   ;;  %s223_s5 = int_to_ptr.hbm [resolvable:$true] %s222_s5 }
 0x101   :  { %s479_s16 = sshll.u32 %s7136_s10, 4  ;;  %s6721_s15 = sshra.s32 %s478_s30, 4  ;;  %s480_s16 = int_to_ptr.vmem [resolvable:$true] %s479_s16  ;;  %s6722_s15 = int_to_ptr.hbm [resolvable:$true] %s6721_s15 }
 0x102   :  { %s6723_s18 = scalar_lea.hbm %s6722_s15, 1  ;;  %s6725_s17 = scalar_lea.hbm %s7472_s19, 1 }
 0x103   :  { %p6724_p8 = scmp.ne.s32.totalorder %s6722_s15, %s6723_s18  ;;  %p6726_p9 = scmp.lt.s32.totalorder %s6722_s15, %s7472_s19 }
 0x104   :  { %p6727_p10 = scmp.lt.s32.totalorder %s6725_s17, %s6723_s18 }
 0x106   :  { %p6728_p11 = por %p6727_p10, %p6726_p9 }
 0x108   :  { %p6729_p12 = pnand %p6728_p11, %p6724_p8 }
 0x10a   :  { %6732 = shalt.err (!%p6729_p12)
}
 0x10b   :  { %482 = dma.hbm_to_vmem [thread:$0]  %s478_s30, 16, %s480_s16, [#allocation36]  }
 0x10c   :  { %s7137_s14 = smov [#allocation3]   ;;  %s244_s29 = sshll.u32 %s7317_s6, 4  ;;  %s245_s29 = int_to_ptr.hbm [resolvable:$true] %s244_s29 }
 0x10d   :  { %s224_s23 = sshll.u32 %s7137_s14, 4  ;;  %s6745_s22 = sshra.s32 %s223_s5, 4  ;;  %s225_s23 = int_to_ptr.vmem [resolvable:$true] %s224_s23  ;;  %s6746_s22 = int_to_ptr.hbm [resolvable:$true] %s6745_s22 }
 0x10e   :  { %s6747_s26 = scalar_lea.hbm %s6746_s22, 1  ;;  %s6749_s1 = scalar_lea.hbm %s7307_s21, 1 }
 0x10f   :  { %p6748_p13 = scmp.ne.s32.totalorder %s6746_s22, %s6747_s26  ;;  %p6750_p0 = scmp.lt.s32.totalorder %s6746_s22, %s7307_s21 }
 0x110   :  { %p6751_p1 = scmp.lt.s32.totalorder %s6749_s1, %s6747_s26 }
 0x112   :  { %p6752_p2 = por %p6751_p1, %p6750_p0 }
 0x114   :  { %p6753_p3 = pnand %p6752_p2, %p6748_p13 }
 0x116   :  { %6756 = shalt.err (!%p6753_p3)
}
 0x117   :  { %227 = dma.hbm_to_vmem [thread:$0]  %s223_s5, 16, %s225_s23, [#allocation4]  }
 0x118   :  { %s266_s19 = sshll.u32 %s7327_s4, 4  ;;  %s7138_s20 = smov [#allocation7]   ;;  %s267_s19 = int_to_ptr.hbm [resolvable:$true] %s266_s19 }
 0x119   :  { %s246_s28 = sshll.u32 %s7138_s20, 4  ;;  %s6769_s2 = sshra.s32 %s245_s29, 4  ;;  %s247_s28 = int_to_ptr.vmem [resolvable:$true] %s246_s28  ;;  %s6770_s2 = int_to_ptr.hbm [resolvable:$true] %s6769_s2 }
 0x11a   :  { %s6771_s3 = scalar_lea.hbm %s6770_s2, 1  ;;  %s6773_s24 = scalar_lea.hbm %s7317_s6, 1 }
 0x11b   :  { %p6772_p4 = scmp.ne.s32.totalorder %s6770_s2, %s6771_s3  ;;  %p6774_p5 = scmp.lt.s32.totalorder %s6770_s2, %s7317_s6 }
 0x11c   :  { %p6775_p6 = scmp.lt.s32.totalorder %s6773_s24, %s6771_s3 }
 0x11e   :  { %p6776_p7 = por %p6775_p6, %p6774_p5 }
 0x120   :  { %p6777_p8 = pnand %p6776_p7, %p6772_p4 }
 0x122   :  { %6780 = shalt.err (!%p6777_p8)
}
 0x123   :  { %249 = dma.hbm_to_vmem [thread:$0]  %s245_s29, 16, %s247_s28, [#allocation6]  }
 0x124   :  { %s8308_s21 = sld [smem:[#allocation83_spill]]  ;;  %s7139_s7 = smov [#allocation10]  }
 0x125   :  { %s268_s25 = sshll.u32 %s7139_s7, 4  ;;  %s6793_s30 = sshra.s32 %s267_s19, 4  ;;  %s269_s25 = int_to_ptr.vmem [resolvable:$true] %s268_s25  ;;  %s6794_s30 = int_to_ptr.hbm [resolvable:$true] %s6793_s30 }
 0x126   :  { %s6795_s11 = scalar_lea.hbm %s6794_s30, 1  ;;  %s6797_s13 = scalar_lea.hbm %s7327_s4, 1 }
 0x127   :  { %p6796_p9 = scmp.ne.s32.totalorder %s6794_s30, %s6795_s11  ;;  %p6798_p10 = scmp.lt.s32.totalorder %s6794_s30, %s7327_s4 }
 0x128   :  { %p6799_p11 = scmp.lt.s32.totalorder %s6797_s13, %s6795_s11 }
 0x12a   :  { %s296_s0 = sshll.u32 %s8308_s21, 4  ;;  %p6800_p12 = por %p6799_p11, %p6798_p10  ;;  %s297_s0 = int_to_ptr.hbm [resolvable:$true] %s296_s0 }
 0x12c   :  { %p6801_p13 = pnand %p6800_p12, %p6796_p9 }
 0x12e   :  { %6804 = shalt.err (!%p6801_p13)
}
 0x12f   :  { %271 = dma.hbm_to_vmem [thread:$0]  %s267_s19, 16, %s269_s25, [#allocation9]  }
 0x130   :  { %s8309_s6 = sld [smem:[#allocation85_spill]]  ;;  %s7140_s5 = smov [#allocation13]  }
 0x131   :  { %s298_s10 = sshll.u32 %s7140_s5, 4  ;;  %s6817_s16 = sshra.s32 %s297_s0, 4  ;;  %s299_s10 = int_to_ptr.vmem [resolvable:$true] %s298_s10  ;;  %s6818_s16 = int_to_ptr.hbm [resolvable:$true] %s6817_s16 }
 0x132   :  { %s6819_s15 = scalar_lea.hbm %s6818_s16, 1  ;;  %s6821_s18 = scalar_lea.hbm %s8308_s21, 1 }
 0x133   :  { %p6820_p0 = scmp.ne.s32.totalorder %s6818_s16, %s6819_s15  ;;  %p6822_p1 = scmp.lt.s32.totalorder %s6818_s16, %s8308_s21 }
 0x134   :  { %p6823_p2 = scmp.lt.s32.totalorder %s6821_s18, %s6819_s15 }
 0x136   :  { %s320_s8 = sshll.u32 %s8309_s6, 4  ;;  %p6824_p3 = por %p6823_p2, %p6822_p1  ;;  %s321_s8 = int_to_ptr.hbm [resolvable:$true] %s320_s8 }
 0x138   :  { %p6825_p4 = pnand %p6824_p3, %p6820_p0 }
 0x13a   :  { %6828 = shalt.err (!%p6825_p4)
}
 0x13b   :  { %301 = dma.hbm_to_vmem [thread:$0]  %s297_s0, 16, %s299_s10, [#allocation12]  }
 0x13c   :  { %s8310_s4 = sld [smem:[#allocation86_spill]]  ;;  %s7141_s17 = smov [#allocation16]  }
 0x13d   :  { %s322_s14 = sshll.u32 %s7141_s17, 4  ;;  %s6841_s29 = sshra.s32 %s321_s8, 4  ;;  %s323_s14 = int_to_ptr.vmem [resolvable:$true] %s322_s14  ;;  %s6842_s29 = int_to_ptr.hbm [resolvable:$true] %s6841_s29 }
 0x13e   :  { %s6843_s22 = scalar_lea.hbm %s6842_s29, 1  ;;  %s6845_s26 = scalar_lea.hbm %s8309_s6, 1 }
 0x13f   :  { %p6844_p5 = scmp.ne.s32.totalorder %s6842_s29, %s6843_s22  ;;  %p6846_p6 = scmp.lt.s32.totalorder %s6842_s29, %s8309_s6 }
 0x140   :  { %p6847_p7 = scmp.lt.s32.totalorder %s6845_s26, %s6843_s22 }
 0x142   :  { %s342_s23 = sshll.u32 %s8310_s4, 4  ;;  %p6848_p8 = por %p6847_p7, %p6846_p6  ;;  %s343_s23 = int_to_ptr.hbm [resolvable:$true] %s342_s23 }
 0x144   :  { %p6849_p9 = pnand %p6848_p8, %p6844_p5 }
 0x146   :  { %6852 = shalt.err (!%p6849_p9)
}
 0x147   :  { %325 = dma.hbm_to_vmem [thread:$0]  %s321_s8, 16, %s323_s14, [#allocation15]  }
 0x148   :  { %s8311_s1 = sld [smem:[#allocation89_spill]]  ;;  %s7142_s20 = smov [#allocation19]  }
 0x149   :  { %s344_s28 = sshll.u32 %s7142_s20, 4  ;;  %s6865_s2 = sshra.s32 %s343_s23, 4  ;;  %s345_s28 = int_to_ptr.vmem [resolvable:$true] %s344_s28  ;;  %s6866_s2 = int_to_ptr.hbm [resolvable:$true] %s6865_s2 }
 0x14a   :  { %s6867_s3 = scalar_lea.hbm %s6866_s2, 1  ;;  %s6869_s24 = scalar_lea.hbm %s8310_s4, 1 }
 0x14b   :  { %p6868_p10 = scmp.ne.s32.totalorder %s6866_s2, %s6867_s3  ;;  %p6870_p11 = scmp.lt.s32.totalorder %s6866_s2, %s8310_s4 }
 0x14c   :  { %p6871_p12 = scmp.lt.s32.totalorder %s6869_s24, %s6867_s3 }
 0x14e   :  { %s368_s19 = sshll.u32 %s8311_s1, 4  ;;  %p6872_p13 = por %p6871_p12, %p6870_p11  ;;  %s369_s19 = int_to_ptr.hbm [resolvable:$true] %s368_s19 }
 0x150   :  { %p6873_p0 = pnand %p6872_p13, %p6868_p10 }
 0x152   :  { %6876 = shalt.err (!%p6873_p0)
}
 0x153   :  { %347 = dma.hbm_to_vmem [thread:$0]  %s343_s23, 16, %s345_s28, [#allocation18]  }
 0x154   :  { %s8312_s21 = sld [smem:[#allocation91_spill]]  ;;  %s7143_s7 = smov [#allocation22]  }
 0x155   :  { %s370_s25 = sshll.u32 %s7143_s7, 4  ;;  %s6889_s30 = sshra.s32 %s369_s19, 4  ;;  %s371_s25 = int_to_ptr.vmem [resolvable:$true] %s370_s25  ;;  %s6890_s30 = int_to_ptr.hbm [resolvable:$true] %s6889_s30 }
 0x156   :  { %s6891_s11 = scalar_lea.hbm %s6890_s30, 1  ;;  %s6893_s13 = scalar_lea.hbm %s8311_s1, 1 }
 0x157   :  { %p6892_p1 = scmp.ne.s32.totalorder %s6890_s30, %s6891_s11  ;;  %p6894_p2 = scmp.lt.s32.totalorder %s6890_s30, %s8311_s1 }
 0x158   :  { %p6895_p3 = scmp.lt.s32.totalorder %s6893_s13, %s6891_s11 }
 0x15a   :  { %s392_s0 = sshll.u32 %s8312_s21, 4  ;;  %p6896_p4 = por %p6895_p3, %p6894_p2  ;;  %s393_s0 = int_to_ptr.hbm [resolvable:$true] %s392_s0 }
 0x15c   :  { %p6897_p5 = pnand %p6896_p4, %p6892_p1 }
 0x15e   :  { %6900 = shalt.err (!%p6897_p5)
}
 0x15f   :  { %373 = dma.hbm_to_vmem [thread:$0]  %s369_s19, 16, %s371_s25, [#allocation21]  }
 0x160   :  { %s8313_s6 = sld [smem:[#allocation92_spill]]  ;;  %s7144_s5 = smov [#allocation25]  }
 0x161   :  { %s394_s10 = sshll.u32 %s7144_s5, 4  ;;  %s6913_s16 = sshra.s32 %s393_s0, 4  ;;  %s395_s10 = int_to_ptr.vmem [resolvable:$true] %s394_s10  ;;  %s6914_s16 = int_to_ptr.hbm [resolvable:$true] %s6913_s16 }
 0x162   :  { %s6915_s15 = scalar_lea.hbm %s6914_s16, 1  ;;  %s6917_s18 = scalar_lea.hbm %s8312_s21, 1 }
 0x163   :  { %p6916_p6 = scmp.ne.s32.totalorder %s6914_s16, %s6915_s15  ;;  %p6918_p7 = scmp.lt.s32.totalorder %s6914_s16, %s8312_s21 }
 0x164   :  { %p6919_p8 = scmp.lt.s32.totalorder %s6917_s18, %s6915_s15 }
 0x166   :  { %s414_s8 = sshll.u32 %s8313_s6, 4  ;;  %p6920_p9 = por %p6919_p8, %p6918_p7  ;;  %s415_s8 = int_to_ptr.hbm [resolvable:$true] %s414_s8 }
 0x168   :  { %p6921_p10 = pnand %p6920_p9, %p6916_p6 }
 0x16a   :  { %6924 = shalt.err (!%p6921_p10)
}
 0x16b   :  { %397 = dma.hbm_to_vmem [thread:$0]  %s393_s0, 16, %s395_s10, [#allocation24]  }
 0x16c   :  { %s8314_s4 = sld [smem:[#allocation97_spill]]  ;;  %s7145_s17 = smov [#allocation28]  }
 0x16d   :  { %s416_s14 = sshll.u32 %s7145_s17, 4  ;;  %s6937_s29 = sshra.s32 %s415_s8, 4  ;;  %s417_s14 = int_to_ptr.vmem [resolvable:$true] %s416_s14  ;;  %s6938_s29 = int_to_ptr.hbm [resolvable:$true] %s6937_s29 }
 0x16e   :  { %s6939_s22 = scalar_lea.hbm %s6938_s29, 1  ;;  %s6941_s26 = scalar_lea.hbm %s8313_s6, 1 }
 0x16f   :  { %p6940_p11 = scmp.ne.s32.totalorder %s6938_s29, %s6939_s22  ;;  %p6942_p12 = scmp.lt.s32.totalorder %s6938_s29, %s8313_s6 }
 0x170   :  { %p6943_p13 = scmp.lt.s32.totalorder %s6941_s26, %s6939_s22 }
 0x172   :  { %s444_s23 = sshll.u32 %s8314_s4, 4  ;;  %p6944_p0 = por %p6943_p13, %p6942_p12  ;;  %s445_s23 = int_to_ptr.hbm [resolvable:$true] %s444_s23 }
 0x174   :  { %p6945_p1 = pnand %p6944_p0, %p6940_p11 }
 0x176   :  { %6948 = shalt.err (!%p6945_p1)
}
 0x177   :  { %419 = dma.hbm_to_vmem [thread:$0]  %s415_s8, 16, %s417_s14, [#allocation27]  }
 0x178   :  { %s8315_s1 = sld [smem:[#allocation98_spill]]  ;;  %s7146_s20 = smov [#allocation31]  }
 0x179   :  { %s446_s28 = sshll.u32 %s7146_s20, 4  ;;  %s6961_s2 = sshra.s32 %s445_s23, 4  ;;  %s447_s28 = int_to_ptr.vmem [resolvable:$true] %s446_s28  ;;  %s6962_s2 = int_to_ptr.hbm [resolvable:$true] %s6961_s2 }
 0x17a   :  { %s6963_s3 = scalar_lea.hbm %s6962_s2, 1  ;;  %s6965_s24 = scalar_lea.hbm %s8314_s4, 1 }
 0x17b   :  { %p6964_p2 = scmp.ne.s32.totalorder %s6962_s2, %s6963_s3  ;;  %p6966_p3 = scmp.lt.s32.totalorder %s6962_s2, %s8314_s4 }
 0x17c   :  { %p6967_p4 = scmp.lt.s32.totalorder %s6965_s24, %s6963_s3 }
 0x17e   :  { %s466_s19 = sshll.u32 %s8315_s1, 4  ;;  %p6968_p5 = por %p6967_p4, %p6966_p3  ;;  %s467_s19 = int_to_ptr.hbm [resolvable:$true] %s466_s19 }
 0x180   :  { %p6969_p6 = pnand %p6968_p5, %p6964_p2 }
 0x182   :  { %6972 = shalt.err (!%p6969_p6)
}
 0x183   :  { %449 = dma.hbm_to_vmem [thread:$0]  %s445_s23, 16, %s447_s28, [#allocation30]  }
 0x184   :  { %s7147_s21 = smov [#allocation34]   ;;  %s496_s25 = sshll.u32 %s7495_s12, 4  ;;  %s497_s25 = int_to_ptr.hbm [resolvable:$true] %s496_s25 }
 0x185   :  { %s468_s7 = sshll.u32 %s7147_s21, 4  ;;  %s6985_s0 = sshra.s32 %s467_s19, 4  ;;  %s469_s7 = int_to_ptr.vmem [resolvable:$true] %s468_s7  ;;  %s6986_s0 = int_to_ptr.hbm [resolvable:$true] %s6985_s0 }
 0x186   :  { %s6987_s30 = scalar_lea.hbm %s6986_s0, 1  ;;  %s6989_s11 = scalar_lea.hbm %s8315_s1, 1 }
 0x187   :  { %p6988_p7 = scmp.ne.s32.totalorder %s6986_s0, %s6987_s30  ;;  %p6990_p8 = scmp.lt.s32.totalorder %s6986_s0, %s8315_s1 }
 0x188   :  { %p6991_p9 = scmp.lt.s32.totalorder %s6989_s11, %s6987_s30 }
 0x18a   :  { %p6992_p10 = por %p6991_p9, %p6990_p8 }
 0x18c   :  { %p6993_p11 = pnand %p6992_p10, %p6988_p7 }
 0x18e   :  { %6996 = shalt.err (!%p6993_p11)
}
 0x18f   :  { %471 = dma.hbm_to_vmem [thread:$0]  %s467_s19, 16, %s469_s7, [#allocation33]  }
 0x190   :  { %s7148_s13 = smov [#allocation37]   ;;  %s7009_s8 = sshra.s32 %s497_s25, 4  ;;  %s7010_s8 = int_to_ptr.hbm [resolvable:$true] %s7009_s8 }
 0x191   :  { %s498_s6 = sshll.u32 %s7148_s13, 4  ;;  %s7011_s5 = scalar_lea.hbm %s7010_s8, 1  ;;  %s499_s6 = int_to_ptr.vmem [resolvable:$true] %s498_s6 }
 0x192   :  { %p7012_p12 = scmp.ne.s32.totalorder %s7010_s8, %s7011_s5  ;;  %s7013_s10 = scalar_lea.hbm %s7495_s12, 1 }
 0x193   :  { %p7014_p13 = scmp.lt.s32.totalorder %s7010_s8, %s7495_s12  ;;  %p7015_p0 = scmp.lt.s32.totalorder %s7013_s10, %s7011_s5 }
 0x195   :  { %p7016_p1 = por %p7015_p0, %p7014_p13 }
 0x197   :  { %p7017_p2 = pnand %p7016_p1, %p7012_p12 }
 0x199   :  { %7020 = shalt.err (!%p7017_p2)
}
 0x19a   :  { %501 = dma.hbm_to_vmem [thread:$0]  %s497_s25, 16, %s499_s6, [#allocation36]  }
 0x19b   :  { %7033 = dma.done.wait [#allocation4], 16  }
 0x19c   :  { %7034 = vsyncadd [#allocation4], 4294967280 }
 0x19d   :  { %7035 = dma.done.wait [#allocation6], 32  }
 0x19e   :  { %7036 = vsyncadd [#allocation6], 4294967264 }
 0x19f   :  { %7037 = dma.done.wait [#allocation9], 32  }
 0x1a0   :  { %7038 = vsyncadd [#allocation9], 4294967264 }
 0x1a1   :  { %7039 = dma.done.wait [#allocation12], 32  }
 0x1a2   :  { %7040 = vsyncadd [#allocation12], 4294967264 }
 0x1a3   :  { %7041 = dma.done.wait [#allocation15], 32  }
 0x1a4   :  { %7042 = vsyncadd [#allocation15], 4294967264 }
 0x1a5   :  { %7043 = dma.done.wait [#allocation18], 32  }
 0x1a6   :  { %7044 = vsyncadd [#allocation18], 4294967264 }
 0x1a7   :  { %7045 = dma.done.wait [#allocation21], 32  }
 0x1a8   :  { %7046 = vsyncadd [#allocation21], 4294967264 }
 0x1a9   :  { %7047 = dma.done.wait [#allocation24], 32  }
 0x1aa   :  { %7048 = vsyncadd [#allocation24], 4294967264 }
 0x1ab   :  { %7049 = dma.done.wait [#allocation27], 32  }
 0x1ac   :  { %7050 = vsyncadd [#allocation27], 4294967264 }
 0x1ad   :  { %7051 = dma.done.wait [#allocation30], 32  }
 0x1ae   :  { %7052 = vsyncadd [#allocation30], 4294967264 }
 0x1af   :  { %7053 = dma.done.wait [#allocation33], 32  }
 0x1b0   :  { %7054 = vsyncadd [#allocation33], 4294967264 }
 0x1b1   :  { %7055 = dma.done.wait [#allocation36], 32  }
 0x1b2   :  { %7056 = vsyncadd [#allocation36], 4294967264  ;;  %s8316_s12 = sld [smem:[#allocation50_spill]]  ;;  %vm603_vm0 = vcmask 130048   ;;  %v7149_v5 = vmov 16.0   ;;  %vm715_vm8 = vcmask 523264  }
 0x1b3   :  { %6375 = vrcp.f32 %v7149_v5  ;;  %s8317_s16 = sld [smem:[#allocation84_spill]]  ;;  %v6338_v42 = vld [vmem:[#allocation14] ss:$0 sm:$0xff]  ;;  %v6339_v47 = vld [vmem:[#allocation13] ss:$0 sm:$0xff]  ;;  %s7151_s17 = smov 96  }
 0x1b4   :  { %v6340_v52 = vld [vmem:[#allocation11] ss:$0 sm:$0xff]  ;;  %s8318_s15 = sld [smem:[#allocation95_spill]] }
 0x1b5   :  { %s8319_s18 = sld [smem:[#allocation96_spill]] }
 0x1b6   :  { %s8320_s4 = sld [smem:[#allocation93_spill]] }
 0x1b7   :  { %s8321_s14 = sld [smem:[#allocation51_spill]] }
 0x1b8   :  { %v595_v1 = vld [vmem:[%s8316_s12] sm:$0xff]  ;;  %v596_v2 = vld [vmem:[%s8316_s12 + $0x8] sm:$0xff]  ;;  %s8322_s23 = sld [smem:[#allocation94_spill]] }
 0x1b9   :  { %v604_v3 = vsel %vm603_vm0, %v595_v1, 0.0  ;;  %v607_v4 = vsel %vm603_vm0, %v596_v2, 0.0  ;;  %v6376_v6 = vpop.eup %6375  ;;  %v5958_v22 = vld [vmem:[%s8317_s16] sm:$0xff]  ;;  %s8323_s29 = sld [smem:[#allocation88_spill]] }
 0x1ba   :  { %605 = vadd.xlane.f32.xlu0 %v604_v3  ;;  %v611_v7 = vmul.f32 16.0, %v6376_v6  ;;  %vm615_vm1 = vweird.f32 %v6376_v6  ;;  %688 = vmatpush.bf16.msra.mxu3 %v5958_v22  ;;  %s8324_s22 = sld [smem:[#allocation90_spill]] }
 0x1bb   :  { %s8325_s26 = sld [smem:[#allocation87_spill]] }
 0x1bc   :  { %v612_v8 = vsub.f32 1.0, %v611_v7  ;;  %s8326_s1 = sld [smem:[#allocation81_spill]] }
 0x1bd   :  { %s8327_s19 = sld [smem:[#allocation79_spill]] }
 0x1be   :  { %v613_v9 = vmul.f32 %v6376_v6, %v612_v8  ;;  %s8328_s20 = sld [smem:[#allocation82_spill]] }
 0x1bf   :  { %s8329_s28 = sld [smem:[#allocation75_spill]] }
 0x1c0   :  { %v614_v10 = vadd.f32 %v6376_v6, %v613_v9  ;;  %s8330_s2 = sld [smem:[#allocation74_spill]] }
 0x1c1   :  { %s8331_s3 = sld [smem:[#allocation52_spill]] }
 0x1c2   :  { %608 = vadd.xlane.f32.xlu0 %v607_v4  ;;  %v616_v11 = vsel %vm615_vm1, %v6376_v6, %v614_v10  ;;  %vm942_vm1 = vcmask 261120   ;;  %s8332_s24 = sld [smem:[#allocation66_spill]] }
 0x1c3   :  { %s8333_s21 = sld [smem:[#allocation80_spill]] }
 0x1c4   :  { %s8334_s7 = sld [smem:[#allocation69_spill]] }
 0x1c5   :  { %s8335_s25 = sld [smem:[#allocation62_spill]] }
 0x1c6   :  { %s8336_s0 = sld [smem:[#allocation68_spill]] }
 0x1c7   :  { %s8337_s30 = sld [smem:[#allocation65_spill]] }
 0x1c8   :  { %s8338_s11 = sld [smem:[#allocation77_spill]] }
 0x1c9   :  { %s8339_s13 = sld [smem:[#allocation76_spill]] }
 0x1ca   :  { %s8340_s6 = sld [smem:[#allocation64_spill]] }
 0x1cb   :  { %s8341_s8 = sld [smem:[#allocation67_spill]] }
 0x1cc   :  { %s8342_s5 = sld [smem:[#allocation63_spill]] }
 0x1cd   :  { %s8343_s10 = sld [smem:[#allocation71_spill]] }
 0x1ce   :  { %s8344_s12 = sld [smem:[#allocation78_spill]] }
 0x1cf   :  { %s8345_s16 = sld [smem:[#allocation73_spill]] }
 0x22d   :  { %v606_v12 = vpop.xlane.xlu0 %605 }
 0x22e   :  { %v617_v13 = vmul.f32 %v616_v11, %v606_v12 }
 0x230   :  { %v619_v14 = vsub.f32 %v595_v1, %v617_v13  ;;  %v7150_v13 = vmov 64.0  }
 0x232   :  { %v621_v15 = vmul.f32 %v619_v14, %v619_v14 }
 0x234   :  { %v623_v16 = vsel %vm603_vm0, %v621_v15, 0.0 }
 0x235   :  { %624 = vadd.xlane.f32.xlu1 %v623_v16  ;;  %v609_v17 = vpop.xlane.xlu0 %608 }
 0x236   :  { %v618_v18 = vmul.f32 %v616_v11, %v609_v17 }
 0x238   :  { %v620_v19 = vsub.f32 %v596_v2, %v618_v18 }
 0x23a   :  { %v622_v20 = vmul.f32 %v620_v19, %v620_v19 }
 0x23c   :  { %v626_v21 = vsel %vm603_vm0, %v622_v20, 0.0 }
 0x23d   :  { %627 = vadd.xlane.f32.xlu1 %v626_v21 }
 0x2a8   :  { %v625_v23 = vpop.xlane.xlu1 %624 }
 0x2a9   :  { %v629_v24 = vmul.f32 %v625_v23, %v616_v11 }
 0x2ab   :  { %v631_v25 = vadd.f32 1e-05, %v629_v24 }
 0x2ad   :  { %6377 = vrsqrt.f32 %v631_v25  ;;  %vm639_vm3 = vweird.f32 %v631_v25 }
 0x2b0   :  { %v628_v26 = vpop.xlane.xlu1 %627 }
 0x2b1   :  { %v630_v27 = vmul.f32 %v628_v26, %v616_v11 }
 0x2b3   :  { %v6378_v28 = vpop.eup %6377  ;;  %v632_v29 = vadd.f32 1e-05, %v630_v27 }
 0x2b4   :  { %v634_v30 = vmul.f32 %v6378_v28, %v631_v25  ;;  %vm640_vm2 = vweird.f32 %v6378_v28 }
 0x2b5   :  { %6379 = vrsqrt.f32 %v632_v29  ;;  %vm641_vm4 = vmor %vm639_vm3, %vm640_vm2  ;;  %vm649_vm6 = vweird.f32 %v632_v29 }
 0x2b6   :  { %v635_v31 = vmul.f32 %v6378_v28, %v634_v30  ;;  %v5962_v30 = vld [vmem:[%s8318_s15 + $0x18] sm:$0xff] }
 0x2b7   :  { %821 = vmatpush.bf16.msra.mxu2 %v5962_v30 }
 0x2b8   :  { %v636_v32 = vmul.f32 0.5, %v635_v31  ;;  %v5970_v31 = vld [vmem:[%s8319_s18 + $0x18] sm:$0xff] }
 0x2b9   :  { %921 = vmatpush.bf16.msrb.mxu3 %v5970_v31 }
 0x2ba   :  { %v637_v33 = vsub.f32 1.5, %v636_v32  ;;  %v5961_v32 = vld [vmem:[%s8318_s15 + $0x10] sm:$0xff] }
 0x2bb   :  { %v6380_v34 = vpop.eup %6379  ;;  %822 = vmatpush.bf16.msra.mxu2 %v5961_v32  ;;  %v597_v32 = vld [vmem:[%s8321_s14] sm:$0xff] }
 0x2bc   :  { %v638_v35 = vmul.f32 %v6378_v28, %v637_v33  ;;  %v644_v36 = vmul.f32 %v6380_v34, %v632_v29  ;;  %vm650_vm5 = vweird.f32 %v6380_v34  ;;  %v5969_v33 = vld [vmem:[%s8319_s18 + $0x10] sm:$0xff] }
 0x2bd   :  { %vm651_vm7 = vmor %vm649_vm6, %vm650_vm5  ;;  %922 = vmatpush.bf16.msrb.mxu3 %v5969_v33 }
 0x2be   :  { %v645_v37 = vmul.f32 %v6380_v34, %v644_v36  ;;  %v642_v38 = vsel %vm641_vm4, %v6378_v28, %v638_v35  ;;  %v5968_v35 = vld [vmem:[%s8319_s18 + $0x8] sm:$0xff] }
 0x2bf   :  { %v653_v41 = vmul.f32 %v642_v38, %v619_v14  ;;  %v5967_v38 = vld [vmem:[%s8319_s18] sm:$0xff]  ;;  %s8347_s18 = sld [smem:[#allocation59_spill]] }
 0x2c0   :  { %v646_v39 = vmul.f32 0.5, %v645_v37  ;;  %v5959_v37 = vld [vmem:[%s8318_s15] sm:$0xff] }
 0x2c1   :  { %v658_v46 = vmul.f32 %v6338_v42, %v653_v41  ;;  %923 = vmatpush.bf16.msrb.mxu3 %v5968_v35  ;;  %v5966_v41 = vld [vmem:[%s8320_s4 + $0x18] sm:$0xff] }
 0x2c2   :  { %v647_v40 = vsub.f32 1.5, %v646_v39 }
 0x2c3   :  { %v663_v49 = vadd.f32 %v6339_v47, %v658_v46 }
 0x2c4   :  { %v648_v43 = vmul.f32 %v6380_v34, %v647_v40 }
 0x2c5   :  { %924 = vmatpush.bf16.msrb.mxu3 %v5967_v38 }
 0x2c6   :  { %v652_v44 = vsel %vm651_vm7, %v6380_v34, %v648_v43  ;;  %v5960_v34 = vld [vmem:[%s8318_s15 + $0x8] sm:$0xff]  ;;  %v5965_v43 = vld [vmem:[%s8320_s4 + $0x10] sm:$0xff]  ;;  %s8346_s15 = sld [smem:[#allocation70_spill]] }
 0x2c7   :  { %v654_v45 = vmul.f32 %v652_v44, %v620_v19  ;;  %823 = vmatpush.bf16.msra.mxu2 %v5960_v34 }
 0x2c9   :  { %v659_v48 = vmul.f32 %v6338_v42, %v654_v45 }
 0x2cb   :  { %v664_v50 = vadd.f32 %v6339_v47, %v659_v48  ;;  %824 = vmatpush.bf16.msra.mxu2 %v5959_v37  ;;  %v5964_v48 = vld [vmem:[%s8320_s4 + $0x8] sm:$0xff] }
 0x2cd   :  { %v667_v51 = vpack.c.bf16 %v664_v50, %v663_v49 }
 0x2cf   :  { %4790 = vmatmul.msk.bf16.vlgmr.msra.gmra.mxu3 %vm603_vm0, %v667_v51  ;;  %871 = vmatpush.bf16.msrb.mxu2 %v5966_v41  ;;  %v5963_v51 = vld [vmem:[%s8320_s4] sm:$0xff]  ;;  %s8348_s4 = sld [smem:[#allocation72_spill]] }
 0x2d3   :  { %872 = vmatpush.bf16.msrb.mxu2 %v5965_v43 }
 0x2d7   :  { %873 = vmatpush.bf16.msrb.mxu2 %v5964_v48 }
 0x2db   :  { %874 = vmatpush.bf16.msrb.mxu2 %v5963_v51 }
 0x352   :  { %v690_v53 = vpop.f32.mrf.mxu3 }
 0x353   :  { %v691_v54 = vadd.f32 %v6340_v52, %v690_v53 }
 0x355   :  { %v697_v55 = vmul.f32 0.044715, %v691_v54  ;;  %v695_v4 = vmul.f32 0.5, %v691_v54 }
 0x357   :  { %v699_v56 = vmul.f32 %v697_v55, %v691_v54 }
 0x359   :  { %v701_v57 = vmul.f32 %v699_v56, %v691_v54 }
 0x35a   :  { %v692_v58 = vpop.f32.mrf.mxu3 }
 0x35b   :  { %v693_v59 = vadd.f32 %v6340_v52, %v692_v58  ;;  %v703_v60 = vadd.f32 %v701_v57, %v691_v54 }
 0x35d   :  { %v698_v61 = vmul.f32 0.044715, %v693_v59  ;;  %v705_v62 = vmul.f32 0.7978846, %v703_v60  ;;  %v696_v9 = vmul.f32 0.5, %v693_v59 }
 0x35f   :  { %6381 = vtanh.f32 %v705_v62  ;;  %v700_v63 = vmul.f32 %v698_v61, %v693_v59  ;;  %v6341_v61 = vld [vmem:[#allocation25] ss:$0 sm:$0xff] }
 0x361   :  { %v702_v0 = vmul.f32 %v700_v63, %v693_v59 }
 0x363   :  { %v704_v1 = vadd.f32 %v702_v0, %v693_v59 }
 0x365   :  { %v6382_v2 = vpop.eup %6381  ;;  %v706_v3 = vmul.f32 0.7978846, %v704_v1 }
 0x366   :  { %v709_v5 = vadd.f32 1.0, %v6382_v2  ;;  %v6342_v2 = vld [vmem:[#allocation23] ss:$0 sm:$0xff] }
 0x367   :  { %6383 = vtanh.f32 %v706_v3 }
 0x368   :  { %v7584_v6 = vmul.f32 %v709_v5, %v695_v4  ;;  %6385 = vrcp.f32 %v7150_v13 }
 0x36a   :  { %v716_v7 = vsel %vm715_vm8, %v7584_v6, 0.0 }
 0x36b   :  { %717 = vadd.xlane.f32.xlu2 %v716_v7 }
 0x36d   :  { %v6384_v8 = vpop.eup %6383 }
 0x36e   :  { %v710_v10 = vadd.f32 1.0, %v6384_v8  ;;  %v6386_v14 = vpop.eup %6385 }
 0x36f   :  { %v723_v15 = vmul.f32 64.0, %v6386_v14  ;;  %vm727_vm9 = vweird.f32 %v6386_v14 }
 0x370   :  { %v7588_v11 = vmul.f32 %v710_v10, %v696_v9  ;;  %v6343_v10 = vld [vmem:[#allocation19] ss:$0 sm:$0xff] }
 0x371   :  { %v724_v16 = vsub.f32 1.0, %v723_v15 }
 0x372   :  { %v719_v12 = vsel %vm715_vm8, %v7588_v11, 0.0 }
 0x373   :  { %720 = vadd.xlane.f32.xlu2 %v719_v12  ;;  %v725_v17 = vmul.f32 %v6386_v14, %v724_v16  ;;  %v6344_v12 = vld [vmem:[#allocation20] ss:$0 sm:$0xff] }
 0x375   :  { %v726_v18 = vadd.f32 %v6386_v14, %v725_v17 }
 0x377   :  { %v7592_v19 = vsel %vm727_vm9, %v6386_v14, %v726_v18 }
 0x3de   :  { %v718_v20 = vpop.xlane.xlu2 %717 }
 0x3df   :  { %v729_v21 = vmul.f32 %v7592_v19, %v718_v20 }
 0x3e1   :  { %v731_v22 = vsub.f32 %v7584_v6, %v729_v21 }
 0x3e3   :  { %v733_v23 = vmul.f32 %v731_v22, %v731_v22 }
 0x3e5   :  { %v735_v24 = vsel %vm715_vm8, %v733_v23, 0.0  ;;  %v6345_v23 = vld [vmem:[#allocation16] ss:$0 sm:$0xff] }
 0x3e6   :  { %736 = vadd.xlane.f32.xlu0 %v735_v24  ;;  %v721_v25 = vpop.xlane.xlu2 %720 }
 0x3e7   :  { %v730_v26 = vmul.f32 %v7592_v19, %v721_v25 }
 0x3e9   :  { %v732_v27 = vsub.f32 %v7588_v11, %v730_v26 }
 0x3eb   :  { %v734_v28 = vmul.f32 %v732_v27, %v732_v27 }
 0x3ed   :  { %v738_v29 = vsel %vm715_vm8, %v734_v28, 0.0 }
 0x3ee   :  { %739 = vadd.xlane.f32.xlu1 %v738_v29 }
 0x459   :  { %v737_v36 = vpop.xlane.xlu0 %736 }
 0x45a   :  { %v741_v39 = vmul.f32 %v737_v36, %v7592_v19  ;;  %v598_v36 = vld [vmem:[%s8321_s14 + $0x8] sm:$0xff] }
 0x45c   :  { %v743_v40 = vadd.f32 1e-05, %v741_v39 }
 0x45e   :  { %6387 = vrsqrt.f32 %v743_v40  ;;  %vm751_vm11 = vweird.f32 %v743_v40 }
 0x461   :  { %v740_v42 = vpop.xlane.xlu1 %739 }
 0x462   :  { %v742_v44 = vmul.f32 %v740_v42, %v7592_v19 }
 0x464   :  { %v6388_v45 = vpop.eup %6387  ;;  %v744_v46 = vadd.f32 1e-05, %v742_v44 }
 0x465   :  { %v746_v47 = vmul.f32 %v6388_v45, %v743_v40  ;;  %vm752_vm10 = vweird.f32 %v6388_v45 }
 0x466   :  { %6389 = vrsqrt.f32 %v744_v46  ;;  %vm753_vm12 = vmor %vm751_vm11, %vm752_vm10  ;;  %vm761_vm14 = vweird.f32 %v744_v46 }
 0x467   :  { %v747_v49 = vmul.f32 %v6388_v45, %v746_v47 }
 0x469   :  { %v748_v50 = vmul.f32 0.5, %v747_v49 }
 0x46b   :  { %v749_v52 = vsub.f32 1.5, %v748_v50 }
 0x46c   :  { %v6390_v53 = vpop.eup %6389 }
 0x46d   :  { %v750_v54 = vmul.f32 %v6388_v45, %v749_v52  ;;  %v756_v55 = vmul.f32 %v6390_v53, %v744_v46  ;;  %vm762_vm13 = vweird.f32 %v6390_v53 }
 0x46e   :  { %vm763_vm15 = vmor %vm761_vm14, %vm762_vm13 }
 0x46f   :  { %v757_v56 = vmul.f32 %v6390_v53, %v756_v55  ;;  %v754_v57 = vsel %vm753_vm12, %v6388_v45, %v750_v54 }
 0x470   :  { %v765_v60 = vmul.f32 %v754_v57, %v731_v22 }
 0x471   :  { %v758_v58 = vmul.f32 0.5, %v757_v56 }
 0x472   :  { %v770_v1 = vmul.f32 %v6341_v61, %v765_v60 }
 0x473   :  { %v759_v59 = vsub.f32 1.5, %v758_v58 }
 0x474   :  { %v775_v4 = vadd.f32 %v6342_v2, %v770_v1 }
 0x475   :  { %v760_v62 = vmul.f32 %v6390_v53, %v759_v59 }
 0x477   :  { %v764_v63 = vsel %vm763_vm15, %v6390_v53, %v760_v62 }
 0x478   :  { %v766_v0 = vmul.f32 %v764_v63, %v732_v27 }
 0x47a   :  { %v771_v3 = vmul.f32 %v6341_v61, %v766_v0 }
 0x47c   :  { %v776_v5 = vadd.f32 %v6342_v2, %v771_v3 }
 0x47e   :  { %v785_v7 = vpack.c.bf16 %v776_v5, %v775_v4 }
 0x480   :  { %4807 = vmatmul.msk.bf16.vlgmr.msra.gmra.mxu2 %vm715_vm8, %v785_v7  ;;  %4841 = vmatmul.msk.bf16.vlgmr.msrb.gmra.mxu3 %vm715_vm8, %v785_v7 }
 0x490   :  { %4824 = vmatmul.msk.bf16.vlgmr.msrb.gmra.mxu2 %vm715_vm8, %v785_v7 }
 0x503   :  { %v826_v8 = vpop.f32.mrf.mxu2  ;;  %v926_v9 = vpop.f32.mrf.mxu3 }
 0x504   :  { %v827_v15 = vadd.f32 %v6343_v10, %v826_v8  ;;  %v927_v16 = vadd.f32 %v6344_v12, %v926_v9 }
 0x50b   :  { %v828_v13 = vpop.f32.mrf.mxu2  ;;  %v928_v14 = vpop.f32.mrf.mxu3 }
 0x50c   :  { %v829_v17 = vadd.f32 %v6343_v10, %v828_v13  ;;  %v929_v18 = vadd.f32 %v6344_v12, %v928_v14  ;;  %v5972_v10 = vld [vmem:[%s8322_s23 + $0x8] sm:$0xff]  ;;  %v5971_v14 = vld [vmem:[%s8322_s23] sm:$0xff] }
 0x50e   :  { %v939_v20 = vpack.c.bf16 %v829_v17, %v827_v15  ;;  %v7617_v21 = vpack.c.bf16 %v929_v18, %v927_v16 }
 0x510   :  { %996 = vmatpush.bf16.msra.mxu1 %v7617_v21  ;;  %1005 = vrot.lane.b32.xlu0 %v939_v20, %s7151_s17 }
 0x513   :  { %v876_v22 = vpop.f32.mrf.mxu2 }
 0x514   :  { %v877_v25 = vadd.f32 %v6345_v23, %v876_v22  ;;  %1125 = vmatpush.bf16.msrb.mxu1 %v5972_v10  ;;  %v4940_v10 = vld [vmem:[%s8323_s29 + $0xa8] sm:$0xf0] }
 0x518   :  { %1126 = vmatpush.bf16.msrb.mxu1 %v5971_v14  ;;  %v5987_v14 = vld [vmem:[%s8323_s29 + $0x5c] sm:$0xf0] }
 0x51b   :  { %v878_v24 = vpop.f32.mrf.mxu2 }
 0x51c   :  { %v879_v26 = vadd.f32 %v6345_v23, %v878_v24 }
 0x51e   :  { %v940_v27 = vpack.c.bf16 %v879_v26, %v877_v25  ;;  %v5974_v25 = vld [vmem:[%s8322_s23 + $0x18] sm:$0xff]  ;;  %v5973_v26 = vld [vmem:[%s8322_s23 + $0x10] sm:$0xff]  ;;  %s8351_s23 = sld [smem:[#allocation54_spill]] }
 0x520   :  { %1008 = vrot.lane.b32.xlu2 %v940_v27, %s7151_s17  ;;  %v947_v28 = vsel %vm942_vm1, %v940_v27, 0 }
 0x521   :  { %956 = vmatpush.bf16.xpose.msra.mxu0 %v947_v28 }
 0x528   :  { %4842 = vmatmul.msk.bf16.vlgmr.msra.gmra.mxu0 %vm942_vm1, %v939_v20 }
 0x529   :  { %1096 = vmatpush.bf16.msrb.mxu0 %v5974_v25 }
 0x52d   :  { %1097 = vmatpush.bf16.msrb.mxu0 %v5973_v26 }
 0x57a   :  { %v1009_v29 = vpop.permute.xlu2 %1008 }
 0x57b   :  { %v1014_v30 = vsel %vm942_vm1, %v1009_v29, 0 }
 0x57c   :  { %1023 = vmatpush.bf16.xpose.msra.mxu2 %v1014_v30 }
 0x582   :  { %v1006_v31 = vpop.permute.xlu0 %1005 }
 0x583   :  { %4844 = vmatmul.msk.bf16.vlgmr.msra.gmra.mxu2 %vm942_vm1, %v1006_v31  ;;  %v6346_v31 = vld [vmem:[#allocation17] ss:$0 sm:$0xff] }
 0x5a5   :  { %v958_v33 = vpop.f32.mrf.mxu0 }
 0x5a6   :  { %v959_v34 = vadd.f32 %v958_v33, %v597_v32 }
 0x5a8   :  { %v963_v35 = vsel %vm603_vm0, %v959_v34, -inf }
 0x5a9   :  { %964 = vmax.xlane.f32.xlu1 %v963_v35 }
 0x5ad   :  { %v960_v37 = vpop.f32.mrf.mxu0 }
 0x5ae   :  { %v961_v38 = vadd.f32 %v960_v37, %v598_v36 }
 0x5b0   :  { %v966_v39 = vsel %vm603_vm0, %v961_v38, -inf }
 0x5b1   :  { %967 = vmax.xlane.f32.xlu2 %v966_v39 }
 0x606   :  { %v1025_v40 = vpop.f32.mrf.mxu2 }
 0x607   :  { %v1026_v41 = vadd.f32 %v1025_v40, %v597_v32 }
 0x609   :  { %v1030_v42 = vsel %vm603_vm0, %v1026_v41, -inf }
 0x60a   :  { %1031 = vmax.xlane.f32.xlu1 %v1030_v42 }
 0x60e   :  { %v1027_v43 = vpop.f32.mrf.mxu2 }
 0x60f   :  { %v1028_v44 = vadd.f32 %v1027_v43, %v598_v36 }
 0x611   :  { %v1033_v45 = vsel %vm603_vm0, %v1028_v44, -inf }
 0x612   :  { %1034 = vmax.xlane.f32.xlu1 %v1033_v45 }
 0x61c   :  { %v965_v46 = vpop.xlane.xlu1 %964 }
 0x61d   :  { %v969_v47 = vsub.f32 %v959_v34, %v965_v46 }
 0x61f   :  { %v971_v48 = vmul.f32 1.442695, %v969_v47 }
 0x621   :  { %6391 = vpow2.f32 %v971_v48 }
 0x624   :  { %v968_v49 = vpop.xlane.xlu2 %967 }
 0x625   :  { %v970_v50 = vsub.f32 %v961_v38, %v968_v49 }
 0x627   :  { %v6392_v51 = vpop.eup %6391  ;;  %v973_v52 = vmul.f32 1.442695, %v970_v50 }
 0x628   :  { %v975_v53 = vsel %vm603_vm0, %v6392_v51, 0.0 }
 0x629   :  { %6393 = vpow2.f32 %v973_v52  ;;  %976 = vadd.xlane.f32.xlu1 %v975_v53  ;;  %v6003_v52 = vld [vmem:[%s8323_s29 + $0xdc] sm:$0xf0]  ;;  %v5999_v53 = vld [vmem:[%s8323_s29 + $0xc4] sm:$0xf] }
 0x62f   :  { %v6394_v54 = vpop.eup %6393 }
 0x630   :  { %v978_v55 = vsel %vm603_vm0, %v6394_v54, 0.0 }
 0x631   :  { %979 = vadd.xlane.f32.xlu1 %v978_v55  ;;  %v4964_v55 = vld [vmem:[%s8323_s29 + $0xe0] sm:$0xf0] }
 0x67d   :  { %v1032_v56 = vpop.xlane.xlu1 %1031 }
 0x67e   :  { %v1036_v57 = vsub.f32 %v1026_v41, %v1032_v56  ;;  %v4970_v56 = vld [vmem:[%s8323_s29 + $0xc8] sm:$0xf] }
 0x680   :  { %v1038_v58 = vmul.f32 1.442695, %v1036_v57  ;;  %v6004_v57 = vld [vmem:[%s8323_s29 + $0xe4] sm:$0xf0] }
 0x682   :  { %6395 = vpow2.f32 %v1038_v58  ;;  %v4967_v58 = vor.u32 %v5999_v53, %v4964_v55  ;;  %v6002_v53 = vld [vmem:[%s8323_s29 + $0xdc] sm:$0xf]  ;;  %v4946_v55 = vld [vmem:[%s8323_s29 + $0x90] sm:$0xf] }
 0x685   :  { %v1035_v59 = vpop.xlane.xlu1 %1034 }
 0x686   :  { %v1037_v60 = vsub.f32 %v1028_v44, %v1035_v59  ;;  %v4971_v59 = vor.u32 %v6004_v57, %v4970_v56 }
 0x688   :  { %v6396_v61 = vpop.eup %6395  ;;  %v1040_v62 = vmul.f32 1.442695, %v1037_v60  ;;  %v6000_v60 = vld [vmem:[%s8323_s29 + $0xcc] sm:$0xf]  ;;  %1443 = vmatpush.bf16.msra.mxu0 %v4971_v59  ;;  %v5993_v59 = vld [vmem:[%s8323_s29 + $0x94] sm:$0xf] }
 0x689   :  { %v1042_v63 = vsel %vm603_vm0, %v6396_v61, 0.0 }
 0x68a   :  { %6397 = vpow2.f32 %v1040_v62  ;;  %1043 = vadd.xlane.f32.xlu0 %v1042_v63  ;;  %v4930_v63 = vld [vmem:[%s8323_s29 + $0x80] sm:$0xf] }
 0x690   :  { %v6398_v0 = vpop.eup %6397 }
 0x691   :  { %v1045_v1 = vsel %vm603_vm0, %v6398_v0, 0.0 }
 0x692   :  { %1046 = vadd.xlane.f32.xlu1 %v1045_v1  ;;  %v5991_v1 = vld [vmem:[%s8323_s29 + $0x84] sm:$0xf] }
 0x69c   :  { %v977_v2 = vpop.xlane.xlu1 %976 }
 0x69d   :  { %6399 = vrcp.f32 %v977_v2 }
 0x6a3   :  { %v6400_v4 = vpop.eup %6399 }
 0x6a4   :  { %v980_v3 = vpop.xlane.xlu1 %979  ;;  %v983_v7 = vmul.f32 %v6400_v4, %v6392_v51  ;;  %v4962_v51 = vld [vmem:[%s8323_s29 + $0xc0] sm:$0xf]  ;;  %v4938_v4 = vld [vmem:[%s8323_s29 + $0x88] sm:$0xf] }
 0x6a5   :  { %6401 = vrcp.f32 %v980_v3  ;;  %v4932_v3 = vld [vmem:[%s8323_s29 + $0xa0] sm:$0xf0] }
 0x6ab   :  { %v6402_v5 = vpop.eup %6401  ;;  %1054 = vrot.lane.b32.xlu1 %v7617_v21, %s7151_s17 }
 0x6ac   :  { %v984_v8 = vmul.f32 %v6402_v5, %v6394_v54  ;;  %v4963_v54 = vor.u32 %v6003_v52, %v4962_v51  ;;  %v5996_v5 = vld [vmem:[%s8323_s29 + $0xa4] sm:$0xf0] }
 0x6ae   :  { %v985_v9 = vpack.c.bf16 %v984_v8, %v983_v7  ;;  %1415 = vmatpush.bf16.msrb.mxu2 %v4963_v54  ;;  %v4935_v7 = vor.u32 %v5991_v1, %v4932_v3  ;;  %v4939_v8 = vor.u32 %v5996_v5, %v4938_v4  ;;  %v4988_v54 = vld [vmem:[%s8323_s29 + $0xf8] sm:$0xf0] }
 0x6af   :  { %v4991_v57 = vor.u32 %v6002_v53, %v4988_v54  ;;  %v5994_v1 = vld [vmem:[%s8323_s29 + $0x9c] sm:$0xf] }
 0x6b0   :  { %4843 = vmatmul.msk.bf16.vlgmr.msra.gmra.mxu1 %vm603_vm0, %v985_v9  ;;  %v5992_v9 = vld [vmem:[%s8323_s29 + $0x8c] sm:$0xf]  ;;  %1444 = vmatpush.bf16.msra.mxu0 %v4939_v8  ;;  %v4956_v5 = vld [vmem:[%s8323_s29 + $0xb8] sm:$0xf0] }
 0x6fd   :  { %v1044_v13 = vpop.xlane.xlu0 %1043 }
 0x705   :  { %v1047_v12 = vpop.xlane.xlu1 %1046 }
 0x706   :  { %6403 = vrcp.f32 %v1047_v12  ;;  %v4943_v12 = vor.u32 %v5992_v9, %v4940_v10  ;;  %v4959_v9 = vor.u32 %v5994_v1, %v4956_v5  ;;  %v5989_v10 = vld [vmem:[%s8323_s29 + $0x6c] sm:$0xf0]  ;;  %v6036_v1 = vld [vmem:[%s8324_s22 + $0xe8] sm:$0xff]  ;;  %v6035_v5 = vld [vmem:[%s8324_s22 + $0xe0] sm:$0xff] }
 0x707   :  { %6405 = vrcp.f32 %v1044_v13  ;;  %v4898_v13 = vld [vmem:[%s8323_s29 + $0x40] sm:$0xf] }
 0x70c   :  { %v6404_v15 = vpop.eup %6403 }
 0x70d   :  { %v6406_v16 = vpop.eup %6405  ;;  %v1051_v17 = vmul.f32 %v6404_v15, %v6398_v0  ;;  %v5995_v0 = vld [vmem:[%s8323_s29 + $0x9c] sm:$0xf0]  ;;  %v5983_v15 = vld [vmem:[%s8323_s29 + $0x44] sm:$0xf] }
 0x70e   :  { %v1050_v18 = vmul.f32 %v6406_v16, %v6396_v61  ;;  %v4972_v61 = vld [vmem:[%s8323_s29 + $0xe8] sm:$0xf0]  ;;  %v4931_v2 = vor.u32 %v5995_v0, %v4930_v63  ;;  %v4899_v16 = vor.u32 %v5987_v14, %v4898_v13  ;;  %v4954_v63 = vld [vmem:[%s8323_s29 + $0x98] sm:$0xf]  ;;  %v4916_v13 = vld [vmem:[%s8323_s29 + $0x70] sm:$0xf0] }
 0x70f   :  { %v4975_v62 = vor.u32 %v6000_v60, %v4972_v61  ;;  %v4948_v60 = vld [vmem:[%s8323_s29 + $0xb0] sm:$0xf0]  ;;  %v5998_v0 = vld [vmem:[%s8323_s29 + $0xb4] sm:$0xf0] }
 0x710   :  { %v1052_v21 = vpack.c.bf16 %v1051_v17, %v1050_v18  ;;  %1416 = vmatpush.bf16.msrb.mxu2 %v4931_v2  ;;  %v4900_v17 = vld [vmem:[%s8323_s29 + $0x60] sm:$0xf0]  ;;  %v4906_v18 = vld [vmem:[%s8323_s29 + $0x48] sm:$0xf]  ;;  %v4955_v4 = vor.u32 %v5998_v0, %v4954_v63  ;;  %v6021_v63 = vld [vmem:[%s8324_s22 + $0x70] sm:$0xff] }
 0x711   :  { %1457 = vmatpush.bf16.msra.mxu1 %v4975_v62  ;;  %v4951_v62 = vor.u32 %v5993_v59, %v4948_v60  ;;  %v6038_v59 = vld [vmem:[%s8324_s22 + $0xf8] sm:$0xff]  ;;  %v6028_v0 = vld [vmem:[%s8324_s22 + $0xa8] sm:$0xff] }
 0x712   :  { %v6014_v60 = vld [vmem:[%s8324_s22 + $0x38] sm:$0xff] }
 0x714   :  { %1417 = vmatpush.bf16.msrb.mxu2 %v4899_v16  ;;  %v5990_v16 = vld [vmem:[%s8323_s29 + $0x74] sm:$0xf0] }
 0x715   :  { %1458 = vmatpush.bf16.msra.mxu1 %v4943_v12  ;;  %v5985_v12 = vld [vmem:[%s8323_s29 + $0x54] sm:$0xf] }
 0x71d   :  { %v1055_v20 = vpop.permute.xlu1 %1054 }
 0x71e   :  { %1067 = vmatpush.bf16.msra.mxu3 %v1055_v20  ;;  %v5988_v20 = vld [vmem:[%s8323_s29 + $0x64] sm:$0xf0] }
 0x721   :  { %4845 = vmatmul.msk.bf16.vlgmr.msra.gmra.mxu3 %vm603_vm0, %v1052_v21  ;;  %v4903_v21 = vor.u32 %v5983_v15, %v4900_v17  ;;  %v4922_v15 = vld [vmem:[%s8323_s29 + $0x58] sm:$0xf] }
 0x722   :  { %1429 = vmatpush.bf16.msrb.mxu3 %v4967_v58  ;;  %v5997_v58 = vld [vmem:[%s8323_s29 + $0xac] sm:$0xf0] }
 0x723   :  { %v4947_v61 = vor.u32 %v5997_v58, %v4946_v55  ;;  %v6030_v58 = vld [vmem:[%s8324_s22 + $0xb8] sm:$0xff] }
 0x726   :  { %1430 = vmatpush.bf16.msrb.mxu3 %v4935_v7  ;;  %v4914_v7 = vld [vmem:[%s8323_s29 + $0x50] sm:$0xf] }
 0x727   :  { %v4915_v14 = vor.u32 %v5989_v10, %v4914_v7  ;;  %v6011_v7 = vld [vmem:[%s8324_s22 + $0x20] sm:$0xff]  ;;  %v6034_v10 = vld [vmem:[%s8324_s22 + $0xd8] sm:$0xff] }
 0x72a   :  { %1431 = vmatpush.bf16.msrb.mxu3 %v4903_v21  ;;  %v5986_v21 = vld [vmem:[%s8323_s29 + $0x5c] sm:$0xf] }
 0x72d   :  { %v998_v22 = vpop.f32.mrf.mxu1 }
 0x735   :  { %v1000_v23 = vpop.f32.mrf.mxu1 }
 0x736   :  { %v1003_v24 = vpack.c.bf16 %v1000_v23, %v998_v22  ;;  %v4907_v22 = vor.u32 %v5988_v20, %v4906_v18  ;;  %v5984_v23 = vld [vmem:[%s8323_s29 + $0x4c] sm:$0xf]  ;;  %v4919_v18 = vor.u32 %v5985_v12, %v4916_v13  ;;  %v4923_v20 = vor.u32 %v5990_v16, %v4922_v15  ;;  %v6010_v12 = vld [vmem:[%s8324_s22 + $0x18] sm:$0xff]  ;;  %v6033_v15 = vld [vmem:[%s8324_s22 + $0xd0] sm:$0xff] }
 0x737   :  { %v6018_v13 = vld [vmem:[%s8324_s22 + $0x58] sm:$0xff]  ;;  %v6009_v16 = vld [vmem:[%s8324_s22 + $0x10] sm:$0xff] }
 0x738   :  { %4863 = vmatmul.msk.bf16.vlgmr.msrb.gmra.mxu1 %vm942_vm1, %v1003_v24  ;;  %v4908_v24 = vld [vmem:[%s8323_s29 + $0x68] sm:$0xf0]  ;;  %1445 = vmatpush.bf16.msra.mxu0 %v4907_v22  ;;  %v4924_v22 = vld [vmem:[%s8323_s29 + $0x78] sm:$0xf0] }
 0x739   :  { %v4911_v26 = vor.u32 %v5984_v23, %v4908_v24  ;;  %v4882_v23 = vld [vmem:[%s8323_s29 + $0x10] sm:$0xf]  ;;  %v4927_v24 = vor.u32 %v5986_v21, %v4924_v22  ;;  %v6023_v21 = vld [vmem:[%s8324_s22 + $0x80] sm:$0xff] }
 0x73a   :  { %v6031_v22 = vld [vmem:[%s8324_s22 + $0xc0] sm:$0xff] }
 0x73b   :  { %1459 = vmatpush.bf16.msra.mxu1 %v4911_v26  ;;  %v5977_v26 = vld [vmem:[%s8323_s29 + $0x14] sm:$0xf] }
 0x7a4   :  { %v1069_v27 = vpop.f32.mrf.mxu3 }
 0x7ac   :  { %v1071_v28 = vpop.f32.mrf.mxu3 }
 0x7ad   :  { %v1074_v29 = vpack.c.bf16 %v1071_v28, %v1069_v27  ;;  %v4866_v28 = vld [vmem:[%s8323_s29] sm:$0xf] }
 0x7af   :  { %4854 = vmatmul.msk.bf16.vlgmr.msrb.gmra.mxu0 %vm942_vm1, %v1074_v29  ;;  %v5979_v29 = vld [vmem:[%s8323_s29 + $0x1c] sm:$0xf0] }
 0x7b5   :  { %v1128_v30 = vpop.f32.mrf.mxu1 }
 0x7bd   :  { %v1130_v37 = vpop.f32.mrf.mxu1 }
 0x82c   :  { %v1099_v32 = vpop.f32.mrf.mxu0 }
 0x82d   :  { %v1129_v33 = vadd.f32 %v1128_v30, %v1099_v32  ;;  %v5975_v30 = vld [vmem:[%s8323_s29 + $0x4] sm:$0xf] }
 0x82e   :  { %v4868_v32 = vld [vmem:[%s8323_s29 + $0x20] sm:$0xf0] }
 0x82f   :  { %v1137_v34 = vadd.f32 %v6346_v31, %v1129_v33  ;;  %v4874_v33 = vld [vmem:[%s8323_s29 + $0x8] sm:$0xf] }
 0x831   :  { %v7647_v35 = vadd.f32 %v1137_v34, %v7584_v6  ;;  %v5980_v34 = vld [vmem:[%s8323_s29 + $0x24] sm:$0xf0] }
 0x833   :  { %v1143_v36 = vsel %vm715_vm8, %v7647_v35, 0.0 }
 0x834   :  { %1144 = vadd.xlane.f32.xlu2 %v1143_v36  ;;  %v1101_v38 = vpop.f32.mrf.mxu0 }
 0x835   :  { %v1131_v39 = vadd.f32 %v1130_v37, %v1101_v38  ;;  %v4871_v37 = vor.u32 %v5975_v30, %v4868_v32  ;;  %v4875_v38 = vor.u32 %v5980_v34, %v4874_v33  ;;  %v5982_v30 = vld [vmem:[%s8323_s29 + $0x34] sm:$0xf0]  ;;  %v5978_v32 = vld [vmem:[%s8323_s29 + $0x1c] sm:$0xf] }
 0x836   :  { %v4892_v33 = vld [vmem:[%s8323_s29 + $0x38] sm:$0xf0] }
 0x837   :  { %v1138_v40 = vadd.f32 %v6346_v31, %v1131_v39  ;;  %v4867_v31 = vor.u32 %v5979_v29, %v4866_v28  ;;  %v5976_v39 = vld [vmem:[%s8323_s29 + $0xc] sm:$0xf]  ;;  %1432 = vmatpush.bf16.msrb.mxu3 %v4871_v37  ;;  %1446 = vmatpush.bf16.msra.mxu0 %v4875_v38  ;;  %v4890_v29 = vld [vmem:[%s8323_s29 + $0x18] sm:$0xf] }
 0x838   :  { %v4891_v38 = vor.u32 %v5982_v30, %v4890_v29  ;;  %v6007_v29 = vld [vmem:[%s8324_s22] sm:$0xff] }
 0x839   :  { %v7652_v41 = vadd.f32 %v1138_v40, %v7588_v11  ;;  %v4876_v40 = vld [vmem:[%s8323_s29 + $0x28] sm:$0xf0]  ;;  %1418 = vmatpush.bf16.msrb.mxu2 %v4867_v31  ;;  %v6015_v30 = vld [vmem:[%s8324_s22 + $0x40] sm:$0xff] }
 0x83b   :  { %v1146_v42 = vsel %vm715_vm8, %v7652_v41, 0.0 }
 0x83c   :  { %1147 = vadd.xlane.f32.xlu0 %v1146_v42  ;;  %v4879_v42 = vor.u32 %v5976_v39, %v4876_v40  ;;  %v4895_v40 = vor.u32 %v5978_v32, %v4892_v33  ;;  %v6054_v32 = vld [vmem:[%s8324_s22 + $0x178] sm:$0xff]  ;;  %v6060_v33 = vld [vmem:[%s8324_s22 + $0x1a8] sm:$0xff] }
 0x83e   :  { %1460 = vmatpush.bf16.msra.mxu1 %v4879_v42 }
 0x842   :  { %1513 = vmatpush.bf16.msrb.mxu1 %v4991_v57 }
 0x846   :  { %1514 = vmatpush.bf16.msrb.mxu1 %v4959_v9  ;;  %v6026_v9 = vld [vmem:[%s8324_s22 + $0x98] sm:$0xff] }
 0x84a   :  { %1515 = vmatpush.bf16.msrb.mxu1 %v4927_v24  ;;  %v6070_v24 = vld [vmem:[%s8324_s22 + $0x1f8] sm:$0xff] }
 0x84e   :  { %1516 = vmatpush.bf16.msrb.mxu1 %v4895_v40  ;;  %v6067_v40 = vld [vmem:[%s8324_s22 + $0x1e0] sm:$0xff] }
 0x8a7   :  { %v1145_v6 = vpop.xlane.xlu2 %1144 }
 0x8a8   :  { %v1149_v43 = vmul.f32 %v1145_v6, %v7592_v19  ;;  %v4978_v6 = vld [vmem:[%s8323_s29 + $0xd0] sm:$0xf] }
 0x8aa   :  { %v7658_v44 = vsub.f32 %v7647_v35, %v1149_v43  ;;  %v6005_v43 = vld [vmem:[%s8323_s29 + $0xec] sm:$0xf0] }
 0x8ac   :  { %v1153_v45 = vmul.f32 %v7658_v44, %v7658_v44 }
 0x8ae   :  { %v1155_v11 = vsel %vm715_vm8, %v1153_v45, 0.0  ;;  %v6001_v45 = vld [vmem:[%s8323_s29 + $0xd4] sm:$0xf] }
 0x8af   :  { %1156 = vadd.xlane.f32.xlu2 %v1155_v11  ;;  %v1148_v46 = vpop.xlane.xlu0 %1147  ;;  %v4979_v11 = vor.u32 %v6005_v43, %v4978_v6 }
 0x8b0   :  { %v1150_v47 = vmul.f32 %v1148_v46, %v7592_v19  ;;  %v4980_v46 = vld [vmem:[%s8323_s29 + $0xf0] sm:$0xf0] }
 0x8b1   :  { %v4983_v51 = vor.u32 %v6001_v45, %v4980_v46  ;;  %1471 = vmatpush.bf16.msra.mxu2 %v4979_v11 }
 0x8b2   :  { %v7665_v48 = vsub.f32 %v7652_v41, %v1150_v47  ;;  %v4986_v47 = vld [vmem:[%s8323_s29 + $0xd8] sm:$0xf] }
 0x8b3   :  { %1485 = vmatpush.bf16.msra.mxu3 %v4983_v51  ;;  %v6348_v51 = vld [vmem:[#allocation26] ss:$0 sm:$0xff] }
 0x8b4   :  { %v1154_v49 = vmul.f32 %v7665_v48, %v7665_v48 }
 0x8b5   :  { %1472 = vmatpush.bf16.msra.mxu2 %v4947_v61  ;;  %v6037_v61 = vld [vmem:[%s8324_s22 + $0xf0] sm:$0xff] }
 0x8b6   :  { %v1158_v50 = vsel %vm715_vm8, %v1154_v49, 0.0  ;;  %v6006_v49 = vld [vmem:[%s8323_s29 + $0xf4] sm:$0xf0] }
 0x8b7   :  { %1159 = vadd.xlane.f32.xlu0 %v1158_v50  ;;  %v4987_v52 = vor.u32 %v6006_v49, %v4986_v47  ;;  %1486 = vmatpush.bf16.msra.mxu3 %v4951_v62  ;;  %v6347_v47 = vld [vmem:[#allocation28] ss:$0 sm:$0xff]  ;;  %v6013_v62 = vld [vmem:[%s8324_s22 + $0x30] sm:$0xff] }
 0x8b9   :  { %1499 = vmatpush.bf16.msrb.mxu0 %v4987_v52  ;;  %1473 = vmatpush.bf16.msra.mxu2 %v4915_v14  ;;  %v6025_v14 = vld [vmem:[%s8324_s22 + $0x90] sm:$0xff] }
 0x8bb   :  { %1487 = vmatpush.bf16.msra.mxu3 %v4919_v18  ;;  %v6024_v18 = vld [vmem:[%s8324_s22 + $0x88] sm:$0xff] }
 0x8bd   :  { %1500 = vmatpush.bf16.msrb.mxu0 %v4955_v4  ;;  %v6027_v4 = vld [vmem:[%s8324_s22 + $0xa0] sm:$0xff] }
 0x8c1   :  { %1501 = vmatpush.bf16.msrb.mxu0 %v4923_v20  ;;  %v6032_v20 = vld [vmem:[%s8324_s22 + $0xc8] sm:$0xff] }
 0x8c5   :  { %1502 = vmatpush.bf16.msrb.mxu0 %v4891_v38  ;;  %v6053_v38 = vld [vmem:[%s8324_s22 + $0x170] sm:$0xff] }
 0x922   :  { %v1157_v25 = vpop.xlane.xlu2 %1156 }
 0x923   :  { %v1161_v27 = vmul.f32 %v1157_v25, %v7592_v19  ;;  %v5981_v25 = vld [vmem:[%s8323_s29 + $0x2c] sm:$0xf0] }
 0x924   :  { %v4883_v31 = vor.u32 %v5981_v25, %v4882_v23  ;;  %v6062_v23 = vld [vmem:[%s8324_s22 + $0x1b8] sm:$0xff]  ;;  %v6008_v25 = vld [vmem:[%s8324_s22 + $0x8] sm:$0xff] }
 0x925   :  { %v7701_v36 = vadd.f32 1e-05, %v1161_v27  ;;  %v4884_v27 = vld [vmem:[%s8323_s29 + $0x30] sm:$0xf0]  ;;  %s8352_s29 = sld [smem:[#allocation55_spill]] }
 0x926   :  { %v4887_v37 = vor.u32 %v5977_v26, %v4884_v27  ;;  %1474 = vmatpush.bf16.msra.mxu2 %v4883_v31  ;;  %v6016_v26 = vld [vmem:[%s8324_s22 + $0x48] sm:$0xff]  ;;  %v6061_v27 = vld [vmem:[%s8324_s22 + $0x1b0] sm:$0xff]  ;;  %v6046_v31 = vld [vmem:[%s8324_s22 + $0x138] sm:$0xff] }
 0x927   :  { %6407 = vrsqrt.f32 %v7701_v36  ;;  %vm1171_vm3 = vweird.f32 %v7701_v36 }
 0x928   :  { %1488 = vmatpush.bf16.msra.mxu3 %v4887_v37  ;;  %v6045_v37 = vld [vmem:[%s8324_s22 + $0x130] sm:$0xff] }
 0x92a   :  { %v1160_v50 = vpop.xlane.xlu0 %1159 }
 0x92b   :  { %v1162_v56 = vmul.f32 %v1160_v50, %v7592_v19 }
 0x92d   :  { %v6408_v2 = vpop.eup %6407  ;;  %v1164_v3 = vadd.f32 1e-05, %v1162_v56 }
 0x92e   :  { %v1166_v8 = vmul.f32 %v6408_v2, %v7701_v36  ;;  %vm1172_vm2 = vweird.f32 %v6408_v2 }
 0x92f   :  { %6409 = vrsqrt.f32 %v1164_v3  ;;  %vm1173_vm4 = vmor %vm1171_vm3, %vm1172_vm2  ;;  %vm1181_vm6 = vweird.f32 %v1164_v3 }
 0x930   :  { %v1167_v17 = vmul.f32 %v6408_v2, %v1166_v8  ;;  %v6019_v8 = vld [vmem:[%s8324_s22 + $0x60] sm:$0xff] }
 0x932   :  { %v1168_v28 = vmul.f32 0.5, %v1167_v17  ;;  %v6017_v17 = vld [vmem:[%s8324_s22 + $0x50] sm:$0xff] }
 0x934   :  { %v1169_v34 = vsub.f32 1.5, %v1168_v28  ;;  %v6069_v28 = vld [vmem:[%s8324_s22 + $0x1f0] sm:$0xff] }
 0x935   :  { %v6410_v39 = vpop.eup %6409 }
 0x936   :  { %v1170_v42 = vmul.f32 %v6408_v2, %v1169_v34  ;;  %v1176_v6 = vmul.f32 %v6410_v39, %v1164_v3  ;;  %vm1182_vm5 = vweird.f32 %v6410_v39  ;;  %v6020_v3 = vld [vmem:[%s8324_s22 + $0x68] sm:$0xff] }
 0x937   :  { %vm1183_vm7 = vmor %vm1181_vm6, %vm1182_vm5  ;;  %v6068_v34 = vld [vmem:[%s8324_s22 + $0x1e8] sm:$0xff] }
 0x938   :  { %v1177_v43 = vmul.f32 %v6410_v39, %v1176_v6  ;;  %v1174_v45 = vsel %vm1173_vm4, %v6408_v2, %v1170_v42  ;;  %v6012_v2 = vld [vmem:[%s8324_s22 + $0x28] sm:$0xff] }
 0x939   :  { %v1185_v49 = vmul.f32 %v1174_v45, %v7658_v44  ;;  %v6022_v44 = vld [vmem:[%s8324_s22 + $0x78] sm:$0xff]  ;;  %v6044_v42 = vld [vmem:[%s8324_s22 + $0x128] sm:$0xff] }
 0x93a   :  { %v1178_v11 = vmul.f32 0.5, %v1177_v43  ;;  %v6052_v6 = vld [vmem:[%s8324_s22 + $0x168] sm:$0xff]  ;;  %v6058_v43 = vld [vmem:[%s8324_s22 + $0x198] sm:$0xff] }
 0x93b   :  { %v1190_v52 = vmul.f32 %v6347_v47, %v1185_v49  ;;  %v6066_v45 = vld [vmem:[%s8324_s22 + $0x1d8] sm:$0xff]  ;;  %v6065_v49 = vld [vmem:[%s8324_s22 + $0x1d0] sm:$0xff] }
 0x93c   :  { %v1179_v46 = vsub.f32 1.5, %v1178_v11  ;;  %v6043_v11 = vld [vmem:[%s8324_s22 + $0x120] sm:$0xff] }
 0x93d   :  { %v1195_v55 = vadd.f32 %v6348_v51, %v1190_v52  ;;  %v6064_v52 = vld [vmem:[%s8324_s22 + $0x1c8] sm:$0xff] }
 0x93e   :  { %v1180_v50 = vmul.f32 %v6410_v39, %v1179_v46  ;;  %v6051_v46 = vld [vmem:[%s8324_s22 + $0x160] sm:$0xff] }
 0x940   :  { %v1184_v36 = vsel %vm1183_vm7, %v6410_v39, %v1180_v50  ;;  %v6059_v39 = vld [vmem:[%s8324_s22 + $0x1a0] sm:$0xff]  ;;  %v6042_v50 = vld [vmem:[%s8324_s22 + $0x118] sm:$0xff] }
 0x941   :  { %v1186_v53 = vmul.f32 %v1184_v36, %v7665_v48  ;;  %v6029_v48 = vld [vmem:[%s8324_s22 + $0xb0] sm:$0xff]  ;;  %v6050_v36 = vld [vmem:[%s8324_s22 + $0x158] sm:$0xff] }
 0x943   :  { %v1191_v54 = vmul.f32 %v6347_v47, %v1186_v53  ;;  %v6057_v47 = vld [vmem:[%s8324_s22 + $0x190] sm:$0xff] }
 0x944   :  { %v6041_v53 = vld [vmem:[%s8324_s22 + $0x110] sm:$0xff] }
 0x945   :  { %v1196_v56 = vadd.f32 %v6348_v51, %v1191_v54  ;;  %v6056_v51 = vld [vmem:[%s8324_s22 + $0x188] sm:$0xff]  ;;  %v6049_v54 = vld [vmem:[%s8324_s22 + $0x150] sm:$0xff] }
 0x947   :  { %v1229_v57 = vpack.c.bf16 %v1196_v56, %v1195_v55  ;;  %v6055_v55 = vld [vmem:[%s8324_s22 + $0x180] sm:$0xff] }
 0x948   :  { %v6063_v56 = vld [vmem:[%s8324_s22 + $0x1c0] sm:$0xff] }
 0x949   :  { %4992 = vmatmul.msk.bf16.vlgmr.msrb.gmra.mxu2 %vm715_vm8, %v1229_v57  ;;  %4993 = vmatmul.msk.bf16.vlgmr.msrb.gmra.mxu3 %vm715_vm8, %v1229_v57 }
 0x94a   :  { %4994 = vmatmul.msk.bf16.vlgmr.msra.gmra.mxu0 %vm715_vm8, %v1229_v57  ;;  %4995 = vmatmul.msk.bf16.vlgmr.msra.gmra.mxu1 %vm715_vm8, %v1229_v57 }
 0x94b   :  { %2091 = vmatpush.bf16.msra.mxu0 %v6030_v58  ;;  %2105 = vmatpush.bf16.msra.mxu1 %v6038_v59  ;;  %v6048_v58 = vld [vmem:[%s8324_s22 + $0x148] sm:$0xff]  ;;  %v7814_v59 = vld [vmem:[%s8325_s26] sm:$0xff]  ;;  %s8354_s26 = sld [smem:[#allocation100_spill]] }
 0x94c   :  { %2063 = vmatpush.bf16.msrb.mxu2 %v6014_v60  ;;  %2077 = vmatpush.bf16.msrb.mxu3 %v6022_v44 }
 0x94f   :  { %2092 = vmatpush.bf16.msra.mxu0 %v6029_v48  ;;  %2106 = vmatpush.bf16.msra.mxu1 %v6037_v61  ;;  %v6039_v48 = vld [vmem:[%s8324_s22 + $0x100] sm:$0xff] }
 0x950   :  { %2064 = vmatpush.bf16.msrb.mxu2 %v6013_v62  ;;  %2078 = vmatpush.bf16.msrb.mxu3 %v6021_v63  ;;  %v6047_v61 = vld [vmem:[%s8324_s22 + $0x140] sm:$0xff]  ;;  %v1234_v62 = vperm.slane %v7814_v59, 2  ;;  %v1235_v63 = vperm.slane %v7814_v59, 3 }
 0x953   :  { %2093 = vmatpush.bf16.msra.mxu0 %v6028_v0  ;;  %2107 = vmatpush.bf16.msra.mxu1 %v6036_v1 }
 0x954   :  { %2065 = vmatpush.bf16.msrb.mxu2 %v6012_v2  ;;  %2079 = vmatpush.bf16.msrb.mxu3 %v6020_v3 }
 0x957   :  { %2094 = vmatpush.bf16.msra.mxu0 %v6027_v4  ;;  %2108 = vmatpush.bf16.msra.mxu1 %v6035_v5  ;;  %v1232_v4 = vperm.slane %v7814_v59, 0  ;;  %v1233_v5 = vperm.slane %v7814_v59, 1 }
 0x958   :  { %2066 = vmatpush.bf16.msrb.mxu2 %v6011_v7  ;;  %2080 = vmatpush.bf16.msrb.mxu3 %v6019_v8 }
 0x959   :  { %4996 = vmatmul.msk.bf16.vlgmr.msra.gmra.mxu2 %vm715_vm8, %v1229_v57  ;;  %4997 = vmatmul.msk.bf16.vlgmr.msra.gmra.mxu3 %vm715_vm8, %v1229_v57 }
 0x95a   :  { %4998 = vmatmul.msk.bf16.vlgmr.msrb.gmra.mxu0 %vm715_vm8, %v1229_v57  ;;  %4999 = vmatmul.msk.bf16.vlgmr.msrb.gmra.mxu1 %vm715_vm8, %v1229_v57  ;;  %v6040_v57 = vld [vmem:[%s8324_s22 + $0x108] sm:$0xff]  ;;  %s8353_s22 = sld [smem:[#allocation99_spill]] }
 0x95b   :  { %2095 = vmatpush.bf16.msra.mxu0 %v6026_v9  ;;  %2109 = vmatpush.bf16.msra.mxu1 %v6034_v10 }
 0x95c   :  { %2067 = vmatpush.bf16.msrb.mxu2 %v6010_v12  ;;  %2081 = vmatpush.bf16.msrb.mxu3 %v6018_v13 }
 0x95f   :  { %2096 = vmatpush.bf16.msra.mxu0 %v6025_v14  ;;  %2110 = vmatpush.bf16.msra.mxu1 %v6033_v15 }
 0x960   :  { %2068 = vmatpush.bf16.msrb.mxu2 %v6009_v16  ;;  %2082 = vmatpush.bf16.msrb.mxu3 %v6017_v17 }
 0x963   :  { %2097 = vmatpush.bf16.msra.mxu0 %v6024_v18  ;;  %2111 = vmatpush.bf16.msra.mxu1 %v6032_v20 }
 0x964   :  { %2069 = vmatpush.bf16.msrb.mxu2 %v6008_v25  ;;  %2083 = vmatpush.bf16.msrb.mxu3 %v6016_v26 }
 0x967   :  { %2098 = vmatpush.bf16.msra.mxu0 %v6023_v21  ;;  %2112 = vmatpush.bf16.msra.mxu1 %v6031_v22 }
 0x968   :  { %2070 = vmatpush.bf16.msrb.mxu2 %v6007_v29  ;;  %2084 = vmatpush.bf16.msrb.mxu3 %v6015_v30 }
 0x96b   :  { %2147 = vmatpush.bf16.msrb.mxu0 %v6062_v23  ;;  %2161 = vmatpush.bf16.msrb.mxu1 %v6070_v24 }
 0x96c   :  { %2119 = vmatpush.bf16.msra.mxu2 %v6046_v31  ;;  %2133 = vmatpush.bf16.msra.mxu3 %v6054_v32 }
 0x96f   :  { %2148 = vmatpush.bf16.msrb.mxu0 %v6061_v27  ;;  %2162 = vmatpush.bf16.msrb.mxu1 %v6069_v28 }
 0x970   :  { %2120 = vmatpush.bf16.msra.mxu2 %v6045_v37  ;;  %2134 = vmatpush.bf16.msra.mxu3 %v6053_v38 }
 0x973   :  { %2149 = vmatpush.bf16.msrb.mxu0 %v6060_v33  ;;  %2163 = vmatpush.bf16.msrb.mxu1 %v6068_v34  ;;  %v1238_v33 = vperm.slane %v7814_v59, 6  ;;  %v1239_v34 = vperm.slane %v7814_v59, 7 }
 0x974   :  { %2121 = vmatpush.bf16.msra.mxu2 %v6044_v42  ;;  %2135 = vmatpush.bf16.msra.mxu3 %v6052_v6  ;;  %v1236_v42 = vperm.slane %v7814_v59, 4  ;;  %v1237_v6 = vperm.slane %v7814_v59, 5 }
 0x977   :  { %2150 = vmatpush.bf16.msrb.mxu0 %v6059_v39  ;;  %2164 = vmatpush.bf16.msrb.mxu1 %v6067_v40 }
 0x978   :  { %2122 = vmatpush.bf16.msra.mxu2 %v6043_v11  ;;  %2136 = vmatpush.bf16.msra.mxu3 %v6051_v46 }
 0x97b   :  { %2151 = vmatpush.bf16.msrb.mxu0 %v6058_v43  ;;  %2165 = vmatpush.bf16.msrb.mxu1 %v6066_v45 }
 0x97c   :  { %2123 = vmatpush.bf16.msra.mxu2 %v6042_v50  ;;  %2137 = vmatpush.bf16.msra.mxu3 %v6050_v36 }
 0x97f   :  { %2152 = vmatpush.bf16.msrb.mxu0 %v6057_v47  ;;  %2166 = vmatpush.bf16.msrb.mxu1 %v6065_v49 }
 0x980   :  { %2124 = vmatpush.bf16.msra.mxu2 %v6041_v53  ;;  %2138 = vmatpush.bf16.msra.mxu3 %v6049_v54 }
 0x983   :  { %2153 = vmatpush.bf16.msrb.mxu0 %v6056_v51  ;;  %2167 = vmatpush.bf16.msrb.mxu1 %v6064_v52 }
 0x984   :  { %2125 = vmatpush.bf16.msra.mxu2 %v6040_v57  ;;  %2139 = vmatpush.bf16.msra.mxu3 %v6048_v58 }
 0x987   :  { %2154 = vmatpush.bf16.msrb.mxu0 %v6055_v55  ;;  %2168 = vmatpush.bf16.msrb.mxu1 %v6063_v56 }
 0x988   :  { %2126 = vmatpush.bf16.msra.mxu2 %v6039_v48  ;;  %2140 = vmatpush.bf16.msra.mxu3 %v6047_v61 }
 0x9c7   :  { %v1448_v60 = vpop.f32.mrf.mxu0  ;;  %v1462_v44 = vpop.f32.mrf.mxu1 }
 0x9c8   :  { %v1449_v2 = vadd.f32 %v1448_v60, %v1234_v62  ;;  %v1463_v3 = vadd.f32 %v1462_v44, %v1235_v63 }
 0x9ca   :  { %v1525_v12 = vmax.f32 %v1449_v2, 0.0  ;;  %v1526_v13 = vmax.f32 %v1463_v3, 0.0 }
 0x9cc   :  { %v1420_v0 = vpop.f32.mrf.mxu2  ;;  %v1434_v1 = vpop.f32.mrf.mxu3 }
 0x9cd   :  { %v1421_v16 = vadd.f32 %v1420_v0, %v1232_v4  ;;  %v1435_v17 = vadd.f32 %v1434_v1, %v1233_v5  ;;  %v6349_v1 = vld [vmem:[#allocation22] ss:$0 sm:$0xff] }
 0x9cf   :  { %v1450_v7 = vpop.f32.mrf.mxu0  ;;  %v1464_v8 = vpop.f32.mrf.mxu1  ;;  %v1523_v25 = vmax.f32 %v1421_v16, 0.0  ;;  %v1524_v26 = vmax.f32 %v1435_v17, 0.0 }
 0x9d0   :  { %v1451_v9 = vadd.f32 %v1450_v7, %v1234_v62  ;;  %v1465_v10 = vadd.f32 %v1464_v8, %v1235_v63 }
 0x9d2   :  { %v1533_v14 = vmax.f32 %v1451_v9, 0.0  ;;  %v1534_v15 = vmax.f32 %v1465_v10, 0.0 }
 0x9d4   :  { %v1669_v18 = vpack.c.bf16 %v1533_v14, %v1525_v12  ;;  %v1670_v20 = vpack.c.bf16 %v1534_v15, %v1526_v13  ;;  %v1422_v21 = vpop.f32.mrf.mxu2  ;;  %v1436_v22 = vpop.f32.mrf.mxu3 }
 0x9d5   :  { %v1423_v23 = vadd.f32 %v1422_v21, %v1232_v4  ;;  %v1437_v24 = vadd.f32 %v1436_v22, %v1233_v5 }
 0x9d6   :  { %2099 = vmatmul.bf16.vlgmr.msra.gmra.mxu0 %v1669_v18  ;;  %2113 = vmatmul.bf16.vlgmr.msra.gmra.mxu1 %v1670_v20 }
 0x9d7   :  { %v1531_v27 = vmax.f32 %v1423_v23, 0.0  ;;  %v1532_v28 = vmax.f32 %v1437_v24, 0.0  ;;  %v1504_v29 = vpop.f32.mrf.mxu0  ;;  %v1518_v30 = vpop.f32.mrf.mxu1 }
 0x9d8   :  { %v1505_v39 = vadd.f32 %v1504_v29, %v1238_v33  ;;  %v1519_v40 = vadd.f32 %v1518_v30, %v1239_v34 }
 0x9d9   :  { %v1667_v31 = vpack.c.bf16 %v1531_v27, %v1523_v25  ;;  %v1668_v32 = vpack.c.bf16 %v1532_v28, %v1524_v26 }
 0x9da   :  { %v1529_v47 = vmax.f32 %v1505_v39, 0.0  ;;  %v1530_v49 = vmax.f32 %v1519_v40, 0.0 }
 0x9db   :  { %2071 = vmatmul.bf16.vlgmr.msrb.gmra.mxu2 %v1667_v31  ;;  %2085 = vmatmul.bf16.vlgmr.msrb.gmra.mxu3 %v1668_v32 }
 0x9dc   :  { %v1476_v37 = vpop.f32.mrf.mxu2  ;;  %v1490_v38 = vpop.f32.mrf.mxu3 }
 0x9dd   :  { %v1477_v51 = vadd.f32 %v1476_v37, %v1236_v42  ;;  %v1491_v52 = vadd.f32 %v1490_v38, %v1237_v6 }
 0x9df   :  { %v1506_v43 = vpop.f32.mrf.mxu0  ;;  %v1520_v45 = vpop.f32.mrf.mxu1  ;;  %v1527_v60 = vmax.f32 %v1477_v51, 0.0  ;;  %v1528_v59 = vmax.f32 %v1491_v52, 0.0  ;;  %v6082_v51 = vld [vmem:[%s8328_s20 + $0x18] sm:$0xff]  ;;  %v6073_v52 = vld [vmem:[%s8326_s1 + $0x10] sm:$0xff] }
 0x9e0   :  { %v1507_v11 = vadd.f32 %v1506_v43, %v1238_v33  ;;  %v1521_v46 = vadd.f32 %v1520_v45, %v1239_v34  ;;  %2377 = vmatpush.bf16.msra.mxu0 %v6082_v51  ;;  %v599_v51 = vld [vmem:[%s8331_s3] sm:$0xff] }
 0x9e2   :  { %v1537_v50 = vmax.f32 %v1507_v11, 0.0  ;;  %v1538_v36 = vmax.f32 %v1521_v46, 0.0 }
 0x9e4   :  { %v1673_v53 = vpack.c.bf16 %v1537_v50, %v1529_v47  ;;  %v1674_v54 = vpack.c.bf16 %v1538_v36, %v1530_v49  ;;  %v1478_v55 = vpop.f32.mrf.mxu2  ;;  %v1492_v56 = vpop.f32.mrf.mxu3  ;;  %v6074_v50 = vld [vmem:[%s8326_s1 + $0x18] sm:$0xff] }
 0x9e5   :  { %v1479_v57 = vadd.f32 %v1478_v55, %v1236_v42  ;;  %v1493_v58 = vadd.f32 %v1492_v56, %v1237_v6  ;;  %v6078_v36 = vld [vmem:[%s8327_s19 + $0x18] sm:$0xff]  ;;  %2277 = vmatpush.bf16.msrb.mxu2 %v6074_v50  ;;  %v6072_v55 = vld [vmem:[%s8326_s1 + $0x8] sm:$0xff] }
 0x9e6   :  { %2155 = vmatmul.bf16.vlgmr.msrb.gmra.mxu0 %v1673_v53  ;;  %2169 = vmatmul.bf16.vlgmr.msrb.gmra.mxu1 %v1674_v54  ;;  %v6077_v53 = vld [vmem:[%s8327_s19 + $0x10] sm:$0xff]  ;;  %v6076_v56 = vld [vmem:[%s8327_s19 + $0x8] sm:$0xff] }
 0x9e7   :  { %v1535_v44 = vmax.f32 %v1479_v57, 0.0  ;;  %v1536_v48 = vmax.f32 %v1493_v58, 0.0  ;;  %2327 = vmatpush.bf16.msrb.mxu3 %v6078_v36  ;;  %v6081_v54 = vld [vmem:[%s8328_s20 + $0x10] sm:$0xff]  ;;  %v6080_v57 = vld [vmem:[%s8328_s20 + $0x8] sm:$0xff] }
 0x9e8   :  { %2378 = vmatpush.bf16.msra.mxu0 %v6081_v54 }
 0x9e9   :  { %v1671_v61 = vpack.c.bf16 %v1535_v44, %v1527_v60  ;;  %v1672_v62 = vpack.c.bf16 %v1536_v48, %v1528_v59  ;;  %2278 = vmatpush.bf16.msrb.mxu2 %v6073_v52  ;;  %v6071_v44 = vld [vmem:[%s8326_s1] sm:$0xff]  ;;  %s8355_s1 = sld [smem:[#allocation61_spill]] }
 0x9ea   :  { %v6075_v48 = vld [vmem:[%s8327_s19] sm:$0xff]  ;;  %s8356_s19 = sld [smem:[#allocation58_spill]] }
 0x9eb   :  { %2127 = vmatmul.bf16.vlgmr.msra.gmra.mxu2 %v1671_v61  ;;  %2141 = vmatmul.bf16.vlgmr.msra.gmra.mxu3 %v1672_v62  ;;  %v6079_v61 = vld [vmem:[%s8328_s20] sm:$0xff]  ;;  %s8357_s20 = sld [smem:[#allocation57_spill]] }
 0x9ec   :  { %2328 = vmatpush.bf16.msrb.mxu3 %v6077_v53  ;;  %2379 = vmatpush.bf16.msra.mxu0 %v6080_v57 }
 0x9ed   :  { %2279 = vmatpush.bf16.msrb.mxu2 %v6072_v55  ;;  %v600_v55 = vld [vmem:[%s8331_s3 + $0x8] sm:$0xff] }
 0x9f0   :  { %2329 = vmatpush.bf16.msrb.mxu3 %v6076_v56  ;;  %2380 = vmatpush.bf16.msra.mxu0 %v6079_v61 }
 0x9f1   :  { %2280 = vmatpush.bf16.msrb.mxu2 %v6071_v44 }
 0x9f4   :  { %2330 = vmatpush.bf16.msrb.mxu3 %v6075_v48 }
 0xa53   :  { %v2100_v63 = vpop.f32.mrf.mxu0  ;;  %v2114_v0 = vpop.f32.mrf.mxu1 }
 0xa5b   :  { %v2102_v5 = vpop.f32.mrf.mxu0  ;;  %v2116_v10 = vpop.f32.mrf.mxu1 }
 0xa5e   :  { %v2072_v2 = vpop.f32.mrf.mxu2  ;;  %v2086_v3 = vpop.f32.mrf.mxu3 }
 0xa5f   :  { %v2073_v4 = vadd.f32 %v6349_v1, %v2072_v2 }
 0xa61   :  { %v2087_v7 = vadd.f32 %v2086_v3, %v2073_v4 }
 0xa63   :  { %v2101_v12 = vadd.f32 %v2100_v63, %v2087_v7  ;;  %v2156_v20 = vpop.f32.mrf.mxu0  ;;  %v2170_v23 = vpop.f32.mrf.mxu1 }
 0xa65   :  { %v2115_v15 = vadd.f32 %v2114_v0, %v2101_v12 }
 0xa66   :  { %v2074_v8 = vpop.f32.mrf.mxu2  ;;  %v2088_v9 = vpop.f32.mrf.mxu3 }
 0xa67   :  { %v2075_v13 = vadd.f32 %v6349_v1, %v2074_v8 }
 0xa69   :  { %v2089_v14 = vadd.f32 %v2088_v9, %v2075_v13 }
 0xa6b   :  { %v2103_v21 = vadd.f32 %v2102_v5, %v2089_v14  ;;  %v2158_v33 = vpop.f32.mrf.mxu0  ;;  %v2172_v37 = vpop.f32.mrf.mxu1 }
 0xa6d   :  { %v2117_v26 = vadd.f32 %v2116_v10, %v2103_v21 }
 0xa6e   :  { %v2128_v16 = vpop.f32.mrf.mxu2  ;;  %v2142_v17 = vpop.f32.mrf.mxu3 }
 0xa6f   :  { %v2129_v18 = vadd.f32 %v2128_v16, %v2115_v15  ;;  %v6350_v15 = vld [vmem:[%s8329_s28] ss:$0 sm:$0xff]  ;;  %s8358_s28 = sld [smem:[#allocation56_spill]] }
 0xa71   :  { %v2143_v22 = vadd.f32 %v2142_v17, %v2129_v18 }
 0xa73   :  { %v2157_v24 = vadd.f32 %v2156_v20, %v2143_v22  ;;  %v6351_v20 = vld [vmem:[%s8330_s2] ss:$0 sm:$0xff]  ;;  %s8359_s2 = sld [smem:[#allocation101_spill]] }
 0xa75   :  { %v2171_v25 = vadd.f32 %v2170_v23, %v2157_v24 }
 0xa76   :  { %v2130_v27 = vpop.f32.mrf.mxu2  ;;  %v2144_v30 = vpop.f32.mrf.mxu3 }
 0xa77   :  { %v7827_v28 = vadd.f32 %v2171_v25, %v7647_v35  ;;  %v2131_v29 = vadd.f32 %v2130_v27, %v2117_v26 }
 0xa79   :  { %v2145_v31 = vadd.f32 %v2144_v30, %v2131_v29  ;;  %v2179_v32 = vsel %vm715_vm8, %v7827_v28, 0.0  ;;  %v6352_v29 = vld [vmem:[#allocation10] ss:$0 sm:$0xff] }
 0xa7a   :  { %2180 = vadd.xlane.f32.xlu1 %v2179_v32 }
 0xa7b   :  { %v2159_v34 = vadd.f32 %v2158_v33, %v2145_v31 }
 0xa7d   :  { %v2173_v38 = vadd.f32 %v2172_v37, %v2159_v34  ;;  %v6353_v37 = vld [vmem:[#allocation8] ss:$0 sm:$0xff] }
 0xa7f   :  { %v7832_v39 = vadd.f32 %v2173_v38, %v7652_v41  ;;  %v6354_v38 = vld [vmem:[#allocation5] ss:$0 sm:$0xff] }
 0xa81   :  { %v2182_v35 = vsel %vm715_vm8, %v7832_v39, 0.0 }
 0xa82   :  { %2183 = vadd.xlane.f32.xlu2 %v2182_v35 }
 0xaed   :  { %v2181_v40 = vpop.xlane.xlu1 %2180 }
 0xaee   :  { %v2185_v42 = vmul.f32 %v2181_v40, %v7592_v19 }
 0xaf0   :  { %v2187_v6 = vsub.f32 %v7827_v28, %v2185_v42 }
 0xaf2   :  { %v2189_v43 = vmul.f32 %v2187_v6, %v2187_v6 }
 0xaf4   :  { %v2191_v45 = vsel %vm715_vm8, %v2189_v43, 0.0 }
 0xaf5   :  { %v2184_v11 = vpop.xlane.xlu2 %2183  ;;  %2192 = vadd.xlane.f32.xlu0 %v2191_v45 }
 0xaf6   :  { %v2186_v41 = vmul.f32 %v2184_v11, %v7592_v19 }
 0xaf8   :  { %v2188_v46 = vsub.f32 %v7832_v39, %v2186_v41 }
 0xafa   :  { %v2190_v47 = vmul.f32 %v2188_v46, %v2188_v46 }
 0xafc   :  { %v2194_v49 = vsel %vm715_vm8, %v2190_v47, 0.0 }
 0xafd   :  { %2195 = vadd.xlane.f32.xlu2 %v2194_v49 }
 0xb68   :  { %v2193_v58 = vpop.xlane.xlu0 %2192 }
 0xb69   :  { %v2197_v60 = vmul.f32 %v2193_v58, %v7592_v19 }
 0xb6b   :  { %v2199_v59 = vadd.f32 1e-05, %v2197_v60 }
 0xb6d   :  { %6411 = vrsqrt.f32 %v2199_v59  ;;  %vm2207_vm10 = vweird.f32 %v2199_v59 }
 0xb70   :  { %v2196_v62 = vpop.xlane.xlu2 %2195 }
 0xb71   :  { %v2198_v63 = vmul.f32 %v2196_v62, %v7592_v19 }
 0xb73   :  { %v6412_v0 = vpop.eup %6411  ;;  %v2200_v1 = vadd.f32 1e-05, %v2198_v63 }
 0xb74   :  { %v2202_v2 = vmul.f32 %v6412_v0, %v2199_v59  ;;  %vm2208_vm9 = vweird.f32 %v6412_v0 }
 0xb75   :  { %6413 = vrsqrt.f32 %v2200_v1  ;;  %vm2209_vm11 = vmor %vm2207_vm10, %vm2208_vm9  ;;  %vm2217_vm13 = vweird.f32 %v2200_v1 }
 0xb76   :  { %v2203_v3 = vmul.f32 %v6412_v0, %v2202_v2 }
 0xb78   :  { %v2204_v4 = vmul.f32 0.5, %v2203_v3 }
 0xb7a   :  { %v2205_v5 = vsub.f32 1.5, %v2204_v4 }
 0xb7b   :  { %v6414_v7 = vpop.eup %6413 }
 0xb7c   :  { %v2206_v8 = vmul.f32 %v6412_v0, %v2205_v5  ;;  %v2212_v9 = vmul.f32 %v6414_v7, %v2200_v1  ;;  %vm2218_vm12 = vweird.f32 %v6414_v7 }
 0xb7d   :  { %vm2219_vm14 = vmor %vm2217_vm13, %vm2218_vm12  ;;  %vm4399_vm13 = vcmask 123904  }
 0xb7e   :  { %v2213_v10 = vmul.f32 %v6414_v7, %v2212_v9  ;;  %v2210_v12 = vsel %vm2209_vm11, %v6412_v0, %v2206_v8 }
 0xb7f   :  { %v2221_v16 = vmul.f32 %v2210_v12, %v2187_v6 }
 0xb80   :  { %v2214_v13 = vmul.f32 0.5, %v2213_v10 }
 0xb81   :  { %v2226_v21 = vmul.f32 %v6350_v15, %v2221_v16 }
 0xb82   :  { %v2215_v14 = vsub.f32 1.5, %v2214_v13 }
 0xb83   :  { %v2231_v24 = vadd.f32 %v6351_v20, %v2226_v21 }
 0xb84   :  { %v2216_v17 = vmul.f32 %v6414_v7, %v2215_v14 }
 0xb86   :  { %v2220_v18 = vsel %vm2219_vm14, %v6414_v7, %v2216_v17 }
 0xb87   :  { %v2222_v22 = vmul.f32 %v2220_v18, %v2188_v46 }
 0xb89   :  { %v2227_v23 = vmul.f32 %v6350_v15, %v2222_v22 }
 0xb8b   :  { %v2232_v25 = vadd.f32 %v6351_v20, %v2227_v23 }
 0xb8d   :  { %v2241_v26 = vpack.c.bf16 %v2232_v25, %v2231_v24 }
 0xb8f   :  { %5272 = vmatmul.msk.bf16.vlgmr.msrb.gmra.mxu2 %vm715_vm8, %v2241_v26  ;;  %5289 = vmatmul.msk.bf16.vlgmr.msrb.gmra.mxu3 %vm715_vm8, %v2241_v26 }
 0xb90   :  { %5306 = vmatmul.msk.bf16.vlgmr.msra.gmra.mxu0 %vm715_vm8, %v2241_v26 }
 0xc0d   :  { %v2382_v27 = vpop.f32.mrf.mxu0 }
 0xc0e   :  { %v2383_v33 = vadd.f32 %v6352_v29, %v2382_v27 }
 0xc12   :  { %v2282_v30 = vpop.f32.mrf.mxu2  ;;  %v2332_v31 = vpop.f32.mrf.mxu3 }
 0xc13   :  { %v2283_v6 = vadd.f32 %v6353_v37, %v2282_v30  ;;  %v2333_v43 = vadd.f32 %v6354_v38, %v2332_v31  ;;  %v6094_v31 = vld [vmem:[%s8332_s24 + $0x18] sm:$0xff] }
 0xc15   :  { %v2384_v32 = vpop.f32.mrf.mxu0 }
 0xc16   :  { %v2385_v34 = vadd.f32 %v6352_v29, %v2384_v32  ;;  %v6093_v32 = vld [vmem:[%s8332_s24 + $0x10] sm:$0xff] }
 0xc18   :  { %v2397_v35 = vpack.c.bf16 %v2385_v34, %v2383_v33  ;;  %v6092_v33 = vld [vmem:[%s8332_s24 + $0x8] sm:$0xff]  ;;  %v6091_v34 = vld [vmem:[%s8332_s24] sm:$0xff] }
 0xc1a   :  { %2451 = vmatpush.bf16.msra.mxu2 %v2397_v35  ;;  %v2284_v40 = vpop.f32.mrf.mxu2  ;;  %v2334_v42 = vpop.f32.mrf.mxu3 }
 0xc1b   :  { %v2285_v45 = vadd.f32 %v6353_v37, %v2284_v40  ;;  %v2335_v11 = vadd.f32 %v6354_v38, %v2334_v42  ;;  %v6084_v38 = vld [vmem:[%s8333_s21 + $0x8] sm:$0xff]  ;;  %v6083_v42 = vld [vmem:[%s8333_s21] sm:$0xff] }
 0xc1d   :  { %v2395_v41 = vpack.c.bf16 %v2285_v45, %v2283_v6  ;;  %v2396_v46 = vpack.c.bf16 %v2335_v11, %v2333_v43 }
 0xc1e   :  { %2580 = vmatpush.bf16.msrb.mxu2 %v6084_v38 }
 0xc1f   :  { %2463 = vrot.lane.b32.xlu0 %v2396_v46, %s7151_s17  ;;  %2460 = vrot.lane.b32.xlu2 %v2395_v41, %s7151_s17  ;;  %v2402_v47 = vsel %vm942_vm1, %v2396_v46, 0 }
 0xc20   :  { %2411 = vmatpush.bf16.xpose.msra.mxu1 %v2402_v47 }
 0xc22   :  { %2581 = vmatpush.bf16.msrb.mxu2 %v6083_v42 }
 0xc27   :  { %5307 = vmatmul.msk.bf16.vlgmr.msra.gmra.mxu1 %vm942_vm1, %v2395_v41  ;;  %v7888_v41 = vpack.c.bf16 %v7832_v39, %v7827_v28 }
 0xc79   :  { %v2461_v36 = vpop.permute.xlu2 %2460 }
 0xc91   :  { %v2464_v49 = vpop.permute.xlu0 %2463 }
 0xc92   :  { %v2469_v50 = vsel %vm942_vm1, %v2464_v49, 0 }
 0xc93   :  { %2478 = vmatpush.bf16.xpose.msra.mxu3 %v2469_v50  ;;  %v6086_v50 = vld [vmem:[%s8333_s21 + $0x18] sm:$0xff] }
 0xc94   :  { %2551 = vmatpush.bf16.msrb.mxu1 %v6086_v50 }
 0xc9a   :  { %5309 = vmatmul.msk.bf16.vlgmr.msra.gmra.mxu3 %vm942_vm1, %v2461_v36  ;;  %v6085_v36 = vld [vmem:[%s8333_s21 + $0x10] sm:$0xff] }
 0xc9b   :  { %2552 = vmatpush.bf16.msrb.mxu1 %v6085_v36 }
 0xca4   :  { %v2413_v52 = vpop.f32.mrf.mxu1 }
 0xca5   :  { %v2414_v53 = vadd.f32 %v2413_v52, %v599_v51  ;;  %v6097_v52 = vld [vmem:[%s8334_s7 + $0x10] sm:$0xff] }
 0xca7   :  { %v2418_v54 = vsel %vm603_vm0, %v2414_v53, -inf }
 0xca8   :  { %2419 = vmax.xlane.f32.xlu0 %v2418_v54  ;;  %v6095_v54 = vld [vmem:[%s8334_s7] sm:$0xff] }
 0xcac   :  { %v2415_v56 = vpop.f32.mrf.mxu1 }
 0xcad   :  { %v2416_v57 = vadd.f32 %v2415_v56, %v600_v55 }
 0xcaf   :  { %v2421_v58 = vsel %vm603_vm0, %v2416_v57, -inf }
 0xcb0   :  { %2422 = vmax.xlane.f32.xlu2 %v2421_v58 }
 0xcc8   :  { %2509 = vrot.lane.b32.xlu2 %v2397_v35, %s7151_s17 }
 0xd1b   :  { %v2420_v60 = vpop.xlane.xlu0 %2419 }
 0xd1c   :  { %v2424_v48 = vsub.f32 %v2414_v53, %v2420_v60  ;;  %v6096_v53 = vld [vmem:[%s8334_s7 + $0x8] sm:$0xff]  ;;  %v6355_v60 = vld [vmem:[%s8335_s25] ss:$0 sm:$0xff] }
 0xd1d   :  { %v2480_v59 = vpop.f32.mrf.mxu3 }
 0xd1e   :  { %v2481_v44 = vadd.f32 %v2480_v59, %v599_v51  ;;  %v2426_v62 = vmul.f32 1.442695, %v2424_v48  ;;  %v6098_v51 = vld [vmem:[%s8334_s7 + $0x18] sm:$0xff] }
 0xd1f   :  { %2800 = vmatpush.bf16.msra.mxu1 %v6098_v51 }
 0xd20   :  { %v2485_v61 = vsel %vm603_vm0, %v2481_v44, -inf  ;;  %6415 = vpow2.f32 %v2426_v62 }
 0xd21   :  { %2486 = vmax.xlane.f32.xlu1 %v2485_v61 }
 0xd23   :  { %v2423_v63 = vpop.xlane.xlu2 %2422  ;;  %2801 = vmatpush.bf16.msra.mxu1 %v6097_v52 }
 0xd24   :  { %v2425_v2 = vsub.f32 %v2416_v57, %v2423_v63  ;;  %v6090_v63 = vld [vmem:[%s8336_s0 + $0x18] sm:$0xff] }
 0xd25   :  { %v2482_v0 = vpop.f32.mrf.mxu3  ;;  %2696 = vmatpush.bf16.msrb.mxu3 %v6090_v63 }
 0xd26   :  { %v2483_v1 = vadd.f32 %v2482_v0, %v600_v55  ;;  %v2428_v4 = vmul.f32 1.442695, %v2425_v2  ;;  %v6416_v7 = vpop.eup %6415  ;;  %v6089_v0 = vld [vmem:[%s8336_s0 + $0x10] sm:$0xff]  ;;  %v6087_v2 = vld [vmem:[%s8336_s0] sm:$0xff] }
 0xd27   :  { %v2430_v8 = vsel %vm603_vm0, %v6416_v7, 0.0  ;;  %2802 = vmatpush.bf16.msra.mxu1 %v6096_v53 }
 0xd28   :  { %v2488_v3 = vsel %vm603_vm0, %v2483_v1, -inf  ;;  %6417 = vpow2.f32 %v2428_v4  ;;  %v6356_v4 = vld [vmem:[#allocation7] ss:$0 sm:$0xff] }
 0xd29   :  { %2489 = vmax.xlane.f32.xlu1 %v2488_v3  ;;  %2697 = vmatpush.bf16.msrb.mxu3 %v6089_v0 }
 0xd2b   :  { %v2510_v5 = vpop.permute.xlu2 %2509  ;;  %2803 = vmatpush.bf16.msra.mxu1 %v6095_v54 }
 0xd2c   :  { %2522 = vmatpush.bf16.msrb.mxu0 %v2510_v5 }
 0xd2e   :  { %v6418_v9 = vpop.eup %6417 }
 0xd2f   :  { %v2433_v10 = vsel %vm603_vm0, %v6418_v9, 0.0 }
 0xd30   :  { %2750 = vmatpush.bf16.msra.mxu0 %v6094_v31 }
 0xd31   :  { %2431 = vadd.xlane.f32.xlu1 %v2430_v8 }
 0xd34   :  { %2751 = vmatpush.bf16.msra.mxu0 %v6093_v32 }
 0xd38   :  { %2752 = vmatpush.bf16.msra.mxu0 %v6092_v33 }
 0xd39   :  { %2434 = vadd.xlane.f32.xlu1 %v2433_v10 }
 0xd3c   :  { %2753 = vmatpush.bf16.msra.mxu0 %v6091_v34 }
 0xd94   :  { %v2487_v12 = vpop.xlane.xlu1 %2486 }
 0xd95   :  { %v2491_v13 = vsub.f32 %v2481_v44, %v2487_v12 }
 0xd97   :  { %v2493_v14 = vmul.f32 1.442695, %v2491_v13 }
 0xd99   :  { %6419 = vpow2.f32 %v2493_v14 }
 0xd9c   :  { %v2490_v15 = vpop.xlane.xlu1 %2489 }
 0xd9d   :  { %v2492_v16 = vsub.f32 %v2483_v1, %v2490_v15  ;;  %v6088_v1 = vld [vmem:[%s8336_s0 + $0x8] sm:$0xff] }
 0xd9e   :  { %2698 = vmatpush.bf16.msrb.mxu3 %v6088_v1 }
 0xd9f   :  { %v6420_v17 = vpop.eup %6419  ;;  %v2495_v18 = vmul.f32 1.442695, %v2492_v16 }
 0xda0   :  { %v2497_v20 = vsel %vm603_vm0, %v6420_v17, 0.0 }
 0xda1   :  { %6421 = vpow2.f32 %v2495_v18  ;;  %2498 = vadd.xlane.f32.xlu1 %v2497_v20  ;;  %v6357_v20 = vld [vmem:[%s8337_s30] ss:$0 sm:$0xff] }
 0xda2   :  { %2699 = vmatpush.bf16.msrb.mxu3 %v6087_v2  ;;  %v6360_v2 = vld [vmem:[%s8340_s6] ss:$0 sm:$0xff] }
 0xda4   :  { %v2432_v21 = vpop.xlane.xlu1 %2431 }
 0xda5   :  { %6423 = vrcp.f32 %v2432_v21 }
 0xda7   :  { %v6422_v22 = vpop.eup %6421 }
 0xda8   :  { %v2500_v23 = vsel %vm603_vm0, %v6422_v22, 0.0 }
 0xda9   :  { %2501 = vadd.xlane.f32.xlu0 %v2500_v23 }
 0xdab   :  { %v6424_v25 = vpop.eup %6423 }
 0xdac   :  { %v2435_v24 = vpop.xlane.xlu1 %2434  ;;  %v2438_v27 = vmul.f32 %v6424_v25, %v6416_v7 }
 0xdad   :  { %6425 = vrcp.f32 %v2435_v24 }
 0xdb3   :  { %v6426_v26 = vpop.eup %6425 }
 0xdb4   :  { %v2439_v29 = vmul.f32 %v6426_v26, %v6418_v9 }
 0xdb6   :  { %v2440_v30 = vpack.c.bf16 %v2439_v29, %v2438_v27 }
 0xdb8   :  { %5308 = vmatmul.msk.bf16.vlgmr.msra.gmra.mxu2 %vm603_vm0, %v2440_v30 }
 0xe14   :  { %v2499_v37 = vpop.xlane.xlu1 %2498 }
 0xe15   :  { %6427 = vrcp.f32 %v2499_v37 }
 0xe1b   :  { %v6428_v40 = vpop.eup %6427 }
 0xe1c   :  { %v2502_v35 = vpop.xlane.xlu0 %2501  ;;  %v2505_v43 = vmul.f32 %v6428_v40, %v6420_v17 }
 0xe1d   :  { %6429 = vrcp.f32 %v2502_v35 }
 0xe23   :  { %v6430_v6 = vpop.eup %6429 }
 0xe24   :  { %v2506_v45 = vmul.f32 %v6430_v6, %v6422_v22 }
 0xe26   :  { %v2507_v11 = vpack.c.bf16 %v2506_v45, %v2505_v43 }
 0xe28   :  { %5310 = vmatmul.msk.bf16.vlgmr.msrb.gmra.mxu0 %vm603_vm0, %v2507_v11 }
 0xe38   :  { %5362 = vmatmul.msk.bf16.vlgmr.msra.gmra.mxu0 %vm715_vm8, %v7888_v41 }
 0xe3b   :  { %v2453_v46 = vpop.f32.mrf.mxu2 }
 0xe43   :  { %v2455_v47 = vpop.f32.mrf.mxu2 }
 0xe44   :  { %v2458_v49 = vpack.c.bf16 %v2455_v47, %v2453_v46 }
 0xe46   :  { %5328 = vmatmul.msk.bf16.vlgmr.msrb.gmra.mxu2 %vm942_vm1, %v2458_v49 }
 0xea5   :  { %v2524_v55 = vpop.f32.mrf.mxu0 }
 0xead   :  { %v2526_v56 = vpop.f32.mrf.mxu0 }
 0xeae   :  { %v2529_v57 = vpack.c.bf16 %v2526_v56, %v2524_v55  ;;  %v6358_v56 = vld [vmem:[%s8338_s11] ss:$0 sm:$0xff] }
 0xeb0   :  { %5319 = vmatmul.msk.bf16.vlgmr.msrb.gmra.mxu1 %vm942_vm1, %v2529_v57 }
 0xeb5   :  { %v2755_v58 = vpop.f32.mrf.mxu0 }
 0xeb6   :  { %v2756_v44 = vadd.f32 %v6355_v60, %v2755_v58 }
 0xebd   :  { %v2757_v59 = vpop.f32.mrf.mxu0 }
 0xebe   :  { %v2758_v48 = vadd.f32 %v6355_v60, %v2757_v59  ;;  %v6359_v59 = vld [vmem:[%s8339_s13] ss:$0 sm:$0xff] }
 0xec0   :  { %v2819_v61 = vpack.c.bf16 %v2758_v48, %v2756_v44  ;;  %5379 = vmatmul.msk.bf16.vlgmr.msra.gmra.mxu1 %vm715_vm8, %v7888_v41 }
 0xec2   :  { %v2825_v62 = vsel %vm942_vm1, %v2819_v61, 0 }
 0xec3   :  { %2834 = vmatpush.bf16.xpose.msra.mxu2 %v2825_v62 }
 0xec9   :  { %v2583_v3 = vpop.f32.mrf.mxu2 }
 0xed1   :  { %v2585_v12 = vpop.f32.mrf.mxu2 }
 0xf2d   :  { %v2554_v5 = vpop.f32.mrf.mxu1 }
 0xf2e   :  { %v2584_v7 = vadd.f32 %v2583_v3, %v2554_v5 }
 0xf30   :  { %v2592_v8 = vadd.f32 %v6356_v4, %v2584_v7 }
 0xf32   :  { %v7909_v9 = vadd.f32 %v2592_v8, %v7827_v28 }
 0xf34   :  { %v2598_v10 = vsel %vm715_vm8, %v7909_v9, 0.0 }
 0xf35   :  { %2599 = vadd.xlane.f32.xlu1 %v2598_v10  ;;  %v2556_v13 = vpop.f32.mrf.mxu1 }
 0xf36   :  { %v2586_v14 = vadd.f32 %v2585_v12, %v2556_v13  ;;  %v6479_v12 = vld [vmem:[%s8321_s14] sm:$0xff] }
 0xf38   :  { %v2593_v15 = vadd.f32 %v6356_v4, %v2586_v14 }
 0xf3a   :  { %v7914_v16 = vadd.f32 %v2593_v15, %v7832_v39 }
 0xf3c   :  { %v2601_v17 = vsel %vm715_vm8, %v7914_v16, 0.0 }
 0xf3d   :  { %v2805_v18 = vpop.f32.mrf.mxu1  ;;  %2602 = vadd.xlane.f32.xlu0 %v2601_v17  ;;  %v6480_v17 = vld [vmem:[%s8321_s14 + $0x8] sm:$0xff]  ;;  %s8350_s14 = sld [smem:[#allocation60_spill]] }
 0xf3e   :  { %v2806_v28 = vadd.f32 %v6357_v20, %v2805_v18 }
 0xf45   :  { %v2807_v21 = vpop.f32.mrf.mxu1 }
 0xf46   :  { %v2808_v22 = vadd.f32 %v6357_v20, %v2807_v21 }
 0xf48   :  { %v7919_v23 = vpack.c.bf16 %v2808_v22, %v2806_v28 }
 0xf4a   :  { %2874 = vmatpush.bf16.msra.mxu3 %v7919_v23 }
 0xfa8   :  { %v2600_v24 = vpop.xlane.xlu1 %2599 }
 0xfa9   :  { %v2604_v25 = vmul.f32 %v2600_v24, %v7592_v19 }
 0xfab   :  { %v2606_v26 = vsub.f32 %v7909_v9, %v2604_v25 }
 0xfad   :  { %v2608_v39 = vmul.f32 %v2606_v26, %v2606_v26 }
 0xfaf   :  { %v2610_v27 = vsel %vm715_vm8, %v2608_v39, 0.0 }
 0xfb0   :  { %2611 = vadd.xlane.f32.xlu1 %v2610_v27  ;;  %v2603_v29 = vpop.xlane.xlu0 %2602 }
 0xfb1   :  { %v2605_v30 = vmul.f32 %v2603_v29, %v7592_v19 }
 0xfb3   :  { %v2607_v31 = vsub.f32 %v7914_v16, %v2605_v30 }
 0xfb5   :  { %v2609_v32 = vmul.f32 %v2607_v31, %v2607_v31 }
 0xfb7   :  { %v2613_v33 = vsel %vm715_vm8, %v2609_v32, 0.0 }
 0xfb8   :  { %2614 = vadd.xlane.f32.xlu0 %v2613_v33 }
 0xfc9   :  { %2886 = vrot.lane.b32.xlu1 %v2819_v61, %s7151_s17 }
0x1023   :  { %v2612_v34 = vpop.xlane.xlu1 %2611 }
0x1024   :  { %v2616_v37 = vmul.f32 %v2612_v34, %v7592_v19 }
0x1026   :  { %v2618_v38 = vadd.f32 1e-05, %v2616_v37 }
0x1028   :  { %6431 = vrsqrt.f32 %v2618_v38  ;;  %vm2626_vm2 = vweird.f32 %v2618_v38 }
0x102b   :  { %v2615_v35 = vpop.xlane.xlu0 %2614 }
0x102c   :  { %v2617_v40 = vmul.f32 %v2615_v35, %v7592_v19 }
0x102e   :  { %v6432_v42 = vpop.eup %6431  ;;  %v2619_v6 = vadd.f32 1e-05, %v2617_v40 }
0x102f   :  { %v2621_v43 = vmul.f32 %v6432_v42, %v2618_v38  ;;  %vm2627_vm15 = vweird.f32 %v6432_v42 }
0x1030   :  { %6433 = vrsqrt.f32 %v2619_v6  ;;  %vm2628_vm3 = vmor %vm2626_vm2, %vm2627_vm15  ;;  %vm2636_vm5 = vweird.f32 %v2619_v6 }
0x1031   :  { %v2622_v45 = vmul.f32 %v6432_v42, %v2621_v43 }
0x1033   :  { %v2623_v11 = vmul.f32 0.5, %v2622_v45 }
0x1035   :  { %v2624_v46 = vsub.f32 1.5, %v2623_v11 }
0x1036   :  { %v6434_v47 = vpop.eup %6433 }
0x1037   :  { %v2625_v49 = vmul.f32 %v6432_v42, %v2624_v46  ;;  %v2631_v50 = vmul.f32 %v6434_v47, %v2619_v6  ;;  %vm2637_vm4 = vweird.f32 %v6434_v47 }
0x1038   :  { %vm2638_vm6 = vmor %vm2636_vm5, %vm2637_vm4  ;;  %vm4583_vm5 = vcmask 1041408  }
0x1039   :  { %v2632_v36 = vmul.f32 %v6434_v47, %v2631_v50  ;;  %v2629_v51 = vsel %vm2628_vm3, %v6432_v42, %v2625_v49 }
0x103a   :  { %v2640_v57 = vmul.f32 %v2629_v51, %v2606_v26 }
0x103b   :  { %v2633_v52 = vmul.f32 0.5, %v2632_v36  ;;  %v2887_v53 = vpop.permute.xlu1 %2886 }
0x103c   :  { %v2892_v54 = vsel %vm942_vm1, %v2887_v53, 0  ;;  %v2645_v44 = vmul.f32 %v6358_v56, %v2640_v57 }
0x103d   :  { %v2634_v55 = vsub.f32 1.5, %v2633_v52  ;;  %2901 = vmatpush.bf16.xpose.msrb.mxu0 %v2892_v54 }
0x103e   :  { %v2650_v62 = vadd.f32 %v6359_v59, %v2645_v44 }
0x103f   :  { %v2635_v58 = vmul.f32 %v6434_v47, %v2634_v55 }
0x1041   :  { %v2639_v60 = vsel %vm2638_vm6, %v6434_v47, %v2635_v58  ;;  %v6100_v58 = vld [vmem:[%s8341_s8 + $0x8] sm:$0xff] }
0x1042   :  { %v2641_v48 = vmul.f32 %v2639_v60, %v2607_v31 }
0x1044   :  { %v2646_v61 = vmul.f32 %v6358_v56, %v2641_v48 }
0x1046   :  { %v2651_v63 = vadd.f32 %v6359_v59, %v2646_v61  ;;  %v6099_v61 = vld [vmem:[%s8341_s8] sm:$0xff] }
0x1048   :  { %v2660_v0 = vpack.c.bf16 %v2651_v63, %v2650_v62 }
0x104a   :  { %5345 = vmatmul.msk.bf16.vlgmr.msrb.gmra.mxu3 %vm715_vm8, %v2660_v0 }
0x104b   :  { %3003 = vmatpush.bf16.msrb.mxu3 %v6100_v58  ;;  %v5436_v58 = vld [vmem:[%s8343_s10 + $0x40] sm:$0xf] }
0x104f   :  { %3004 = vmatpush.bf16.msrb.mxu3 %v6099_v61  ;;  %v5444_v61 = vld [vmem:[%s8343_s10 + $0x48] sm:$0xf] }
0x10cd   :  { %v2701_v1 = vpop.f32.mrf.mxu3 }
0x10ce   :  { %v2702_v4 = vadd.f32 %v6360_v2, %v2701_v1 }
0x10d5   :  { %v2703_v3 = vpop.f32.mrf.mxu3 }
0x10d6   :  { %v2704_v5 = vadd.f32 %v6360_v2, %v2703_v3  ;;  %v6102_v2 = vld [vmem:[%s8341_s8 + $0x18] sm:$0xff]  ;;  %v6101_v3 = vld [vmem:[%s8341_s8 + $0x10] sm:$0xff] }
0x10d7   :  { %2974 = vmatpush.bf16.msrb.mxu2 %v6102_v2  ;;  %v6112_v2 = vld [vmem:[%s8343_s10 + $0x4c] sm:$0xf] }
0x10d8   :  { %v2818_v7 = vpack.c.bf16 %v2704_v5, %v2702_v4 }
0x10da   :  { %2883 = vrot.lane.b32.xlu0 %v2818_v7, %s7151_s17  ;;  %5380 = vmatmul.msk.bf16.vlgmr.msra.gmra.mxu2 %vm942_vm1, %v2818_v7 }
0x10db   :  { %2975 = vmatpush.bf16.msrb.mxu2 %v6101_v3  ;;  %v5446_v3 = vld [vmem:[%s8343_s10 + $0x68] sm:$0xf0] }
0x114c   :  { %v2884_v8 = vpop.permute.xlu0 %2883 }
0x114d   :  { %5382 = vmatmul.msk.bf16.vlgmr.msrb.gmra.mxu0 %vm942_vm1, %v2884_v8 }
0x115d   :  { %v2836_v10 = vpop.f32.mrf.mxu2 }
0x115e   :  { %v2837_v13 = vadd.f32 %v6479_v12, %v2836_v10  ;;  %v6361_v10 = vld [vmem:[%s8342_s5] ss:$0 sm:$0xff] }
0x1160   :  { %v2841_v14 = vsel %vm603_vm0, %v2837_v13, -inf }
0x1161   :  { %2842 = vmax.xlane.f32.xlu2 %v2841_v14 }
0x1165   :  { %v2838_v15 = vpop.f32.mrf.mxu2 }
0x1166   :  { %v2839_v18 = vadd.f32 %v6480_v17, %v2838_v15 }
0x1168   :  { %v2844_v20 = vsel %vm603_vm0, %v2839_v18, -inf }
0x1169   :  { %2845 = vmax.xlane.f32.xlu0 %v2844_v20 }
0x11ca   :  { %v2903_v21 = vpop.f32.mrf.mxu0 }
0x11cb   :  { %v2904_v28 = vadd.f32 %v6479_v12, %v2903_v21 }
0x11cd   :  { %v2908_v22 = vsel %vm603_vm0, %v2904_v28, -inf }
0x11ce   :  { %2909 = vmax.xlane.f32.xlu1 %v2908_v22 }
0x11d2   :  { %v2905_v24 = vpop.f32.mrf.mxu0 }
0x11d3   :  { %v2906_v25 = vadd.f32 %v6480_v17, %v2905_v24 }
0x11d4   :  { %v2843_v26 = vpop.xlane.xlu2 %2842 }
0x11d5   :  { %v2847_v39 = vsub.f32 %v2837_v13, %v2843_v26  ;;  %v2911_v27 = vsel %vm603_vm0, %v2906_v25, -inf }
0x11d6   :  { %2912 = vmax.xlane.f32.xlu2 %v2911_v27 }
0x11d7   :  { %v2849_v29 = vmul.f32 1.442695, %v2847_v39 }
0x11d9   :  { %6435 = vpow2.f32 %v2849_v29 }
0x11dc   :  { %v2846_v30 = vpop.xlane.xlu0 %2845 }
0x11dd   :  { %v2848_v31 = vsub.f32 %v2839_v18, %v2846_v30 }
0x11df   :  { %v6436_v32 = vpop.eup %6435  ;;  %v2851_v33 = vmul.f32 1.442695, %v2848_v31 }
0x11e0   :  { %v2853_v34 = vsel %vm603_vm0, %v6436_v32, 0.0 }
0x11e1   :  { %6437 = vpow2.f32 %v2851_v33  ;;  %2854 = vadd.xlane.f32.xlu2 %v2853_v34  ;;  %v5500_v33 = vld [vmem:[%s8343_s10 + $0xc0] sm:$0xf] }
0x11e2   :  { %v6131_v34 = vld [vmem:[%s8343_s10 + $0xdc] sm:$0xf0] }
0x11e7   :  { %v6438_v37 = vpop.eup %6437 }
0x11e8   :  { %v2856_v38 = vsel %vm603_vm0, %v6438_v37, 0.0 }
0x11e9   :  { %2857 = vadd.xlane.f32.xlu0 %v2856_v38  ;;  %v5501_v38 = vor.u32 %v6131_v34, %v5500_v33 }
0x11eb   :  { %3293 = vmatpush.bf16.msra.mxu0 %v5501_v38  ;;  %v6130_v38 = vld [vmem:[%s8343_s10 + $0xdc] sm:$0xf] }
0x11fd   :  { %2932 = vrot.lane.b32.xlu0 %v7919_v23, %s7151_s17  ;;  %s8349_s17 = sld [smem:[#allocation53_spill]] }
0x1241   :  { %v2910_v35 = vpop.xlane.xlu1 %2909 }
0x1242   :  { %v2914_v40 = vsub.f32 %v2904_v28, %v2910_v35  ;;  %v5502_v35 = vld [vmem:[%s8343_s10 + $0xe0] sm:$0xf0] }
0x1244   :  { %v2916_v42 = vmul.f32 1.442695, %v2914_v40  ;;  %v5508_v40 = vld [vmem:[%s8343_s10 + $0xc8] sm:$0xf] }
0x1246   :  { %6439 = vpow2.f32 %v2916_v42  ;;  %v6132_v42 = vld [vmem:[%s8343_s10 + $0xe4] sm:$0xf0] }
0x1249   :  { %v2913_v6 = vpop.xlane.xlu2 %2912 }
0x124a   :  { %v2915_v43 = vsub.f32 %v2906_v25, %v2913_v6 }
0x124c   :  { %v6440_v45 = vpop.eup %6439  ;;  %v2918_v11 = vmul.f32 1.442695, %v2915_v43  ;;  %v5509_v43 = vor.u32 %v6132_v42, %v5508_v40  ;;  %v5484_v40 = vld [vmem:[%s8343_s10 + $0x90] sm:$0xf] }
0x124d   :  { %v2920_v46 = vsel %vm603_vm0, %v6440_v45, 0.0 }
0x124e   :  { %6441 = vpow2.f32 %v2918_v11  ;;  %2921 = vadd.xlane.f32.xlu2 %v2920_v46  ;;  %v5510_v11 = vld [vmem:[%s8343_s10 + $0xe8] sm:$0xf0]  ;;  %3321 = vmatpush.bf16.msra.mxu2 %v5509_v43  ;;  %v6125_v43 = vld [vmem:[%s8343_s10 + $0xac] sm:$0xf0] }
0x1254   :  { %v6442_v47 = vpop.eup %6441  ;;  %v2855_v50 = vpop.xlane.xlu2 %2854 }
0x1255   :  { %v2923_v49 = vsel %vm603_vm0, %v6442_v47, 0.0  ;;  %6443 = vrcp.f32 %v2855_v50  ;;  %v6119_v50 = vld [vmem:[%s8343_s10 + $0x84] sm:$0xf] }
0x1256   :  { %2924 = vadd.xlane.f32.xlu1 %v2923_v49  ;;  %v6123_v49 = vld [vmem:[%s8343_s10 + $0x9c] sm:$0xf0] }
0x125b   :  { %v6444_v36 = vpop.eup %6443 }
0x125c   :  { %v2858_v23 = vpop.xlane.xlu0 %2857  ;;  %v2861_v52 = vmul.f32 %v6444_v36, %v6436_v32  ;;  %v5470_v36 = vld [vmem:[%s8343_s10 + $0xa0] sm:$0xf0] }
0x125d   :  { %6445 = vrcp.f32 %v2858_v23 }
0x1263   :  { %v6446_v51 = vpop.eup %6445 }
0x1264   :  { %v2862_v53 = vmul.f32 %v6446_v51, %v6438_v37  ;;  %v6127_v37 = vld [vmem:[%s8343_s10 + $0xc4] sm:$0xf]  ;;  %v5476_v51 = vld [vmem:[%s8343_s10 + $0x88] sm:$0xf] }
0x1265   :  { %v5505_v6 = vor.u32 %v6127_v37, %v5502_v35  ;;  %v5526_v35 = vld [vmem:[%s8343_s10 + $0xf8] sm:$0xf0] }
0x1266   :  { %v2863_v54 = vpack.c.bf16 %v2862_v53, %v2861_v52  ;;  %v6124_v52 = vld [vmem:[%s8343_s10 + $0xa4] sm:$0xf0]  ;;  %v5473_v53 = vor.u32 %v6119_v50, %v5470_v36  ;;  %v6126_v50 = vld [vmem:[%s8343_s10 + $0xb4] sm:$0xf0] }
0x1268   :  { %5381 = vmatmul.msk.bf16.vlgmr.msra.gmra.mxu3 %vm603_vm0, %v2863_v54  ;;  %v5477_v54 = vor.u32 %v6124_v52, %v5476_v51  ;;  %v5494_v52 = vld [vmem:[%s8343_s10 + $0xb8] sm:$0xf0] }
0x126a   :  { %3322 = vmatpush.bf16.msra.mxu2 %v5477_v54 }
0x126f   :  { %v2933_v55 = vpop.permute.xlu0 %2932 }
0x1270   :  { %2945 = vmatpush.bf16.msrb.mxu1 %v2933_v55  ;;  %v6120_v55 = vld [vmem:[%s8343_s10 + $0x8c] sm:$0xf] }
0x1274   :  { %3307 = vmatpush.bf16.msra.mxu1 %v5505_v6  ;;  %v5529_v6 = vor.u32 %v6130_v38, %v5526_v35 }
0x1278   :  { %3308 = vmatpush.bf16.msra.mxu1 %v5473_v53  ;;  %v5452_v53 = vld [vmem:[%s8343_s10 + $0x50] sm:$0xf] }
0x12c1   :  { %v2922_v56 = vpop.xlane.xlu2 %2921 }
0x12c2   :  { %6447 = vrcp.f32 %v2922_v56  ;;  %v5478_v56 = vld [vmem:[%s8343_s10 + $0xa8] sm:$0xf0] }
0x12c8   :  { %v6448_v60 = vpop.eup %6447 }
0x12c9   :  { %v2925_v57 = vpop.xlane.xlu1 %2924  ;;  %v2928_v44 = vmul.f32 %v6448_v60, %v6440_v45  ;;  %v6128_v45 = vld [vmem:[%s8343_s10 + $0xcc] sm:$0xf]  ;;  %v6115_v60 = vld [vmem:[%s8343_s10 + $0x5c] sm:$0xf0] }
0x12ca   :  { %6449 = vrcp.f32 %v2925_v57  ;;  %v5513_v46 = vor.u32 %v6128_v45, %v5510_v11  ;;  %v5481_v57 = vor.u32 %v6120_v55, %v5478_v56  ;;  %v6121_v45 = vld [vmem:[%s8343_s10 + $0x94] sm:$0xf]  ;;  %v6117_v56 = vld [vmem:[%s8343_s10 + $0x6c] sm:$0xf0] }
0x12cb   :  { %v5486_v11 = vld [vmem:[%s8343_s10 + $0xb0] sm:$0xf0] }
0x12cc   :  { %3335 = vmatpush.bf16.msra.mxu3 %v5513_v46  ;;  %v5485_v46 = vor.u32 %v6125_v43, %v5484_v40  ;;  %v6142_v43 = vld [vmem:[%s8345_s16 + $0x38] sm:$0xff] }
0x12d0   :  { %v6450_v59 = vpop.eup %6449  ;;  %3336 = vmatpush.bf16.msra.mxu3 %v5481_v57  ;;  %v6113_v57 = vld [vmem:[%s8343_s10 + $0x54] sm:$0xf] }
0x12d1   :  { %v2929_v48 = vmul.f32 %v6450_v59, %v6442_v47  ;;  %v5468_v47 = vld [vmem:[%s8343_s10 + $0x80] sm:$0xf]  ;;  %v6111_v59 = vld [vmem:[%s8343_s10 + $0x44] sm:$0xf] }
0x12d2   :  { %v5469_v23 = vor.u32 %v6123_v49, %v5468_v47  ;;  %v5489_v47 = vor.u32 %v6121_v45, %v5486_v11  ;;  %v5492_v49 = vld [vmem:[%s8343_s10 + $0x98] sm:$0xf] }
0x12d3   :  { %v2930_v62 = vpack.c.bf16 %v2929_v48, %v2928_v44  ;;  %v5437_v44 = vor.u32 %v6115_v60, %v5436_v58  ;;  %v5438_v48 = vld [vmem:[%s8343_s10 + $0x60] sm:$0xf0]  ;;  %v5493_v51 = vor.u32 %v6126_v50, %v5492_v49  ;;  %v5454_v58 = vld [vmem:[%s8343_s10 + $0x70] sm:$0xf0]  ;;  %v5453_v60 = vor.u32 %v6117_v56, %v5452_v53  ;;  %v6166_v45 = vld [vmem:[%s8345_s16 + $0xf8] sm:$0xff] }
0x12d4   :  { %3294 = vmatpush.bf16.msra.mxu0 %v5469_v23  ;;  %v6122_v23 = vld [vmem:[%s8343_s10 + $0x9c] sm:$0xf]  ;;  %v6157_v49 = vld [vmem:[%s8345_s16 + $0xb0] sm:$0xff]  ;;  %v6140_v50 = vld [vmem:[%s8345_s16 + $0x28] sm:$0xff] }
0x12d5   :  { %5383 = vmatmul.msk.bf16.vlgmr.msrb.gmra.mxu1 %vm603_vm0, %v2930_v62  ;;  %v6116_v62 = vld [vmem:[%s8343_s10 + $0x64] sm:$0xf0]  ;;  %v5497_v55 = vor.u32 %v6122_v23, %v5494_v52  ;;  %v6150_v11 = vld [vmem:[%s8345_s16 + $0x78] sm:$0xff]  ;;  %v6163_v52 = vld [vmem:[%s8345_s16 + $0xe0] sm:$0xff] }
0x12d6   :  { %v6164_v23 = vld [vmem:[%s8345_s16 + $0xe8] sm:$0xff]  ;;  %v6147_v53 = vld [vmem:[%s8345_s16 + $0x60] sm:$0xff]  ;;  %v6162_v56 = vld [vmem:[%s8345_s16 + $0xd8] sm:$0xff] }
0x12d8   :  { %3295 = vmatpush.bf16.msra.mxu0 %v5437_v44  ;;  %v6118_v44 = vld [vmem:[%s8343_s10 + $0x74] sm:$0xf0] }
0x12eb   :  { %v2876_v63 = vpop.f32.mrf.mxu3 }
0x12f3   :  { %v2878_v0 = vpop.f32.mrf.mxu3 }
0x12f4   :  { %v2881_v1 = vpack.c.bf16 %v2878_v0, %v2876_v63  ;;  %v5441_v0 = vor.u32 %v6111_v59, %v5438_v48  ;;  %v5460_v59 = vld [vmem:[%s8343_s10 + $0x58] sm:$0xf] }
0x12f6   :  { %5401 = vmatmul.msk.bf16.vlgmr.msrb.gmra.mxu3 %vm942_vm1, %v2881_v1  ;;  %v5445_v1 = vor.u32 %v6116_v62, %v5444_v61  ;;  %3309 = vmatpush.bf16.msra.mxu1 %v5441_v0  ;;  %v5457_v61 = vor.u32 %v6113_v57, %v5454_v58  ;;  %v5461_v62 = vor.u32 %v6118_v44, %v5460_v59  ;;  %v5462_v0 = vld [vmem:[%s8343_s10 + $0x78] sm:$0xf0]  ;;  %v6161_v59 = vld [vmem:[%s8345_s16 + $0xd0] sm:$0xff] }
0x12f7   :  { %v6146_v57 = vld [vmem:[%s8345_s16 + $0x58] sm:$0xff]  ;;  %v6145_v44 = vld [vmem:[%s8345_s16 + $0x50] sm:$0xff] }
0x12f8   :  { %3323 = vmatpush.bf16.msra.mxu2 %v5445_v1  ;;  %v5420_v1 = vld [vmem:[%s8343_s10 + $0x10] sm:$0xf]  ;;  %v6154_v58 = vld [vmem:[%s8345_s16 + $0x98] sm:$0xff] }
0x1352   :  { %v2947_v4 = vpop.f32.mrf.mxu1 }
0x135a   :  { %v2949_v5 = vpop.f32.mrf.mxu1 }
0x135b   :  { %v2952_v7 = vpack.c.bf16 %v2949_v5, %v2947_v4  ;;  %v5449_v5 = vor.u32 %v6112_v2, %v5446_v3  ;;  %v6109_v3 = vld [vmem:[%s8343_s10 + $0x2c] sm:$0xf0] }
0x135d   :  { %5392 = vmatmul.msk.bf16.vlgmr.msrb.gmra.mxu2 %vm942_vm1, %v2952_v7  ;;  %v5404_v7 = vld [vmem:[%s8343_s10] sm:$0xf]  ;;  %3337 = vmatpush.bf16.msra.mxu3 %v5449_v5  ;;  %v5422_v5 = vld [vmem:[%s8343_s10 + $0x30] sm:$0xf0] }
0x1379   :  { %v3006_v8 = vpop.f32.mrf.mxu3 }
0x1381   :  { %v3008_v18 = vpop.f32.mrf.mxu3 }
0x13e0   :  { %v2977_v12 = vpop.f32.mrf.mxu2 }
0x13e1   :  { %v3007_v13 = vadd.f32 %v3006_v8, %v2977_v12  ;;  %v6107_v8 = vld [vmem:[%s8343_s10 + $0x1c] sm:$0xf0] }
0x13e3   :  { %v3015_v14 = vadd.f32 %v6361_v10, %v3007_v13  ;;  %v5405_v13 = vor.u32 %v6107_v8, %v5404_v7  ;;  %v5428_v8 = vld [vmem:[%s8343_s10 + $0x18] sm:$0xf] }
0x13e5   :  { %v7961_v15 = vadd.f32 %v3015_v14, %v7909_v9  ;;  %v5406_v14 = vld [vmem:[%s8343_s10 + $0x20] sm:$0xf0]  ;;  %3296 = vmatpush.bf16.msra.mxu0 %v5405_v13  ;;  %v5421_v13 = vor.u32 %v6109_v3, %v5420_v1  ;;  %v6198_v3 = vld [vmem:[%s8345_s16 + $0x1f8] sm:$0xff] }
0x13e6   :  { %v6159_v1 = vld [vmem:[%s8345_s16 + $0xc0] sm:$0xff] }
0x13e7   :  { %v3021_v17 = vsel %vm715_vm8, %v7961_v15, 0.0 }
0x13e8   :  { %3022 = vadd.xlane.f32.xlu2 %v3021_v17  ;;  %v2979_v20 = vpop.f32.mrf.mxu2  ;;  %v5412_v17 = vld [vmem:[%s8343_s10 + $0x8] sm:$0xf] }
0x13e9   :  { %v3009_v21 = vadd.f32 %v3008_v18, %v2979_v20  ;;  %v6108_v20 = vld [vmem:[%s8343_s10 + $0x24] sm:$0xf0] }
0x13eb   :  { %v3016_v28 = vadd.f32 %v6361_v10, %v3009_v21  ;;  %v6103_v10 = vld [vmem:[%s8343_s10 + $0x4] sm:$0xf]  ;;  %v6104_v21 = vld [vmem:[%s8343_s10 + $0xc] sm:$0xf] }
0x13ec   :  { %v5409_v18 = vor.u32 %v6103_v10, %v5406_v14  ;;  %v6110_v10 = vld [vmem:[%s8343_s10 + $0x34] sm:$0xf0]  ;;  %v6106_v14 = vld [vmem:[%s8343_s10 + $0x1c] sm:$0xf] }
0x13ed   :  { %v7966_v22 = vadd.f32 %v3016_v28, %v7914_v16  ;;  %v5414_v28 = vld [vmem:[%s8343_s10 + $0x28] sm:$0xf0] }
0x13ee   :  { %3310 = vmatpush.bf16.msra.mxu1 %v5409_v18 }
0x13ef   :  { %v3024_v24 = vsel %vm715_vm8, %v7966_v22, 0.0 }
0x13f0   :  { %3025 = vadd.xlane.f32.xlu1 %v3024_v24  ;;  %v5413_v24 = vor.u32 %v6108_v20, %v5412_v17  ;;  %v5430_v17 = vld [vmem:[%s8343_s10 + $0x38] sm:$0xf0] }
0x13f2   :  { %3324 = vmatpush.bf16.msra.mxu2 %v5413_v24  ;;  %v5433_v24 = vor.u32 %v6106_v14, %v5430_v17  ;;  %v6152_v14 = vld [vmem:[%s8345_s16 + $0x88] sm:$0xff]  ;;  %v6171_v17 = vld [vmem:[%s8345_s16 + $0x120] sm:$0xff] }
0x145b   :  { %v3023_v9 = vpop.xlane.xlu2 %3022 }
0x145c   :  { %v3027_v25 = vmul.f32 %v3023_v9, %v7592_v19  ;;  %v5417_v9 = vor.u32 %v6104_v21, %v5414_v28  ;;  %v5429_v21 = vor.u32 %v6110_v10, %v5428_v8  ;;  %v6172_v8 = vld [vmem:[%s8345_s16 + $0x128] sm:$0xff]  ;;  %v6182_v10 = vld [vmem:[%s8345_s16 + $0x178] sm:$0xff] }
0x145e   :  { %v7972_v26 = vsub.f32 %v7961_v15, %v3027_v25  ;;  %v5516_v25 = vld [vmem:[%s8343_s10 + $0xd0] sm:$0xf]  ;;  %3338 = vmatpush.bf16.msra.mxu3 %v5417_v9 }
0x1460   :  { %v3031_v39 = vmul.f32 %v7972_v26, %v7972_v26 }
0x1462   :  { %v3033_v16 = vsel %vm715_vm8, %v3031_v39, 0.0  ;;  %v6133_v39 = vld [vmem:[%s8343_s10 + $0xec] sm:$0xf0]  ;;  %3391 = vmatpush.bf16.msrb.mxu3 %v5529_v6 }
0x1463   :  { %3034 = vadd.xlane.f32.xlu2 %v3033_v16  ;;  %v3026_v27 = vpop.xlane.xlu1 %3025  ;;  %v6129_v16 = vld [vmem:[%s8343_s10 + $0xd4] sm:$0xf] }
0x1464   :  { %v3028_v29 = vmul.f32 %v3026_v27, %v7592_v19  ;;  %v5517_v27 = vor.u32 %v6133_v39, %v5516_v25 }
0x1466   :  { %v7979_v30 = vsub.f32 %v7966_v22, %v3028_v29  ;;  %v5518_v29 = vld [vmem:[%s8343_s10 + $0xf0] sm:$0xf0]  ;;  %3349 = vmatpush.bf16.msrb.mxu0 %v5517_v27  ;;  %3392 = vmatpush.bf16.msrb.mxu3 %v5497_v55  ;;  %v6138_v55 = vld [vmem:[%s8345_s16 + $0x18] sm:$0xff] }
0x1467   :  { %v5521_v34 = vor.u32 %v6129_v16, %v5518_v29 }
0x1468   :  { %v3032_v31 = vmul.f32 %v7979_v30, %v7979_v30 }
0x1469   :  { %3363 = vmatpush.bf16.msrb.mxu1 %v5521_v34  ;;  %v6363_v34 = vld [vmem:[%s8344_s12] ss:$0 sm:$0xff] }
0x146a   :  { %v3036_v32 = vsel %vm715_vm8, %v3032_v31, 0.0  ;;  %v5524_v31 = vld [vmem:[%s8343_s10 + $0xd8] sm:$0xf]  ;;  %3350 = vmatpush.bf16.msrb.mxu0 %v5485_v46  ;;  %v6165_v46 = vld [vmem:[%s8345_s16 + $0xf0] sm:$0xff] }
0x146b   :  { %3037 = vadd.xlane.f32.xlu1 %v3036_v32  ;;  %v6134_v32 = vld [vmem:[%s8343_s10 + $0xf4] sm:$0xf0] }
0x146c   :  { %v5525_v37 = vor.u32 %v6134_v32, %v5524_v31  ;;  %v6362_v31 = vld [vmem:[#allocation3] ss:$0 sm:$0xff] }
0x146d   :  { %3364 = vmatpush.bf16.msrb.mxu1 %v5489_v47  ;;  %v6149_v47 = vld [vmem:[%s8345_s16 + $0x70] sm:$0xff] }
0x146e   :  { %3377 = vmatpush.bf16.msrb.mxu2 %v5525_v37  ;;  %3351 = vmatpush.bf16.msrb.mxu0 %v5453_v60  ;;  %v6137_v60 = vld [vmem:[%s8345_s16 + $0x10] sm:$0xff] }
0x1471   :  { %3365 = vmatpush.bf16.msrb.mxu1 %v5457_v61  ;;  %v6136_v61 = vld [vmem:[%s8345_s16 + $0x8] sm:$0xff] }
0x1472   :  { %3378 = vmatpush.bf16.msrb.mxu2 %v5493_v51  ;;  %3352 = vmatpush.bf16.msrb.mxu0 %v5421_v13  ;;  %v6139_v51 = vld [vmem:[%s8345_s16 + $0x20] sm:$0xff]  ;;  %v6196_v13 = vld [vmem:[%s8345_s16 + $0x1e8] sm:$0xff] }
0x1476   :  { %3379 = vmatpush.bf16.msrb.mxu2 %v5461_v62  ;;  %v6160_v62 = vld [vmem:[%s8345_s16 + $0xc8] sm:$0xff] }
0x147a   :  { %3380 = vmatpush.bf16.msrb.mxu2 %v5429_v21  ;;  %v6151_v21 = vld [vmem:[%s8345_s16 + $0x80] sm:$0xff] }
0x14d6   :  { %v3035_v63 = vpop.xlane.xlu2 %3034 }
0x14d7   :  { %v3039_v4 = vmul.f32 %v3035_v63, %v7592_v19  ;;  %v6114_v63 = vld [vmem:[%s8343_s10 + $0x5c] sm:$0xf] }
0x14d8   :  { %v5465_v2 = vor.u32 %v6114_v63, %v5462_v0  ;;  %v6144_v63 = vld [vmem:[%s8345_s16 + $0x48] sm:$0xff]  ;;  %v6135_v0 = vld [vmem:[%s8345_s16] sm:$0xff] }
0x14d9   :  { %v8012_v12 = vadd.f32 1e-05, %v3039_v4  ;;  %v6105_v4 = vld [vmem:[%s8343_s10 + $0x14] sm:$0xf] }
0x14da   :  { %v5425_v20 = vor.u32 %v6105_v4, %v5422_v5  ;;  %3393 = vmatpush.bf16.msrb.mxu3 %v5465_v2  ;;  %v6174_v2 = vld [vmem:[%s8345_s16 + $0x138] sm:$0xff]  ;;  %v6143_v4 = vld [vmem:[%s8345_s16 + $0x40] sm:$0xff]  ;;  %v6173_v5 = vld [vmem:[%s8345_s16 + $0x130] sm:$0xff] }
0x14db   :  { %6451 = vrsqrt.f32 %v8012_v12  ;;  %vm3049_vm7 = vweird.f32 %v8012_v12 }
0x14dc   :  { %3366 = vmatpush.bf16.msrb.mxu1 %v5425_v20  ;;  %v6195_v20 = vld [vmem:[%s8345_s16 + $0x1e0] sm:$0xff] }
0x14de   :  { %v3038_v33 = vpop.xlane.xlu1 %3037  ;;  %3394 = vmatpush.bf16.msrb.mxu3 %v5433_v24  ;;  %v6190_v24 = vld [vmem:[%s8345_s16 + $0x1b8] sm:$0xff] }
0x14df   :  { %v3040_v42 = vmul.f32 %v3038_v33, %v7592_v19 }
0x14e1   :  { %v6452_v19 = vpop.eup %6451  ;;  %v3042_v36 = vadd.f32 1e-05, %v3040_v42 }
0x14e2   :  { %v3044_v54 = vmul.f32 %v6452_v19, %v8012_v12  ;;  %vm3050_vm1 = vweird.f32 %v6452_v19 }
0x14e3   :  { %6453 = vrsqrt.f32 %v3042_v36  ;;  %vm3051_vm9 = vmor %vm3049_vm7, %vm3050_vm1  ;;  %vm3059_vm11 = vweird.f32 %v3042_v36 }
0x14e4   :  { %v3045_v48 = vmul.f32 %v6452_v19, %v3044_v54  ;;  %v6155_v54 = vld [vmem:[%s8345_s16 + $0xa0] sm:$0xff] }
0x14e6   :  { %v3046_v7 = vmul.f32 0.5, %v3045_v48  ;;  %v6153_v48 = vld [vmem:[%s8345_s16 + $0x90] sm:$0xff] }
0x14e8   :  { %v3047_v18 = vsub.f32 1.5, %v3046_v7  ;;  %v6197_v7 = vld [vmem:[%s8345_s16 + $0x1f0] sm:$0xff] }
0x14e9   :  { %v6454_v28 = vpop.eup %6453 }
0x14ea   :  { %v3048_v9 = vmul.f32 %v6452_v19, %v3047_v18  ;;  %v3054_v25 = vmul.f32 %v6454_v28, %v3042_v36  ;;  %vm3060_vm10 = vweird.f32 %v6454_v28  ;;  %v6156_v36 = vld [vmem:[%s8345_s16 + $0xa8] sm:$0xff]  ;;  %v6181_v18 = vld [vmem:[%s8345_s16 + $0x170] sm:$0xff] }
0x14eb   :  { %vm3061_vm12 = vmor %vm3059_vm11, %vm3060_vm10 }
0x14ec   :  { %v3055_v39 = vmul.f32 %v6454_v28, %v3054_v25  ;;  %v3052_v16 = vsel %vm3051_vm9, %v6452_v19, %v3048_v9  ;;  %v6148_v19 = vld [vmem:[%s8345_s16 + $0x68] sm:$0xff]  ;;  %v6194_v25 = vld [vmem:[%s8345_s16 + $0x1d8] sm:$0xff] }
0x14ed   :  { %v3063_v32 = vmul.f32 %v3052_v16, %v7972_v26  ;;  %v6158_v26 = vld [vmem:[%s8345_s16 + $0xb8] sm:$0xff]  ;;  %v6180_v9 = vld [vmem:[%s8345_s16 + $0x168] sm:$0xff]  ;;  %v6189_v16 = vld [vmem:[%s8345_s16 + $0x1b0] sm:$0xff] }
0x14ee   :  { %v3056_v27 = vmul.f32 0.5, %v3055_v39  ;;  %v6169_v39 = vld [vmem:[%s8345_s16 + $0x110] sm:$0xff] }
0x14ef   :  { %v3068_v37 = vmul.f32 %v6362_v31, %v3063_v32  ;;  %v6188_v32 = vld [vmem:[%s8345_s16 + $0x1a8] sm:$0xff] }
0x14f0   :  { %v3057_v29 = vsub.f32 1.5, %v3056_v27  ;;  %v6179_v27 = vld [vmem:[%s8345_s16 + $0x160] sm:$0xff] }
0x14f1   :  { %v3073_v40 = vadd.f32 %v6363_v34, %v3068_v37  ;;  %v6187_v37 = vld [vmem:[%s8345_s16 + $0x1a0] sm:$0xff] }
0x14f2   :  { %v3058_v33 = vmul.f32 %v6454_v28, %v3057_v29  ;;  %v6193_v29 = vld [vmem:[%s8345_s16 + $0x1d0] sm:$0xff] }
0x14f4   :  { %v3062_v12 = vsel %vm3061_vm12, %v6454_v28, %v3058_v33  ;;  %v6170_v28 = vld [vmem:[%s8345_s16 + $0x118] sm:$0xff] }
0x14f5   :  { %v3064_v38 = vmul.f32 %v3062_v12, %v7979_v30  ;;  %v6141_v30 = vld [vmem:[%s8345_s16 + $0x30] sm:$0xff]  ;;  %v6178_v33 = vld [vmem:[%s8345_s16 + $0x158] sm:$0xff]  ;;  %v6192_v12 = vld [vmem:[%s8345_s16 + $0x1c8] sm:$0xff] }
0x14f7   :  { %v3069_v35 = vmul.f32 %v6362_v31, %v3064_v38  ;;  %v6168_v31 = vld [vmem:[%s8345_s16 + $0x108] sm:$0xff]  ;;  %v6177_v38 = vld [vmem:[%s8345_s16 + $0x150] sm:$0xff] }
0x14f9   :  { %v3074_v42 = vadd.f32 %v6363_v34, %v3069_v35  ;;  %v6167_v34 = vld [vmem:[%s8345_s16 + $0x100] sm:$0xff] }
0x14fa   :  { %v6191_v35 = vld [vmem:[%s8345_s16 + $0x1c0] sm:$0xff] }
0x14fb   :  { %v3107_v6 = vpack.c.bf16 %v3074_v42, %v3073_v40  ;;  %v6186_v40 = vld [vmem:[%s8345_s16 + $0x198] sm:$0xff]  ;;  %v6176_v42 = vld [vmem:[%s8345_s16 + $0x148] sm:$0xff] }
0x14fd   :  { %5530 = vmatmul.msk.bf16.vlgmr.msra.gmra.mxu0 %vm715_vm8, %v3107_v6  ;;  %5531 = vmatmul.msk.bf16.vlgmr.msra.gmra.mxu1 %vm715_vm8, %v3107_v6 }
0x14fe   :  { %5532 = vmatmul.msk.bf16.vlgmr.msra.gmra.mxu2 %vm715_vm8, %v3107_v6  ;;  %5533 = vmatmul.msk.bf16.vlgmr.msra.gmra.mxu3 %vm715_vm8, %v3107_v6 }
0x14ff   :  { %3941 = vmatpush.bf16.msra.mxu0 %v6142_v43  ;;  %3983 = vmatpush.bf16.msra.mxu3 %v6166_v45  ;;  %v6175_v43 = vld [vmem:[%s8345_s16 + $0x140] sm:$0xff]  ;;  %v6184_v45 = vld [vmem:[%s8345_s16 + $0x188] sm:$0xff] }
0x1500   :  { %3955 = vmatpush.bf16.msra.mxu1 %v6150_v11  ;;  %3969 = vmatpush.bf16.msra.mxu2 %v6158_v26  ;;  %v8130_v11 = vld [vmem:[%s8346_s15] sm:$0xff] }
0x1503   :  { %3942 = vmatpush.bf16.msra.mxu0 %v6141_v30  ;;  %3984 = vmatpush.bf16.msra.mxu3 %v6165_v46  ;;  %v6183_v46 = vld [vmem:[%s8345_s16 + $0x180] sm:$0xff] }
0x1504   :  { %3956 = vmatpush.bf16.msra.mxu1 %v6149_v47  ;;  %3970 = vmatpush.bf16.msra.mxu2 %v6157_v49  ;;  %v3110_v47 = vperm.slane %v8130_v11, 0  ;;  %v3111_v49 = vperm.slane %v8130_v11, 1 }
0x1507   :  { %3943 = vmatpush.bf16.msra.mxu0 %v6140_v50  ;;  %3985 = vmatpush.bf16.msra.mxu3 %v6164_v23 }
0x1508   :  { %3957 = vmatpush.bf16.msra.mxu1 %v6148_v19  ;;  %3971 = vmatpush.bf16.msra.mxu2 %v6156_v36 }
0x150b   :  { %3944 = vmatpush.bf16.msra.mxu0 %v6139_v51  ;;  %3986 = vmatpush.bf16.msra.mxu3 %v6163_v52 }
0x150c   :  { %3958 = vmatpush.bf16.msra.mxu1 %v6147_v53  ;;  %3972 = vmatpush.bf16.msra.mxu2 %v6155_v54 }
0x150d   :  { %5534 = vmatmul.msk.bf16.vlgmr.msrb.gmra.mxu0 %vm715_vm8, %v3107_v6  ;;  %5535 = vmatmul.msk.bf16.vlgmr.msrb.gmra.mxu1 %vm715_vm8, %v3107_v6 }
0x150e   :  { %5536 = vmatmul.msk.bf16.vlgmr.msrb.gmra.mxu2 %vm715_vm8, %v3107_v6  ;;  %5537 = vmatmul.msk.bf16.vlgmr.msrb.gmra.mxu3 %vm715_vm8, %v3107_v6  ;;  %v6185_v6 = vld [vmem:[%s8345_s16 + $0x190] sm:$0xff] }
0x150f   :  { %3945 = vmatpush.bf16.msra.mxu0 %v6138_v55  ;;  %3987 = vmatpush.bf16.msra.mxu3 %v6162_v56  ;;  %v3112_v55 = vperm.slane %v8130_v11, 2  ;;  %v3113_v56 = vperm.slane %v8130_v11, 3 }
0x1510   :  { %3959 = vmatpush.bf16.msra.mxu1 %v6146_v57  ;;  %3973 = vmatpush.bf16.msra.mxu2 %v6154_v58 }
0x1513   :  { %3946 = vmatpush.bf16.msra.mxu0 %v6137_v60  ;;  %3988 = vmatpush.bf16.msra.mxu3 %v6161_v59 }
0x1514   :  { %3960 = vmatpush.bf16.msra.mxu1 %v6145_v44  ;;  %3974 = vmatpush.bf16.msra.mxu2 %v6153_v48  ;;  %v6202_v44 = vld [vmem:[%s8347_s18 + $0x18] sm:$0xff] }
0x1517   :  { %3947 = vmatpush.bf16.msra.mxu0 %v6136_v61  ;;  %3989 = vmatpush.bf16.msra.mxu3 %v6160_v62 }
0x1518   :  { %3961 = vmatpush.bf16.msra.mxu1 %v6144_v63  ;;  %3975 = vmatpush.bf16.msra.mxu2 %v6152_v14 }
0x151b   :  { %3948 = vmatpush.bf16.msra.mxu0 %v6135_v0  ;;  %3990 = vmatpush.bf16.msra.mxu3 %v6159_v1 }
0x151c   :  { %3962 = vmatpush.bf16.msra.mxu1 %v6143_v4  ;;  %3976 = vmatpush.bf16.msra.mxu2 %v6151_v21 }
0x151f   :  { %3997 = vmatpush.bf16.msrb.mxu0 %v6174_v2  ;;  %4039 = vmatpush.bf16.msrb.mxu3 %v6198_v3 }
0x1520   :  { %4011 = vmatpush.bf16.msrb.mxu1 %v6182_v10  ;;  %4025 = vmatpush.bf16.msrb.mxu2 %v6190_v24  ;;  %v2744_v24 = vsel %vm715_vm8, %v7888_v41, 0 }
0x1523   :  { %3998 = vmatpush.bf16.msrb.mxu0 %v6173_v5  ;;  %4040 = vmatpush.bf16.msrb.mxu3 %v6197_v7  ;;  %v6201_v7 = vld [vmem:[%s8347_s18 + $0x10] sm:$0xff] }
0x1524   :  { %4012 = vmatpush.bf16.msrb.mxu1 %v6181_v18  ;;  %4026 = vmatpush.bf16.msrb.mxu2 %v6189_v16  ;;  %v3115_v18 = vperm.slane %v8130_v11, 5 }
0x1527   :  { %3999 = vmatpush.bf16.msrb.mxu0 %v6172_v8  ;;  %4041 = vmatpush.bf16.msrb.mxu3 %v6196_v13 }
0x1528   :  { %4013 = vmatpush.bf16.msrb.mxu1 %v6180_v9  ;;  %4027 = vmatpush.bf16.msrb.mxu2 %v6188_v32  ;;  %v4373_v9 = vld [vmem:[#allocation2] sm:$0x1] }
0x152b   :  { %4000 = vmatpush.bf16.msrb.mxu0 %v6171_v17  ;;  %4042 = vmatpush.bf16.msrb.mxu3 %v6195_v20  ;;  %v3114_v17 = vperm.slane %v8130_v11, 4 }
0x152c   :  { %4014 = vmatpush.bf16.msrb.mxu1 %v6179_v27  ;;  %4028 = vmatpush.bf16.msrb.mxu2 %v6187_v37  ;;  %v3116_v37 = vperm.slane %v8130_v11, 6 }
0x152f   :  { %4001 = vmatpush.bf16.msrb.mxu0 %v6170_v28  ;;  %4043 = vmatpush.bf16.msrb.mxu3 %v6194_v25  ;;  %v6200_v28 = vld [vmem:[%s8347_s18 + $0x8] sm:$0xff] }
0x1530   :  { %4015 = vmatpush.bf16.msrb.mxu1 %v6178_v33  ;;  %4029 = vmatpush.bf16.msrb.mxu2 %v6186_v40  ;;  %v6199_v33 = vld [vmem:[%s8347_s18] sm:$0xff] }
0x1533   :  { %4002 = vmatpush.bf16.msrb.mxu0 %v6169_v39  ;;  %4044 = vmatpush.bf16.msrb.mxu3 %v6193_v29  ;;  %v7152_v29 = vmov 0  }
0x1534   :  { %4016 = vmatpush.bf16.msrb.mxu1 %v6177_v38  ;;  %4030 = vmatpush.bf16.msrb.mxu2 %v6185_v6  ;;  %v3117_v38 = vperm.slane %v8130_v11, 7 }
0x1535   :  { %6336 = vset.pattern.permute.xlu2 %v7152_v29  ;;  %6337 = vset.pattern.permute.xlu0 %v7152_v29 }
0x1536   :  { %4376 = vperm.xlu2 %6336, %v4373_v9  }
0x1537   :  { %4003 = vmatpush.bf16.msrb.mxu0 %v6168_v31  ;;  %4045 = vmatpush.bf16.msrb.mxu3 %v6192_v12 }
0x1538   :  { %4017 = vmatpush.bf16.msrb.mxu1 %v6176_v42  ;;  %4031 = vmatpush.bf16.msrb.mxu2 %v6184_v45 }
0x153b   :  { %4004 = vmatpush.bf16.msrb.mxu0 %v6167_v34  ;;  %4046 = vmatpush.bf16.msrb.mxu3 %v6191_v35 }
0x153c   :  { %4018 = vmatpush.bf16.msrb.mxu1 %v6175_v43  ;;  %4032 = vmatpush.bf16.msrb.mxu2 %v6183_v46 }
0x157a   :  { %v3298_v26 = vpop.f32.mrf.mxu0  ;;  %v3312_v30 = vpop.f32.mrf.mxu1 }
0x157b   :  { %v3299_v50 = vadd.f32 %v3298_v26, %v3110_v47  ;;  %v3313_v23 = vadd.f32 %v3312_v30, %v3111_v49 }
0x157d   :  { %v3401_v57 = vmax.f32 %v3299_v50, 0.0  ;;  %v3402_v58 = vmax.f32 %v3313_v23, 0.0 }
0x1581   :  { %v3326_v19 = vpop.f32.mrf.mxu2  ;;  %v3340_v36 = vpop.f32.mrf.mxu3 }
0x1582   :  { %v3300_v51 = vpop.f32.mrf.mxu0  ;;  %v3314_v52 = vpop.f32.mrf.mxu1  ;;  %v3327_v62 = vadd.f32 %v3326_v19, %v3112_v55  ;;  %v3341_v63 = vadd.f32 %v3340_v36, %v3113_v56 }
0x1583   :  { %v3301_v53 = vadd.f32 %v3300_v51, %v3110_v47  ;;  %v3315_v54 = vadd.f32 %v3314_v52, %v3111_v49 }
0x1584   :  { %v3403_v8 = vmax.f32 %v3327_v62, 0.0  ;;  %v3404_v10 = vmax.f32 %v3341_v63, 0.0 }
0x1585   :  { %v3409_v60 = vmax.f32 %v3301_v53, 0.0  ;;  %v3410_v59 = vmax.f32 %v3315_v54, 0.0  ;;  %v4372_v53 = vld [vmem:[#allocation37] sm:$0x1] }
0x1587   :  { %v3545_v48 = vpack.c.bf16 %v3409_v60, %v3401_v57  ;;  %v3546_v61 = vpack.c.bf16 %v3410_v59, %v3402_v58  ;;  %v6364_v57 = vld [vmem:[%s8348_s4] ss:$0 sm:$0xff] }
0x1589   :  { %v3328_v0 = vpop.f32.mrf.mxu2  ;;  %v3342_v1 = vpop.f32.mrf.mxu3  ;;  %3949 = vmatmul.bf16.vlgmr.msra.gmra.mxu0 %v3545_v48  ;;  %3963 = vmatmul.bf16.vlgmr.msra.gmra.mxu1 %v3546_v61 }
0x158a   :  { %v3329_v2 = vadd.f32 %v3328_v0, %v3112_v55  ;;  %v3343_v3 = vadd.f32 %v3342_v1, %v3113_v56  ;;  %v3354_v4 = vpop.f32.mrf.mxu0  ;;  %v3368_v5 = vpop.f32.mrf.mxu1  ;;  %4099 = vmatpush.bf16.msra.mxu0 %v6202_v44 }
0x158b   :  { %v3355_v25 = vadd.f32 %v3354_v4, %v3114_v17  ;;  %v3369_v39 = vadd.f32 %v3368_v5, %v3115_v18 }
0x158c   :  { %v3411_v13 = vmax.f32 %v3329_v2, 0.0  ;;  %v3412_v14 = vmax.f32 %v3343_v3, 0.0 }
0x158d   :  { %v3405_v35 = vmax.f32 %v3355_v25, 0.0  ;;  %v3406_v40 = vmax.f32 %v3369_v39, 0.0 }
0x158e   :  { %v3547_v20 = vpack.c.bf16 %v3411_v13, %v3403_v8  ;;  %v3548_v21 = vpack.c.bf16 %v3412_v14, %v3404_v10  ;;  %4100 = vmatpush.bf16.msra.mxu0 %v6201_v7 }
0x1590   :  { %3977 = vmatmul.bf16.vlgmr.msra.gmra.mxu2 %v3547_v20  ;;  %3991 = vmatmul.bf16.vlgmr.msra.gmra.mxu3 %v3548_v21  ;;  %v4377_v39 = vpop.permute.xlu2 %4376 }
0x1591   :  { %4390 = vmatpush.bf16.xpose.msra.mxu3 %v2744_v24  ;;  %v3382_v16 = vpop.f32.mrf.mxu2  ;;  %v3396_v27 = vpop.f32.mrf.mxu3 }
0x1592   :  { %v3356_v31 = vpop.f32.mrf.mxu0  ;;  %v3370_v32 = vpop.f32.mrf.mxu1  ;;  %4101 = vmatpush.bf16.msra.mxu0 %v6200_v28  ;;  %v3383_v26 = vadd.f32 %v3382_v16, %v3116_v37  ;;  %v3397_v30 = vadd.f32 %v3396_v27, %v3117_v38 }
0x1593   :  { %v3357_v12 = vadd.f32 %v3356_v31, %v3114_v17  ;;  %v3371_v34 = vadd.f32 %v3370_v32, %v3115_v18  ;;  %v4379_v31 = vperm.slane %v4377_v39, 0 }
0x1594   :  { %v3407_v23 = vmax.f32 %v3383_v26, 0.0  ;;  %v3408_v11 = vmax.f32 %v3397_v30, 0.0  ;;  %v6204_v26 = vld [vmem:[%s8350_s14 + $0x8] sm:$0xff]  ;;  %v6203_v30 = vld [vmem:[%s8350_s14] sm:$0xff] }
0x1595   :  { %v3413_v42 = vmax.f32 %v3357_v12, 0.0  ;;  %v3414_v6 = vmax.f32 %v3371_v34, 0.0  ;;  %v4396_v34 = vld [vmem:[%s8349_s17] sm:$0x3] }
0x1596   :  { %4102 = vmatpush.bf16.msra.mxu0 %v6199_v33 }
0x1597   :  { %v3549_v43 = vpack.c.bf16 %v3413_v42, %v3405_v35  ;;  %v3550_v45 = vpack.c.bf16 %v3414_v6, %v3406_v40  ;;  %v6210_v35 = vld [vmem:[%s8350_s14 + $0x38] sm:$0xff]  ;;  %v6209_v40 = vld [vmem:[%s8350_s14 + $0x30] sm:$0xff]  ;;  %v6208_v42 = vld [vmem:[%s8350_s14 + $0x28] sm:$0xff] }
0x1598   :  { %4196 = vmatpush.bf16.msra.mxu1 %v6210_v35  ;;  %v6207_v6 = vld [vmem:[%s8350_s14 + $0x20] sm:$0xff] }
0x1599   :  { %v3384_v46 = vpop.f32.mrf.mxu2  ;;  %v3398_v47 = vpop.f32.mrf.mxu3  ;;  %4005 = vmatmul.bf16.vlgmr.msrb.gmra.mxu0 %v3549_v43  ;;  %4019 = vmatmul.bf16.vlgmr.msrb.gmra.mxu1 %v3550_v45  ;;  %v6206_v43 = vld [vmem:[%s8350_s14 + $0x18] sm:$0xff]  ;;  %v6205_v45 = vld [vmem:[%s8350_s14 + $0x10] sm:$0xff] }
0x159a   :  { %v3385_v49 = vadd.f32 %v3384_v46, %v3116_v37  ;;  %v3399_v50 = vadd.f32 %v3398_v47, %v3117_v38  ;;  %4422 = vmatpush.bf16.msrb.mxu0 %v7888_v41  ;;  %v6365_v47 = vld [vmem:[%s8351_s23] ss:$0 sm:$0xff] }
0x159c   :  { %v3415_v19 = vmax.f32 %v3385_v49, 0.0  ;;  %v3416_v36 = vmax.f32 %v3399_v50, 0.0  ;;  %4197 = vmatpush.bf16.msra.mxu1 %v6209_v40 }
0x159e   :  { %v3551_v51 = vpack.c.bf16 %v3415_v19, %v3407_v23  ;;  %v3552_v52 = vpack.c.bf16 %v3416_v36, %v3408_v11 }
0x15a0   :  { %4033 = vmatmul.bf16.vlgmr.msrb.gmra.mxu2 %v3551_v51  ;;  %4047 = vmatmul.bf16.vlgmr.msrb.gmra.mxu3 %v3552_v52 }
0x15a1   :  { %4198 = vmatpush.bf16.msra.mxu1 %v6208_v42 }
0x15a5   :  { %4199 = vmatpush.bf16.msra.mxu1 %v6207_v6  ;;  %v6219_v6 = vld [vmem:[%s8353_s22] sm:$0xff] }
0x15a9   :  { %4200 = vmatpush.bf16.msra.mxu1 %v6206_v43 }
0x15ad   :  { %4201 = vmatpush.bf16.msra.mxu1 %v6205_v45 }
0x15b0   :  { %5875 = vmatmul.msk.bf16.vlgmr.msra.gmra.mxu3 %vm715_vm8, %v4372_v53 }
0x15b1   :  { %4202 = vmatpush.bf16.msra.mxu1 %v6204_v26 }
0x15b5   :  { %4203 = vmatpush.bf16.msra.mxu1 %v6203_v30  ;;  %v7153_v30 = vmov 128.0  }
0x1606   :  { %v3950_v54 = vpop.f32.mrf.mxu0  ;;  %v3964_v55 = vpop.f32.mrf.mxu1 }
0x1607   :  { %v3951_v59 = vadd.f32 %v6364_v57, %v3950_v54 }
0x1609   :  { %v3965_v41 = vadd.f32 %v3964_v55, %v3951_v59 }
0x160e   :  { %v3952_v56 = vpop.f32.mrf.mxu0  ;;  %v3966_v44 = vpop.f32.mrf.mxu1 }
0x160f   :  { %v3953_v48 = vadd.f32 %v6364_v57, %v3952_v56 }
0x1611   :  { %v3967_v1 = vadd.f32 %v3966_v44, %v3953_v48 }
0x1613   :  { %v3978_v58 = vpop.f32.mrf.mxu2  ;;  %v3992_v60 = vpop.f32.mrf.mxu3 }
0x1614   :  { %v3979_v62 = vadd.f32 %v3978_v58, %v3965_v41 }
0x1616   :  { %v4006_v61 = vpop.f32.mrf.mxu0  ;;  %v3993_v2 = vadd.f32 %v3992_v60, %v3979_v62  ;;  %v4020_v4 = vpop.f32.mrf.mxu1 }
0x1618   :  { %v4007_v5 = vadd.f32 %v4006_v61, %v3993_v2 }
0x161a   :  { %v4021_v14 = vadd.f32 %v4020_v4, %v4007_v5 }
0x161b   :  { %v3980_v63 = vpop.f32.mrf.mxu2  ;;  %v3994_v0 = vpop.f32.mrf.mxu3 }
0x161c   :  { %v3981_v3 = vadd.f32 %v3980_v63, %v3967_v1 }
0x161e   :  { %v3995_v7 = vadd.f32 %v3994_v0, %v3981_v3  ;;  %v4008_v8 = vpop.f32.mrf.mxu0  ;;  %v4022_v20 = vpop.f32.mrf.mxu1 }
0x1620   :  { %v4009_v17 = vadd.f32 %v4008_v8, %v3995_v7 }
0x1622   :  { %v4023_v21 = vadd.f32 %v4022_v20, %v4009_v17  ;;  %v6222_v17 = vld [vmem:[%s8353_s22 + $0x18] sm:$0xff]  ;;  %v6221_v20 = vld [vmem:[%s8353_s22 + $0x10] sm:$0xff] }
0x1623   :  { %v4034_v10 = vpop.f32.mrf.mxu2  ;;  %v4048_v13 = vpop.f32.mrf.mxu3  ;;  %4472 = vmatpush.bf16.msrb.mxu3 %v6222_v17  ;;  %v6214_v17 = vld [vmem:[%s8355_s1 + $0x18] sm:$0xff] }
0x1624   :  { %v4035_v18 = vadd.f32 %v4034_v10, %v4021_v14 }
0x1626   :  { %v4049_v9 = vadd.f32 %v4048_v13, %v4035_v18  ;;  %v6366_v13 = vld [vmem:[%s8352_s29] ss:$0 sm:$0xff] }
0x1627   :  { %4473 = vmatpush.bf16.msrb.mxu3 %v6221_v20  ;;  %v6213_v20 = vld [vmem:[%s8355_s1 + $0x10] sm:$0xff] }
0x1628   :  { %v4053_v27 = vadd.f32 %v4049_v9, %v7961_v15 }
0x162b   :  { %v4036_v28 = vpop.f32.mrf.mxu2  ;;  %v4050_v24 = vpop.f32.mrf.mxu3 }
0x162c   :  { %v4037_v25 = vadd.f32 %v4036_v28, %v4023_v21 }
0x162e   :  { %v4051_v16 = vadd.f32 %v4050_v24, %v4037_v25  ;;  %v6220_v24 = vld [vmem:[%s8353_s22 + $0x8] sm:$0xff] }
0x162f   :  { %4474 = vmatpush.bf16.msrb.mxu3 %v6220_v24 }
0x1630   :  { %v4054_v29 = vadd.f32 %v4051_v16, %v7966_v22 }
0x1632   :  { %v4063_v32 = vpack.c.bf16 %v4054_v29, %v4053_v27 }
0x1633   :  { %v4392_v33 = vpop.f32.mrf.mxu3  ;;  %4475 = vmatpush.bf16.msrb.mxu3 %v6219_v6 }
0x1634   :  { %v4393_v12 = vadd.f32 %v4392_v33, %v4379_v31  ;;  %5810 = vmatmul.msk.bf16.vlgmr.msra.gmra.mxu0 %vm715_vm8, %v4063_v32 }
0x1636   :  { %v4397_v37 = vperm.slane %v4393_v12, 0 }
0x1638   :  { %v4398_v38 = vadd.f32 %v4397_v37, %v4396_v34 }
0x163a   :  { %v4400_v15 = vsel %vm4399_vm13, %v4398_v38, -inf }
0x163b   :  { %4401 = vmax.xlane.f32.xlu0 %v4400_v15  ;;  %v4394_v22 = vpop.f32.mrf.mxu3 }
0x16ae   :  { %v4402_v46 = vpop.xlane.xlu0 %4401 }
0x16af   :  { %v4403_v49 = vsub.f32 %v4398_v38, %v4402_v46 }
0x16b1   :  { %v4404_v50 = vmul.f32 1.442695, %v4403_v49  ;;  %v4104_v23 = vpop.f32.mrf.mxu0  ;;  %v6230_v49 = vld [vmem:[%s8354_s26 + $0x38] sm:$0xff] }
0x16b2   :  { %v4105_v11 = vadd.f32 %v6365_v47, %v4104_v23  ;;  %4559 = vmatpush.bf16.msra.mxu0 %v6230_v49  ;;  %v6369_v49 = vld [vmem:[%s8357_s20] ss:$0 sm:$0xff] }
0x16b3   :  { %6455 = vpow2.f32 %v4404_v50  ;;  %v6229_v50 = vld [vmem:[%s8354_s26 + $0x30] sm:$0xff] }
0x16b4   :  { %v4111_v19 = vmul.f32 0.044715, %v4105_v11  ;;  %v4109_v63 = vmul.f32 0.5, %v4105_v11 }
0x16b6   :  { %v4113_v36 = vmul.f32 %v4111_v19, %v4105_v11  ;;  %4560 = vmatpush.bf16.msra.mxu0 %v6229_v50 }
0x16b8   :  { %v4115_v51 = vmul.f32 %v4113_v36, %v4105_v11 }
0x16b9   :  { %v6456_v52 = vpop.eup %6455  ;;  %v4106_v53 = vpop.f32.mrf.mxu0 }
0x16ba   :  { %v4117_v54 = vadd.f32 %v4115_v51, %v4105_v11  ;;  %v4107_v55 = vadd.f32 %v6365_v47, %v4106_v53  ;;  %v4406_v56 = vsel %vm4399_vm13, %v6456_v52, 0.0 }
0x16bb   :  { %4407 = vadd.xlane.f32.xlu1 %v4406_v56 }
0x16bc   :  { %v4112_v57 = vmul.f32 0.044715, %v4107_v55  ;;  %v4119_v58 = vmul.f32 0.7978846, %v4117_v54  ;;  %v4110_v0 = vmul.f32 0.5, %v4107_v55 }
0x16be   :  { %v4114_v60 = vmul.f32 %v4112_v57, %v4107_v55  ;;  %6457 = vtanh.f32 %v4119_v58 }
0x16c0   :  { %v4116_v59 = vmul.f32 %v4114_v60, %v4107_v55  ;;  %v6228_v60 = vld [vmem:[%s8354_s26 + $0x28] sm:$0xff] }
0x16c1   :  { %4561 = vmatpush.bf16.msra.mxu0 %v6228_v60 }
0x16c2   :  { %v4118_v44 = vadd.f32 %v4116_v59, %v4107_v55  ;;  %v6227_v59 = vld [vmem:[%s8354_s26 + $0x20] sm:$0xff] }
0x16c4   :  { %v4120_v41 = vmul.f32 0.7978846, %v4118_v44  ;;  %v6458_v48 = vpop.eup %6457  ;;  %v6226_v44 = vld [vmem:[%s8354_s26 + $0x18] sm:$0xff] }
0x16c5   :  { %v4123_v61 = vadd.f32 1.0, %v6458_v48  ;;  %4562 = vmatpush.bf16.msra.mxu0 %v6227_v59  ;;  %v6224_v48 = vld [vmem:[%s8354_s26 + $0x8] sm:$0xff] }
0x16c6   :  { %6459 = vtanh.f32 %v4120_v41  ;;  %v6225_v41 = vld [vmem:[%s8354_s26 + $0x10] sm:$0xff] }
0x16c7   :  { %v4125_v2 = vmul.f32 %v4123_v61, %v4109_v63  ;;  %v6223_v61 = vld [vmem:[%s8354_s26] sm:$0xff]  ;;  %v6218_v63 = vld [vmem:[%s8355_s1 + $0x38] sm:$0xff] }
0x16c8   :  { %4356 = vmatpush.bf16.msra.mxu2 %v6218_v63 }
0x16c9   :  { %4563 = vmatpush.bf16.msra.mxu0 %v6226_v44 }
0x16cc   :  { %v6460_v62 = vpop.eup %6459 }
0x16cd   :  { %v4124_v1 = vadd.f32 1.0, %v6460_v62  ;;  %4564 = vmatpush.bf16.msra.mxu0 %v6225_v41  ;;  %v6367_v62 = vld [vmem:[#allocation29] ss:$0 sm:$0xff] }
0x16cf   :  { %v4126_v3 = vmul.f32 %v4124_v1, %v4110_v0 }
0x16d1   :  { %v4143_v4 = vpack.c.bf16 %v4126_v3, %v4125_v2  ;;  %4565 = vmatpush.bf16.msra.mxu0 %v6224_v48  ;;  %v6217_v3 = vld [vmem:[%s8355_s1 + $0x30] sm:$0xff] }
0x16d2   :  { %4357 = vmatpush.bf16.msra.mxu2 %v6217_v3 }
0x16d3   :  { %4204 = vmatmul.bf16.vlgmr.msra.gmra.mxu1 %v4143_v4 }
0x16d5   :  { %4566 = vmatpush.bf16.msra.mxu0 %v6223_v61 }
0x172e   :  { %v4408_v5 = vpop.xlane.xlu1 %4407 }
0x172f   :  { %6461 = vrcp.f32 %v4408_v5 }
0x1735   :  { %v6462_v7 = vpop.eup %6461 }
0x1736   :  { %v4410_v8 = vmul.f32 %v6462_v7, %v6456_v52  ;;  %v6216_v7 = vld [vmem:[%s8355_s1 + $0x28] sm:$0xff] }
0x1737   :  { %4358 = vmatpush.bf16.msra.mxu2 %v6216_v7 }
0x1738   :  { %v4411_v10 = vpack.c.bf16 %v4410_v8, %v4410_v8 }
0x173a   :  { %5876 = vmatmul.msk.bf16.vlgmr.msrb.gmra.mxu0 %vm603_vm0, %v4411_v10 }
0x1750   :  { %v4205_v14 = vpop.f32.mrf.mxu1 }
0x1751   :  { %v4206_v18 = vadd.f32 %v6366_v13, %v4205_v14  ;;  %v6215_v14 = vld [vmem:[%s8355_s1 + $0x20] sm:$0xff] }
0x1752   :  { %4359 = vmatpush.bf16.msra.mxu2 %v6215_v14 }
0x1753   :  { %v4212_v21 = vmul.f32 0.044715, %v4206_v18  ;;  %v4210_v37 = vmul.f32 0.5, %v4206_v18 }
0x1755   :  { %v4214_v28 = vmul.f32 %v4212_v21, %v4206_v18 }
0x1756   :  { %4360 = vmatpush.bf16.msra.mxu2 %v6214_v17  ;;  %v6237_v17 = vld [vmem:[%s8359_s2 + $0x30] sm:$0xff] }
0x1757   :  { %v4216_v9 = vmul.f32 %v4214_v28, %v4206_v18 }
0x1758   :  { %v4207_v25 = vpop.f32.mrf.mxu1 }
0x1759   :  { %v4208_v39 = vadd.f32 %v6366_v13, %v4207_v25  ;;  %v4218_v16 = vadd.f32 %v4216_v9, %v4206_v18  ;;  %v6212_v9 = vld [vmem:[%s8355_s1 + $0x8] sm:$0xff] }
0x175a   :  { %4361 = vmatpush.bf16.msra.mxu2 %v6213_v20  ;;  %v6235_v20 = vld [vmem:[%s8359_s2 + $0x20] sm:$0xff] }
0x175b   :  { %v4220_v27 = vmul.f32 0.7978846, %v4218_v16  ;;  %v4213_v29 = vmul.f32 0.044715, %v4208_v39  ;;  %v4211_v35 = vmul.f32 0.5, %v4208_v39 }
0x175d   :  { %6463 = vtanh.f32 %v4220_v27  ;;  %v4215_v31 = vmul.f32 %v4213_v29, %v4208_v39  ;;  %v6211_v29 = vld [vmem:[%s8355_s1] sm:$0xff] }
0x175e   :  { %4362 = vmatpush.bf16.msra.mxu2 %v6212_v9  ;;  %v6231_v9 = vld [vmem:[%s8359_s2] sm:$0xff] }
0x175f   :  { %v4217_v32 = vmul.f32 %v4215_v31, %v4208_v39 }
0x1761   :  { %v4219_v33 = vadd.f32 %v4217_v32, %v4208_v39 }
0x1762   :  { %4363 = vmatpush.bf16.msra.mxu2 %v6211_v29 }
0x1763   :  { %v6464_v12 = vpop.eup %6463  ;;  %v4221_v34 = vmul.f32 0.7978846, %v4219_v33 }
0x1764   :  { %v4224_v38 = vadd.f32 1.0, %v6464_v12 }
0x1765   :  { %6465 = vtanh.f32 %v4221_v34 }
0x1766   :  { %v4226_v15 = vmul.f32 %v4224_v38, %v4210_v37  ;;  %6467 = vrcp.f32 %v7153_v30 }
0x1768   :  { %4230 = vadd.xlane.f32.xlu1 %v4226_v15 }
0x176b   :  { %v6466_v22 = vpop.eup %6465 }
0x176c   :  { %v4225_v40 = vadd.f32 1.0, %v6466_v22  ;;  %v6468_v46 = vpop.eup %6467 }
0x176d   :  { %v4235_v47 = vmul.f32 128.0, %v6468_v46  ;;  %vm4239_vm0 = vweird.f32 %v6468_v46 }
0x176e   :  { %v4227_v42 = vmul.f32 %v4225_v40, %v4211_v35 }
0x176f   :  { %v4236_v23 = vsub.f32 1.0, %v4235_v47 }
0x1770   :  { %4232 = vadd.xlane.f32.xlu1 %v4227_v42 }
0x1771   :  { %v4237_v11 = vmul.f32 %v6468_v46, %v4236_v23 }
0x1773   :  { %v4238_v19 = vadd.f32 %v6468_v46, %v4237_v11 }
0x1775   :  { %v8174_v36 = vsel %vm4239_vm0, %v6468_v46, %v4238_v19 }
0x17b7   :  { %v4424_v43 = vpop.f32.mrf.mxu0 }
0x17b8   :  { %v4436_v45 = vpack.c.bf16 %v4424_v43, %v4424_v43 }
0x17ba   :  { %5893 = vmatmul.msk.bf16.vlgmr.msrb.gmra.mxu3 %vm715_vm8, %v4436_v45 }
0x17bf   :  { %v4426_v26 = vpop.f32.mrf.mxu0 }
0x17c0   :  { %v6368_v26 = vld [vmem:[%s8356_s19] ss:$0 sm:$0xff] }
0x17db   :  { %v4231_v51 = vpop.xlane.xlu1 %4230 }
0x17dc   :  { %v4241_v52 = vmul.f32 %v8174_v36, %v4231_v51 }
0x17de   :  { %v8177_v53 = vsub.f32 %v4226_v15, %v4241_v52 }
0x17e0   :  { %v4245_v54 = vmul.f32 %v8177_v53, %v8177_v53 }
0x17e2   :  { %4247 = vadd.xlane.f32.xlu1 %v4245_v54  ;;  %v6370_v54 = vld [vmem:[#allocation31] ss:$0 sm:$0xff] }
0x17e3   :  { %v4233_v55 = vpop.xlane.xlu1 %4232 }
0x17e4   :  { %v4242_v56 = vmul.f32 %v8174_v36, %v4233_v55 }
0x17e6   :  { %v8182_v57 = vsub.f32 %v4227_v42, %v4242_v56 }
0x17e8   :  { %v4246_v58 = vmul.f32 %v8182_v57, %v8182_v57 }
0x17ea   :  { %4249 = vadd.xlane.f32.xlu1 %v4246_v58 }
0x183d   :  { %v4477_v0 = vpop.f32.mrf.mxu3 }
0x183e   :  { %v4478_v1 = vadd.f32 %v6367_v62, %v4477_v0  ;;  %v6371_v0 = vld [vmem:[%s8358_s28] ss:$0 sm:$0xff] }
0x1840   :  { %v4482_v2 = vmul.f32 0.044715, %v4478_v1  ;;  %v4481_v21 = vmul.f32 0.5, %v4478_v1 }
0x1842   :  { %v4483_v4 = vmul.f32 %v4482_v2, %v4478_v1 }
0x1844   :  { %v4484_v5 = vmul.f32 %v4483_v4, %v4478_v1 }
0x1845   :  { %v4479_v8 = vpop.f32.mrf.mxu3 }
0x1846   :  { %v4485_v10 = vadd.f32 %v4484_v5, %v4478_v1  ;;  %v6238_v5 = vld [vmem:[%s8359_s2 + $0x38] sm:$0xff] }
0x1847   :  { %4683 = vmatpush.bf16.msrb.mxu1 %v6238_v5 }
0x1848   :  { %v4486_v13 = vmul.f32 0.7978846, %v4485_v10 }
0x184a   :  { %6469 = vtanh.f32 %v4486_v13 }
0x184b   :  { %4684 = vmatpush.bf16.msrb.mxu1 %v6237_v17 }
0x1850   :  { %v6470_v18 = vpop.eup %6469 }
0x1851   :  { %v4488_v28 = vadd.f32 1.0, %v6470_v18  ;;  %v6236_v18 = vld [vmem:[%s8359_s2 + $0x28] sm:$0xff] }
0x1852   :  { %4685 = vmatpush.bf16.msrb.mxu1 %v6236_v18 }
0x1853   :  { %v4489_v24 = vmul.f32 %v4488_v28, %v4481_v21  ;;  %v6234_v21 = vld [vmem:[%s8359_s2 + $0x18] sm:$0xff]  ;;  %v6233_v28 = vld [vmem:[%s8359_s2 + $0x10] sm:$0xff] }
0x1855   :  { %v4248_v25 = vpop.xlane.xlu1 %4247  ;;  %v4506_v39 = vpack.c.bf16 %v4489_v24, %v4489_v24  ;;  %v6232_v24 = vld [vmem:[%s8359_s2 + $0x8] sm:$0xff] }
0x1856   :  { %v4251_v16 = vmul.f32 %v4248_v25, %v8174_v36  ;;  %4686 = vmatpush.bf16.msrb.mxu1 %v6235_v20 }
0x1857   :  { %4567 = vmatmul.bf16.vlgmr.msra.gmra.mxu0 %v4506_v39 }
0x1858   :  { %v4253_v27 = vadd.f32 1e-05, %v4251_v16 }
0x185a   :  { %6471 = vrsqrt.f32 %v4253_v27  ;;  %vm4261_vm14 = vweird.f32 %v4253_v27  ;;  %4687 = vmatpush.bf16.msrb.mxu1 %v6234_v21 }
0x185d   :  { %v4250_v31 = vpop.xlane.xlu1 %4249 }
0x185e   :  { %v4252_v32 = vmul.f32 %v4250_v31, %v8174_v36  ;;  %4688 = vmatpush.bf16.msrb.mxu1 %v6233_v28 }
0x1860   :  { %v6472_v33 = vpop.eup %6471  ;;  %v4254_v12 = vadd.f32 1e-05, %v4252_v32 }
0x1861   :  { %v4256_v34 = vmul.f32 %v6472_v33, %v4253_v27  ;;  %vm4262_vm8 = vweird.f32 %v6472_v33 }
0x1862   :  { %6473 = vrsqrt.f32 %v4254_v12  ;;  %vm4263_vm15 = vmor %vm4261_vm14, %vm4262_vm8  ;;  %vm4271_vm3 = vweird.f32 %v4254_v12  ;;  %4689 = vmatpush.bf16.msrb.mxu1 %v6232_v24 }
0x1863   :  { %v4257_v37 = vmul.f32 %v6472_v33, %v4256_v34  ;;  %v6372_v34 = vld [vmem:[#allocation35] ss:$0 sm:$0xff] }
0x1865   :  { %v4258_v38 = vmul.f32 0.5, %v4257_v37 }
0x1866   :  { %4690 = vmatpush.bf16.msrb.mxu1 %v6231_v9 }
0x1867   :  { %v4259_v15 = vsub.f32 1.5, %v4258_v38 }
0x1868   :  { %v6474_v22 = vpop.eup %6473 }
0x1869   :  { %v4260_v35 = vmul.f32 %v6472_v33, %v4259_v15  ;;  %v4266_v40 = vmul.f32 %v6474_v22, %v4254_v12  ;;  %vm4272_vm2 = vweird.f32 %v6474_v22  ;;  %v6373_v15 = vld [vmem:[#allocation34] ss:$0 sm:$0xff] }
0x186a   :  { %vm4273_vm4 = vmor %vm4271_vm3, %vm4272_vm2 }
0x186b   :  { %v4267_v42 = vmul.f32 %v6474_v22, %v4266_v40  ;;  %v4264_v6 = vsel %vm4263_vm15, %v6472_v33, %v4260_v35 }
0x186c   :  { %v4275_v30 = vmul.f32 %v4264_v6, %v8177_v53 }
0x186d   :  { %v4268_v43 = vmul.f32 0.5, %v4267_v42 }
0x186e   :  { %v4280_v50 = vmul.f32 %v6368_v26, %v4275_v30 }
0x186f   :  { %v4269_v45 = vsub.f32 1.5, %v4268_v43 }
0x1870   :  { %v4285_v19 = vadd.f32 %v6369_v49, %v4280_v50 }
0x1871   :  { %v4270_v46 = vmul.f32 %v6474_v22, %v4269_v45 }
0x1873   :  { %v4274_v47 = vsel %vm4273_vm4, %v6474_v22, %v4270_v46 }
0x1874   :  { %v4276_v23 = vmul.f32 %v4274_v47, %v8182_v57 }
0x1876   :  { %v4281_v11 = vmul.f32 %v6368_v26, %v4276_v23 }
0x1878   :  { %v4286_v51 = vadd.f32 %v6369_v49, %v4281_v11 }
0x187a   :  { %v4303_v52 = vpack.c.bf16 %v4286_v51, %v4285_v19 }
0x187c   :  { %4364 = vmatmul.bf16.vlgmr.msra.gmra.mxu2 %v4303_v52 }
0x18d4   :  { %v4568_v55 = vpop.f32.mrf.mxu0 }
0x18d5   :  { %v4569_v56 = vadd.f32 %v6370_v54, %v4568_v55 }
0x18d7   :  { %v4573_v58 = vmul.f32 0.044715, %v4569_v56  ;;  %v4572_v48 = vmul.f32 0.5, %v4569_v56 }
0x18d9   :  { %v4574_v60 = vmul.f32 %v4573_v58, %v4569_v56 }
0x18db   :  { %v4575_v53 = vmul.f32 %v4574_v60, %v4569_v56 }
0x18dc   :  { %v4570_v59 = vpop.f32.mrf.mxu0 }
0x18dd   :  { %v4576_v44 = vadd.f32 %v4575_v53, %v4569_v56 }
0x18df   :  { %v4577_v41 = vmul.f32 0.7978846, %v4576_v44 }
0x18e1   :  { %6475 = vtanh.f32 %v4577_v41 }
0x18e7   :  { %v6476_v57 = vpop.eup %6475 }
0x18e8   :  { %v4579_v61 = vadd.f32 1.0, %v6476_v57 }
0x18ea   :  { %v4580_v62 = vmul.f32 %v4579_v61, %v4572_v48 }
0x18ec   :  { %v4584_v63 = vsel %vm4583_vm5, %v4580_v62, 0.0 }
0x18ed   :  { %4585 = vadd.xlane.f32.xlu2 %v4584_v63 }
0x18ff   :  { %v4365_v1 = vpop.f32.mrf.mxu2 }
0x1900   :  { %v4366_v2 = vadd.f32 %v6371_v0, %v4365_v1 }
0x1902   :  { %4370 = vst [vmem:[%s7500_s27] sm:$0xff] %v4366_v2 }
0x1907   :  { %v4367_v3 = vpop.f32.mrf.mxu2 }
0x1908   :  { %v4368_v4 = vadd.f32 %v6371_v0, %v4367_v3 }
0x190a   :  { %4371 = vst [vmem:[%s7500_s27 + $0x8] sm:$0xff] %v4368_v4 }
0x1960   :  { %v4586_v7 = vpop.xlane.xlu2 %4585 }
0x1961   :  { %v4587_v8 = vmul.f32 %v4586_v7, %v8174_v36 }
0x1963   :  { %v4588_v10 = vsub.f32 %v4580_v62, %v4587_v8 }
0x1965   :  { %v4589_v13 = vmul.f32 %v4588_v10, %v4588_v10 }
0x1967   :  { %v4590_v14 = vsel %vm4583_vm5, %v4589_v13, 0.0 }
0x1968   :  { %4591 = vadd.xlane.f32.xlu1 %v4590_v14 }
0x19db   :  { %v4592_v25 = vpop.xlane.xlu1 %4591 }
0x19dc   :  { %v4593_v39 = vmul.f32 %v4592_v25, %v8174_v36  ;;  %v6374_v36 = vld [vmem:[#allocation32] ss:$0 sm:$0xff] }
0x19de   :  { %v4594_v16 = vadd.f32 1e-05, %v4593_v39 }
0x19e0   :  { %6477 = vrsqrt.f32 %v4594_v16  ;;  %vm4601_vm1 = vweird.f32 %v4594_v16 }
0x19e6   :  { %v6478_v27 = vpop.eup %6477 }
0x19e7   :  { %v4596_v29 = vmul.f32 %v6478_v27, %v4594_v16  ;;  %vm4602_vm6 = vweird.f32 %v6478_v27 }
0x19e8   :  { %vm4603_vm7 = vmor %vm4601_vm1, %vm4602_vm6 }
0x19e9   :  { %v4597_v31 = vmul.f32 %v6478_v27, %v4596_v29 }
0x19eb   :  { %v4598_v32 = vmul.f32 0.5, %v4597_v31 }
0x19ed   :  { %v4599_v33 = vsub.f32 1.5, %v4598_v32 }
0x19ef   :  { %v4600_v12 = vmul.f32 %v6478_v27, %v4599_v33 }
0x19f1   :  { %v4604_v37 = vsel %vm4603_vm7, %v6478_v27, %v4600_v12 }
0x19f2   :  { %v4605_v38 = vmul.f32 %v4604_v37, %v4588_v10 }
0x19f4   :  { %v4609_v22 = vmul.f32 %v6372_v34, %v4605_v38 }
0x19f6   :  { %v4613_v35 = vadd.f32 %v6373_v15, %v4609_v22 }
0x19f8   :  { %v4630_v40 = vpack.c.bf16 %v4613_v35, %v4613_v35 }
0x19fa   :  { %4691 = vmatmul.bf16.vlgmr.msrb.gmra.mxu1 %v4630_v40 }
0x1a77   :  { %v4692_v42 = vpop.f32.mrf.mxu1 }
0x1a78   :  { %v4693_v6 = vadd.f32 %v6374_v36, %v4692_v42 }
0x1a7a   :  { %4696 = vst [vmem:[%s7505_s9] sm:$0x3] %v4693_v6 }
0x1a7f   :  { %v4694_v43 = vpop.f32.mrf.mxu1 }
0x1a80   :  { %4705 = vsyncpa [#allocation4], 1 }
0x1a81   :  { %4706 = vsyncpa [#allocation6], 1 }
0x1a82   :  { %4707 = vsyncpa [#allocation9], 1 }
0x1a83   :  { %4708 = vsyncpa [#allocation12], 1 }
0x1a84   :  { %4709 = vsyncpa [#allocation15], 1 }
0x1a85   :  { %4710 = vsyncpa [#allocation18], 1 }
0x1a86   :  { %4711 = vsyncpa [#allocation21], 1 }
0x1a87   :  { %4712 = vsyncpa [#allocation24], 1 }
0x1a88   :  { %4713 = vsyncpa [#allocation27], 1 }
0x1a89   :  { %4714 = vsyncpa [#allocation30], 1 }
0x1a8a   :  { %4715 = vsyncpa [#allocation33], 1 }
0x1a8b   :  { %4716 = vsyncpa [#allocation36], 1 }

</bundles_post_ra>
